<compile_context>
chip_gen: v5e
topology: v5e:2x2
jax: 0.10.0
libtpu: 0.0.40
codegen_flags: <defaults>
</compile_context>

<pallas_src>
import functools

import jax
import jax.numpy as jnp
from jax.experimental import pallas as pl
from jax.experimental.pallas import tpu as pltpu

LANE = 128
C1_PAD = 16              # conv1 out-channels (12) padded to 16 for the conv2 contraction
C2_KEEP = 32             # conv2 out-channels kept for the FC flatten
K1 = 128                 # conv1 im2col K: 5*5*3 = 75 -> 128
K2 = 512                 # conv2 im2col K: 5*5*16 = 400 -> 512
KFC = 25 * C2_KEEP       # FC input features: 800


def _round_up(x, m):
    return (x + m - 1) // m * m


def _pick_tile(m, tile):
    """Row-tile: multiple of 8, and grid >= 2 when there is enough work."""
    m8 = _round_up(m, 8)
    if m8 <= tile:
        if m8 >= 16:
            return _round_up(-(-m // 2), 8)
        return m8
    if m8 <= 2 * tile:
        return _round_up(-(-m // 2), 8)
    return tile


# ----------------------------------------------------------------------------
# Pallas kernels
# ----------------------------------------------------------------------------
def _conv_pool_kernel(p_ref, w_ref, b_ref, o_ref, acc_ref):
    """Fused conv(matmul) + bias + ReLU + AvgPool2d(2,2).

    p_ref: (4, TM, K)  -- 4 pool taps of im2col rows for the *pooled* grid
    w_ref: (K, 128)    -- flattened conv weights, out-channels lane-padded
    b_ref: (1, 128)
    o_ref: (TM, 128)   -- pooled activations, lane-dense
    acc_ref: (TM, 128) -- VMEM accumulator scratch (keeps vreg pressure low)
    """
    w = w_ref[...]
    # Hoist the bias broadcast out of the tap loop (broadcast_in_dim is not CSE'd).
    bb = jnp.broadcast_to(b_ref[...], (p_ref.shape[1], w.shape[1]))
    for t in range(4):  # static unroll over the 4 pool taps
        y = jnp.maximum(
            jnp.dot(p_ref[t], w, preferred_element_type=jnp.float32) + bb, 0.0)
        if t == 0:
            acc_ref[...] = y
        else:
            acc_ref[...] += y
    o_ref[...] = (0.25 * acc_ref[...]).astype(o_ref.dtype)


def _fc_stack_kernel(x_ref, w1_ref, b1_ref, w2_ref, b2_ref, w3_ref, b3_ref,
                     o_ref, *, num_classes):
    """Fused l1+ReLU -> l2+ReLU -> l3+softmax, all lane-padded to 128."""
    h = jnp.dot(x_ref[...], w1_ref[...], preferred_element_type=jnp.float32) + b1_ref[...]
    h = jnp.maximum(h, 0.0)
    h = jnp.dot(h, w2_ref[...], preferred_element_type=jnp.float32) + b2_ref[...]
    h = jnp.maximum(h, 0.0)
    logits = jnp.dot(h, w3_ref[...], preferred_element_type=jnp.float32) + b3_ref[...]
    # Mask padded class lanes so they don't pollute the softmax denominator.
    col = jax.lax.broadcasted_iota(jnp.int32, logits.shape, 1)
    logits = jnp.where(col < num_classes, logits, jnp.float32(-1e30))
    m = jnp.max(logits, axis=-1, keepdims=True)
    e = jnp.exp(logits - m)
    inv = pl.reciprocal(jnp.sum(e, axis=-1, keepdims=True), approx=False)
    o_ref[...] = (e * inv).astype(o_ref.dtype)


# ----------------------------------------------------------------------------
# Pallas wrappers
# ----------------------------------------------------------------------------
def conv_relu_pool(patches, wmat, bias, tile_m=128):
    """patches: (4, M, K) f32, wmat: (K, 128), bias: (1, 128) -> (M, 128)."""
    _, M, K = patches.shape
    OCp = wmat.shape[1]
    tm = _pick_tile(M, tile_m)
    Mp = _round_up(M, tm)
    if Mp != M:
        patches = jnp.pad(patches, ((0, 0), (0, Mp - M), (0, 0)))
    out = pl.pallas_call(
        _conv_pool_kernel,
        out_shape=jax.ShapeDtypeStruct((Mp, OCp), jnp.float32),
        grid=(Mp // tm,),
        in_specs=[
            pl.BlockSpec((4, tm, K), lambda m: (0, m, 0)),
            pl.BlockSpec((K, OCp), lambda m: (0, 0)),
            pl.BlockSpec((1, OCp), lambda m: (0, 0)),
        ],
        out_specs=pl.BlockSpec((tm, OCp), lambda m: (m, 0)),
        scratch_shapes=[pltpu.VMEM((tm, OCp), jnp.float32)],
        compiler_params=pltpu.CompilerParams(
            dimension_semantics=("parallel",),
            vmem_limit_bytes=32 * 1024 * 1024),
        cost_estimate=pl.CostEstimate(
            flops=2 * 4 * Mp * K * OCp,
            transcendentals=0,
            bytes_accessed=(4 * Mp * K + K * OCp + OCp + Mp * OCp) * 4),
    )(patches, wmat, bias)
    return out[:M]


def fc_stack(x, W1, B1, W2, B2, W3, B3, num_classes=10, tile_b=128):
    """x: (N, K) -> softmax probabilities (N, num_classes)."""
    N, K = x.shape
    tb = _pick_tile(N, tile_b)
    Np = _round_up(N, tb)
    if Np != N:
        x = jnp.pad(x, ((0, Np - N), (0, 0)))
    kernel = functools.partial(_fc_stack_kernel, num_classes=num_classes)
    out = pl.pallas_call(
        kernel,
        out_shape=jax.ShapeDtypeStruct((Np, LANE), jnp.float32),
        grid=(Np // tb,),
        in_specs=[
            pl.BlockSpec((tb, K), lambda m: (m, 0)),
            pl.BlockSpec(W1.shape, lambda m: (0, 0)),
            pl.BlockSpec((1, LANE), lambda m: (0, 0)),
            pl.BlockSpec(W2.shape, lambda m: (0, 0)),
            pl.BlockSpec((1, LANE), lambda m: (0, 0)),
            pl.BlockSpec(W3.shape, lambda m: (0, 0)),
            pl.BlockSpec((1, LANE), lambda m: (0, 0)),
        ],
        out_specs=pl.BlockSpec((tb, LANE), lambda m: (m, 0)),
        compiler_params=pltpu.CompilerParams(
            dimension_semantics=("parallel",),
            vmem_limit_bytes=32 * 1024 * 1024),
        cost_estimate=pl.CostEstimate(
            flops=2 * Np * (K * LANE + LANE * LANE + LANE * LANE),
            transcendentals=Np * LANE,
            bytes_accessed=(Np * K + K * LANE + 2 * LANE * LANE
                            + 3 * LANE + Np * LANE) * 4),
    )(x, W1, B1, W2, B2, W3, B3)
    return out[:N, :num_classes]


# ----------------------------------------------------------------------------
# Wrapper glue: pool-tap im2col patch build (channel-last, lane-padded K)
# ----------------------------------------------------------------------------
def _pool_tap_patches(x_nhwc, kh, kw, hp, wp, k_pad):
    """x_nhwc: (N, H, W, C) -> (4, N*hp*wp, k_pad).

    Tap (dh, dw) row (n, hp_i, wp_i) holds the conv input window starting at
    (2*hp_i+dh, 2*wp_i+dw), flattened in (i, j, c) order; lanes >= kh*kw*C are
    zero (lane-pad is free in HBM since XLA tiles the minor dim to 128 anyway).
    """
    N, _, _, C = x_nhwc.shape
    k_raw = kh * kw * C
    taps = []
    for dh in range(2):
        for dw in range(2):
            cols = []
            for i in range(kh):
                for j in range(kw):
                    cols.append(x_nhwc[:, dh + i: dh + i + 2 * hp: 2,
                                       dw + j: dw + j + 2 * wp: 2, :])
            if k_pad > k_raw:
                cols.append(jnp.zeros((N, hp, wp, k_pad - k_raw), x_nhwc.dtype))
            t = jnp.concatenate(cols, axis=-1)            # (N, hp, wp, k_pad)
            taps.append(t.reshape(N * hp * wp, k_pad))
    return jnp.stack(taps, axis=0)


# ----------------------------------------------------------------------------
# Parameters: init (PyTorch-style) + one-time prep (pad/permute/transpose)
# ----------------------------------------------------------------------------
def init_params(key):
    ks = jax.random.split(key, 10)

    def u(k, shape, fan_in):
        lim = 1.0 / jnp.sqrt(jnp.float32(fan_in))
        return jax.random.uniform(k, shape, jnp.float32, -lim, lim)

    return {
        "conv1_w": u(ks[0], (12, 3, 5, 5), 3 * 5 * 5),
        "conv1_b": u(ks[1], (12,), 3 * 5 * 5),
        "conv2_w": u(ks[2], (32, 12, 5, 5), 12 * 5 * 5),
        "conv2_b": u(ks[3], (32,), 12 * 5 * 5),
        "l1_w": u(ks[4], (120, 32 * 5 * 5), 32 * 5 * 5),
        "l1_b": u(ks[5], (120,), 32 * 5 * 5),
        "l2_w": u(ks[6], (84, 120), 120),
        "l2_b": u(ks[7], (84,), 120),
        "l3_w": u(ks[8], (10, 84), 84),
        "l3_b": u(ks[9], (10,), 84),
    }


def prepare_params(params):
    """One-time weight prep: flatten convs to (K, 128) in (i, j, c) order, permute
    l1 to HWC order, zero-pad only as much as the contractions need."""
    def pad_bias(b):
        return jnp.pad(b, (0, LANE - b.shape[0])).reshape(1, LANE)

    # conv1: patch lanes ordered (i, j, c) with C=3 -> (75, 12), padded to (128, 128)
    c1w = params["conv1_w"].transpose(2, 3, 1, 0).reshape(25 * 3, 12)
    wmat1 = jnp.zeros((K1, LANE), jnp.float32).at[:75, :12].set(c1w)
    bc1 = pad_bias(params["conv1_b"])

    # conv2: activations carry C1_PAD=16 channels -> rows (i, j, c<16), pad rows to K2
    c2w = params["conv2_w"].transpose(2, 3, 1, 0)                    # (5, 5, 12, 32)
    w2 = jnp.zeros((5, 5, C1_PAD, LANE), jnp.float32)
    w2 = w2.at[:, :, :12, :32].set(c2w).reshape(25 * C1_PAD, LANE)   # (400, 128)
    wmat2 = jnp.zeros((K2, LANE), jnp.float32).at[:25 * C1_PAD].set(w2)
    bc2 = pad_bias(params["conv2_b"])

    # l1: PyTorch flatten is (c, h, w); ours is (h, w, c) with the 32 real channels.
    l1r = params["l1_w"].reshape(120, 32, 25).transpose(2, 1, 0)     # (p=h*5+w, c, o)
    W1 = jnp.zeros((25, C2_KEEP, LANE), jnp.float32)
    W1 = W1.at[:, :, :120].set(l1r).reshape(KFC, LANE)               # (800, 128)
    B1 = pad_bias(params["l1_b"])

    W2 = jnp.zeros((LANE, LANE), jnp.float32).at[:120, :84].set(params["l2_w"].T)
    B2 = pad_bias(params["l2_b"])
    W3 = jnp.zeros((LANE, LANE), jnp.float32).at[:84, :10].set(params["l3_w"].T)
    B3 = pad_bias(params["l3_b"])

    return {"wmat1": wmat1, "bc1": bc1, "wmat2": wmat2, "bc2": bc2,
            "W1": W1, "B1": B1, "W2": W2, "B2": B2, "W3": W3, "B3": B3}


# ----------------------------------------------------------------------------
# Forward pass (3 Pallas kernels total)
# ----------------------------------------------------------------------------
def lenet_forward(prep, x):
    N = x.shape[0]
    x = jnp.transpose(x, (0, 2, 3, 1))                       # NCHW -> NHWC (N,32,32,3)

    # TODO(synk): for very large batches, build the pool-tap im2col patches inside
    # the Pallas kernel from an NHWC activation tile instead of materializing them
    # in HBM via XLA (removes the remaining 10-25x patch data expansion).
    p1 = _pool_tap_patches(x, 5, 5, 14, 14, k_pad=K1)        # (4, N*196, 128)
    a1 = conv_relu_pool(p1, prep["wmat1"], prep["bc1"])      # (N*196, 128), ch 0..11
    a1 = a1.reshape(N, 14, 14, LANE)[..., :C1_PAD]           # keep 16 channels only

    p2 = _pool_tap_patches(a1, 5, 5, 5, 5, k_pad=K2)         # (4, N*25, 512)
    a2 = conv_relu_pool(p2, prep["wmat2"], prep["bc2"])      # (N*25, 128), ch 0..31

    xf = a2.reshape(N, 25, LANE)[:, :, :C2_KEEP].reshape(N, KFC)  # (N, 800) HWC flatten
    return fc_stack(xf, prep["W1"], prep["B1"], prep["W2"], prep["B2"],
                    prep["W3"], prep["B3"], num_classes=10)  # (N, 10)


# ----------------------------------------------------------------------------
# Pure-JAX reference (numerical sanity check against the PyTorch semantics)
# ----------------------------------------------------------------------------
def lenet_forward_ref(params, x):
    def conv(x, w, b):
        y = jax.lax.conv_general_dilated(
            x, w, window_strides=(1, 1), padding="VALID",
            dimension_numbers=("NCHW", "OIHW", "NCHW"))
        return y + b[None, :, None, None]

    def pool(x):
        N, C, H, W = x.shape
        return x.reshape(N, C, H // 2, 2, W // 2, 2).mean(axis=(3, 5))

    x = pool(jax.nn.relu(conv(x, params["conv1_w"], params["conv1_b"])))
    x = pool(jax.nn.relu(conv(x, params["conv2_w"], params["conv2_b"])))
    x = x.reshape(x.shape[0], -1)
    x = jax.nn.relu(x @ params["l1_w"].T + params["l1_b"])
    x = jax.nn.relu(x @ params["l2_w"].T + params["l2_b"])
    return jax.nn.softmax(x @ params["l3_w"].T + params["l3_b"], axis=1)


if __name__ == "__main__":
    key = jax.random.PRNGKey(0)
    k_param, k_x = jax.random.split(key)
    params = init_params(k_param)
    prep = prepare_params(params)
    # Input shape is fixed by the architecture (l1 expects 32*5*5 features -> 3x32x32).
    x = jax.random.normal(k_x, (2, 3, 32, 32), dtype=jnp.float32)

    fwd = jax.jit(lenet_forward)
    out = jax.block_until_ready(fwd(prep, x))
    ref = jax.block_until_ready(lenet_forward_ref(params, x))

    assert out.shape == (2, 10)
    assert jnp.allclose(jnp.sum(out, axis=1), 1.0, atol=1e-4)
    assert jnp.allclose(out, ref, atol=2e-3, rtol=2e-3)
    print("KERNEL_OK")
</pallas_src>

<mosaic_0001>
module attributes {stable_mosaic.version = 11 : i64} {
  func.func @_conv_pool_kernel(%arg0: i32, %arg1: memref<4x128x128xf32, #tpu.memory_space<vmem>>, %arg2: memref<128x128xf32, #tpu.memory_space<vmem>>, %arg3: memref<1x128xf32, #tpu.memory_space<vmem>>, %arg4: memref<128x128xf32, #tpu.memory_space<vmem>>, %arg5: memref<128x128xf32, #tpu.memory_space<vmem>>) attributes {dimension_semantics = [#tpu.dimension_semantics<parallel>], iteration_bounds = array<i64: 4>, scalar_prefetch = 0 : i64, scratch_operands = 1 : i64, tpu.core_type = #tpu.core_type<tc>, window_params = [{transform_indices = @transform_0, window_bounds = array<i64: 4, 128, 128>}, {pipeline_mode = #tpu.pipeline_mode<synchronous>, transform_indices = @transform_1, window_bounds = array<i64: 128, 128>}, {pipeline_mode = #tpu.pipeline_mode<synchronous>, transform_indices = @transform_2, window_bounds = array<i64: 1, 128>}, {transform_indices = @transform_3, window_bounds = array<i64: 128, 128>}]} {
    %c0 = arith.constant 0 : index
    %c0_0 = arith.constant 0 : index
    %0 = vector.load %arg2[%c0, %c0_0] : memref<128x128xf32, #tpu.memory_space<vmem>>, vector<128x128xf32>
    %c0_1 = arith.constant 0 : index
    %c0_2 = arith.constant 0 : index
    %1 = vector.load %arg3[%c0_1, %c0_2] : memref<1x128xf32, #tpu.memory_space<vmem>>, vector<1x128xf32>
    %2 = vector.shape_cast %1 : vector<1x128xf32> to vector<1x128xf32>
    %3 = vector.broadcast %2 : vector<1x128xf32> to vector<128x128xf32>
    %c0_3 = arith.constant 0 : index
    %c0_4 = arith.constant 0 : index
    %c0_5 = arith.constant 0 : index
    %4 = vector.load %arg1[%c0_3, %c0_4, %c0_5] : memref<4x128x128xf32, #tpu.memory_space<vmem>>, vector<1x128x128xf32>
    %5 = vector.shape_cast %4 : vector<1x128x128xf32> to vector<128x128xf32>
    %cst = arith.constant dense<0.000000e+00> : vector<128x128xf32>
    %6 = tpu.matmul %5, %0, %cst {dimension_numbers = #tpu.dot_dimension_numbers<[1], [0], [0], [1], [0, 0, 1, 1], [], []>} : vector<128x128xf32>, vector<128x128xf32>, vector<128x128xf32> -> vector<128x128xf32>
    %7 = arith.addf %6, %3 : vector<128x128xf32>
    %cst_6 = arith.constant 0.000000e+00 : f32
    %8 = vector.broadcast %cst_6 : f32 to vector<128x128xf32>
    %9 = arith.maximumf %7, %8 : vector<128x128xf32>
    %c0_7 = arith.constant 0 : index
    %c0_8 = arith.constant 0 : index
    %10 = vector.load %arg5[%c0_7, %c0_8] : memref<128x128xf32, #tpu.memory_space<vmem>>, vector<128x128xf32>
    tpu.vector_store %arg5[%c0_7, %c0_8], %9 {strides = array<i32>} : memref<128x128xf32, #tpu.memory_space<vmem>>, vector<128x128xf32>,
    %c1 = arith.constant 1 : index
    %c0_9 = arith.constant 0 : index
    %c0_10 = arith.constant 0 : index
    %11 = vector.load %arg1[%c1, %c0_9, %c0_10] : memref<4x128x128xf32, #tpu.memory_space<vmem>>, vector<1x128x128xf32>
    %12 = vector.shape_cast %11 : vector<1x128x128xf32> to vector<128x128xf32>
    %cst_11 = arith.constant dense<0.000000e+00> : vector<128x128xf32>
    %13 = tpu.matmul %12, %0, %cst_11 {dimension_numbers = #tpu.dot_dimension_numbers<[1], [0], [0], [1], [0, 0, 1, 1], [], []>} : vector<128x128xf32>, vector<128x128xf32>, vector<128x128xf32> -> vector<128x128xf32>
    %14 = arith.addf %13, %3 : vector<128x128xf32>
    %cst_12 = arith.constant 0.000000e+00 : f32
    %15 = vector.broadcast %cst_12 : f32 to vector<128x128xf32>
    %16 = arith.maximumf %14, %15 : vector<128x128xf32>
    %c0_13 = arith.constant 0 : index
    %c0_14 = arith.constant 0 : index
    %17 = vector.load %arg5[%c0_13, %c0_14] : memref<128x128xf32, #tpu.memory_space<vmem>>, vector<128x128xf32>
    %18 = arith.addf %17, %16 : vector<128x128xf32>
    %c0_15 = arith.constant 0 : index
    %c0_16 = arith.constant 0 : index
    %19 = vector.load %arg5[%c0_15, %c0_16] : memref<128x128xf32, #tpu.memory_space<vmem>>, vector<128x128xf32>
    tpu.vector_store %arg5[%c0_15, %c0_16], %18 {strides = array<i32>} : memref<128x128xf32, #tpu.memory_space<vmem>>, vector<128x128xf32>,
    %c2 = arith.constant 2 : index
    %c0_17 = arith.constant 0 : index
    %c0_18 = arith.constant 0 : index
    %20 = vector.load %arg1[%c2, %c0_17, %c0_18] : memref<4x128x128xf32, #tpu.memory_space<vmem>>, vector<1x128x128xf32>
    %21 = vector.shape_cast %20 : vector<1x128x128xf32> to vector<128x128xf32>
    %cst_19 = arith.constant dense<0.000000e+00> : vector<128x128xf32>
    %22 = tpu.matmul %21, %0, %cst_19 {dimension_numbers = #tpu.dot_dimension_numbers<[1], [0], [0], [1], [0, 0, 1, 1], [], []>} : vector<128x128xf32>, vector<128x128xf32>, vector<128x128xf32> -> vector<128x128xf32>
    %23 = arith.addf %22, %3 : vector<128x128xf32>
    %cst_20 = arith.constant 0.000000e+00 : f32
    %24 = vector.broadcast %cst_20 : f32 to vector<128x128xf32>
    %25 = arith.maximumf %23, %24 : vector<128x128xf32>
    %c0_21 = arith.constant 0 : index
    %c0_22 = arith.constant 0 : index
    %26 = vector.load %arg5[%c0_21, %c0_22] : memref<128x128xf32, #tpu.memory_space<vmem>>, vector<128x128xf32>
    %27 = arith.addf %26, %25 : vector<128x128xf32>
    %c0_23 = arith.constant 0 : index
    %c0_24 = arith.constant 0 : index
    %28 = vector.load %arg5[%c0_23, %c0_24] : memref<128x128xf32, #tpu.memory_space<vmem>>, vector<128x128xf32>
    tpu.vector_store %arg5[%c0_23, %c0_24], %27 {strides = array<i32>} : memref<128x128xf32, #tpu.memory_space<vmem>>, vector<128x128xf32>,
    %c3 = arith.constant 3 : index
    %c0_25 = arith.constant 0 : index
    %c0_26 = arith.constant 0 : index
    %29 = vector.load %arg1[%c3, %c0_25, %c0_26] : memref<4x128x128xf32, #tpu.memory_space<vmem>>, vector<1x128x128xf32>
    %30 = vector.shape_cast %29 : vector<1x128x128xf32> to vector<128x128xf32>
    %cst_27 = arith.constant dense<0.000000e+00> : vector<128x128xf32>
    %31 = tpu.matmul %30, %0, %cst_27 {dimension_numbers = #tpu.dot_dimension_numbers<[1], [0], [0], [1], [0, 0, 1, 1], [], []>} : vector<128x128xf32>, vector<128x128xf32>, vector<128x128xf32> -> vector<128x128xf32>
    %32 = arith.addf %31, %3 : vector<128x128xf32>
    %cst_28 = arith.constant 0.000000e+00 : f32
    %33 = vector.broadcast %cst_28 : f32 to vector<128x128xf32>
    %34 = arith.maximumf %32, %33 : vector<128x128xf32>
    %c0_29 = arith.constant 0 : index
    %c0_30 = arith.constant 0 : index
    %35 = vector.load %arg5[%c0_29, %c0_30] : memref<128x128xf32, #tpu.memory_space<vmem>>, vector<128x128xf32>
    %36 = arith.addf %35, %34 : vector<128x128xf32>
    %c0_31 = arith.constant 0 : index
    %c0_32 = arith.constant 0 : index
    %37 = vector.load %arg5[%c0_31, %c0_32] : memref<128x128xf32, #tpu.memory_space<vmem>>, vector<128x128xf32>
    tpu.vector_store %arg5[%c0_31, %c0_32], %36 {strides = array<i32>} : memref<128x128xf32, #tpu.memory_space<vmem>>, vector<128x128xf32>,
    %c0_33 = arith.constant 0 : index
    %c0_34 = arith.constant 0 : index
    %38 = vector.load %arg5[%c0_33, %c0_34] : memref<128x128xf32, #tpu.memory_space<vmem>>, vector<128x128xf32>
    %cst_35 = arith.constant 2.500000e-01 : f32
    %39 = vector.broadcast %cst_35 : f32 to vector<128x128xf32>
    %40 = arith.mulf %39, %38 : vector<128x128xf32>
    %c0_36 = arith.constant 0 : index
    %c0_37 = arith.constant 0 : index
    %41 = vector.load %arg4[%c0_36, %c0_37] : memref<128x128xf32, #tpu.memory_space<vmem>>, vector<128x128xf32>
    tpu.vector_store %arg4[%c0_36, %c0_37], %40 {strides = array<i32>} : memref<128x128xf32, #tpu.memory_space<vmem>>, vector<128x128xf32>,
    return
  }
  func.func @transform_0(%arg0: i32) -> (i32, i32, i32) {
    %c0_i32 = arith.constant 0 : i32
    %c0_i32_0 = arith.constant 0 : i32
    %c0_i32_1 = arith.constant 0 : i32
    return %c0_i32, %arg0, %c0_i32_0 : i32, i32, i32
  }
  func.func @transform_1(%arg0: i32) -> (i32, i32) {
    %c0_i32 = arith.constant 0 : i32
    %c0_i32_0 = arith.constant 0 : i32
    %c0_i32_1 = arith.constant 0 : i32
    return %c0_i32, %c0_i32_0 : i32, i32
  }
  func.func @transform_2(%arg0: i32) -> (i32, i32) {
    %c0_i32 = arith.constant 0 : i32
    %c0_i32_0 = arith.constant 0 : i32
    %c0_i32_1 = arith.constant 0 : i32
    return %c0_i32, %c0_i32_0 : i32, i32
  }
  func.func @transform_3(%arg0: i32) -> (i32, i32) {
    %c0_i32 = arith.constant 0 : i32
    %c0_i32_0 = arith.constant 0 : i32
    return %arg0, %c0_i32 : i32, i32
  }
}

module attributes {stable_mosaic.version = 11 : i64} {
  func.func @_conv_pool_kernel(%arg0: i32, %arg1: memref<4x32x512xf32, #tpu.memory_space<vmem>>, %arg2: memref<512x128xf32, #tpu.memory_space<vmem>>, %arg3: memref<1x128xf32, #tpu.memory_space<vmem>>, %arg4: memref<32x128xf32, #tpu.memory_space<vmem>>, %arg5: memref<32x128xf32, #tpu.memory_space<vmem>>) attributes {dimension_semantics = [#tpu.dimension_semantics<parallel>], iteration_bounds = array<i64: 2>, scalar_prefetch = 0 : i64, scratch_operands = 1 : i64, tpu.core_type = #tpu.core_type<tc>, window_params = [{transform_indices = @transform_0, window_bounds = array<i64: 4, 32, 512>}, {pipeline_mode = #tpu.pipeline_mode<synchronous>, transform_indices = @transform_1, window_bounds = array<i64: 512, 128>}, {pipeline_mode = #tpu.pipeline_mode<synchronous>, transform_indices = @transform_2, window_bounds = array<i64: 1, 128>}, {transform_indices = @transform_3, window_bounds = array<i64: 32, 128>}]} {
    %c0 = arith.constant 0 : index
    %c0_0 = arith.constant 0 : index
    %0 = vector.load %arg2[%c0, %c0_0] : memref<512x128xf32, #tpu.memory_space<vmem>>, vector<512x128xf32>
    %c0_1 = arith.constant 0 : index
    %c0_2 = arith.constant 0 : index
    %1 = vector.load %arg3[%c0_1, %c0_2] : memref<1x128xf32, #tpu.memory_space<vmem>>, vector<1x128xf32>
    %2 = vector.shape_cast %1 : vector<1x128xf32> to vector<1x128xf32>
    %3 = vector.broadcast %2 : vector<1x128xf32> to vector<32x128xf32>
    %c0_3 = arith.constant 0 : index
    %c0_4 = arith.constant 0 : index
    %c0_5 = arith.constant 0 : index
    %4 = vector.load %arg1[%c0_3, %c0_4, %c0_5] : memref<4x32x512xf32, #tpu.memory_space<vmem>>, vector<1x32x512xf32>
    %5 = vector.shape_cast %4 : vector<1x32x512xf32> to vector<32x512xf32>
    %cst = arith.constant dense<0.000000e+00> : vector<32x128xf32>
    %6 = tpu.matmul %5, %0, %cst {dimension_numbers = #tpu.dot_dimension_numbers<[1], [0], [0], [1], [0, 0, 1, 1], [], []>} : vector<32x512xf32>, vector<512x128xf32>, vector<32x128xf32> -> vector<32x128xf32>
    %7 = arith.addf %6, %3 : vector<32x128xf32>
    %cst_6 = arith.constant 0.000000e+00 : f32
    %8 = vector.broadcast %cst_6 : f32 to vector<32x128xf32>
    %9 = arith.maximumf %7, %8 : vector<32x128xf32>
    %c0_7 = arith.constant 0 : index
    %c0_8 = arith.constant 0 : index
    %10 = vector.load %arg5[%c0_7, %c0_8] : memref<32x128xf32, #tpu.memory_space<vmem>>, vector<32x128xf32>
    tpu.vector_store %arg5[%c0_7, %c0_8], %9 {strides = array<i32>} : memref<32x128xf32, #tpu.memory_space<vmem>>, vector<32x128xf32>,
    %c1 = arith.constant 1 : index
    %c0_9 = arith.constant 0 : index
    %c0_10 = arith.constant 0 : index
    %11 = vector.load %arg1[%c1, %c0_9, %c0_10] : memref<4x32x512xf32, #tpu.memory_space<vmem>>, vector<1x32x512xf32>
    %12 = vector.shape_cast %11 : vector<1x32x512xf32> to vector<32x512xf32>
    %cst_11 = arith.constant dense<0.000000e+00> : vector<32x128xf32>
    %13 = tpu.matmul %12, %0, %cst_11 {dimension_numbers = #tpu.dot_dimension_numbers<[1], [0], [0], [1], [0, 0, 1, 1], [], []>} : vector<32x512xf32>, vector<512x128xf32>, vector<32x128xf32> -> vector<32x128xf32>
    %14 = arith.addf %13, %3 : vector<32x128xf32>
    %cst_12 = arith.constant 0.000000e+00 : f32
    %15 = vector.broadcast %cst_12 : f32 to vector<32x128xf32>
    %16 = arith.maximumf %14, %15 : vector<32x128xf32>
    %c0_13 = arith.constant 0 : index
    %c0_14 = arith.constant 0 : index
    %17 = vector.load %arg5[%c0_13, %c0_14] : memref<32x128xf32, #tpu.memory_space<vmem>>, vector<32x128xf32>
    %18 = arith.addf %17, %16 : vector<32x128xf32>
    %c0_15 = arith.constant 0 : index
    %c0_16 = arith.constant 0 : index
    %19 = vector.load %arg5[%c0_15, %c0_16] : memref<32x128xf32, #tpu.memory_space<vmem>>, vector<32x128xf32>
    tpu.vector_store %arg5[%c0_15, %c0_16], %18 {strides = array<i32>} : memref<32x128xf32, #tpu.memory_space<vmem>>, vector<32x128xf32>,
    %c2 = arith.constant 2 : index
    %c0_17 = arith.constant 0 : index
    %c0_18 = arith.constant 0 : index
    %20 = vector.load %arg1[%c2, %c0_17, %c0_18] : memref<4x32x512xf32, #tpu.memory_space<vmem>>, vector<1x32x512xf32>
    %21 = vector.shape_cast %20 : vector<1x32x512xf32> to vector<32x512xf32>
    %cst_19 = arith.constant dense<0.000000e+00> : vector<32x128xf32>
    %22 = tpu.matmul %21, %0, %cst_19 {dimension_numbers = #tpu.dot_dimension_numbers<[1], [0], [0], [1], [0, 0, 1, 1], [], []>} : vector<32x512xf32>, vector<512x128xf32>, vector<32x128xf32> -> vector<32x128xf32>
    %23 = arith.addf %22, %3 : vector<32x128xf32>
    %cst_20 = arith.constant 0.000000e+00 : f32
    %24 = vector.broadcast %cst_20 : f32 to vector<32x128xf32>
    %25 = arith.maximumf %23, %24 : vector<32x128xf32>
    %c0_21 = arith.constant 0 : index
    %c0_22 = arith.constant 0 : index
    %26 = vector.load %arg5[%c0_21, %c0_22] : memref<32x128xf32, #tpu.memory_space<vmem>>, vector<32x128xf32>
    %27 = arith.addf %26, %25 : vector<32x128xf32>
    %c0_23 = arith.constant 0 : index
    %c0_24 = arith.constant 0 : index
    %28 = vector.load %arg5[%c0_23, %c0_24] : memref<32x128xf32, #tpu.memory_space<vmem>>, vector<32x128xf32>
    tpu.vector_store %arg5[%c0_23, %c0_24], %27 {strides = array<i32>} : memref<32x128xf32, #tpu.memory_space<vmem>>, vector<32x128xf32>,
    %c3 = arith.constant 3 : index
    %c0_25 = arith.constant 0 : index
    %c0_26 = arith.constant 0 : index
    %29 = vector.load %arg1[%c3, %c0_25, %c0_26] : memref<4x32x512xf32, #tpu.memory_space<vmem>>, vector<1x32x512xf32>
    %30 = vector.shape_cast %29 : vector<1x32x512xf32> to vector<32x512xf32>
    %cst_27 = arith.constant dense<0.000000e+00> : vector<32x128xf32>
    %31 = tpu.matmul %30, %0, %cst_27 {dimension_numbers = #tpu.dot_dimension_numbers<[1], [0], [0], [1], [0, 0, 1, 1], [], []>} : vector<32x512xf32>, vector<512x128xf32>, vector<32x128xf32> -> vector<32x128xf32>
    %32 = arith.addf %31, %3 : vector<32x128xf32>
    %cst_28 = arith.constant 0.000000e+00 : f32
    %33 = vector.broadcast %cst_28 : f32 to vector<32x128xf32>
    %34 = arith.maximumf %32, %33 : vector<32x128xf32>
    %c0_29 = arith.constant 0 : index
    %c0_30 = arith.constant 0 : index
    %35 = vector.load %arg5[%c0_29, %c0_30] : memref<32x128xf32, #tpu.memory_space<vmem>>, vector<32x128xf32>
    %36 = arith.addf %35, %34 : vector<32x128xf32>
    %c0_31 = arith.constant 0 : index
    %c0_32 = arith.constant 0 : index
    %37 = vector.load %arg5[%c0_31, %c0_32] : memref<32x128xf32, #tpu.memory_space<vmem>>, vector<32x128xf32>
    tpu.vector_store %arg5[%c0_31, %c0_32], %36 {strides = array<i32>} : memref<32x128xf32, #tpu.memory_space<vmem>>, vector<32x128xf32>,
    %c0_33 = arith.constant 0 : index
    %c0_34 = arith.constant 0 : index
    %38 = vector.load %arg5[%c0_33, %c0_34] : memref<32x128xf32, #tpu.memory_space<vmem>>, vector<32x128xf32>
    %cst_35 = arith.constant 2.500000e-01 : f32
    %39 = vector.broadcast %cst_35 : f32 to vector<32x128xf32>
    %40 = arith.mulf %39, %38 : vector<32x128xf32>
    %c0_36 = arith.constant 0 : index
    %c0_37 = arith.constant 0 : index
    %41 = vector.load %arg4[%c0_36, %c0_37] : memref<32x128xf32, #tpu.memory_space<vmem>>, vector<32x128xf32>
    tpu.vector_store %arg4[%c0_36, %c0_37], %40 {strides = array<i32>} : memref<32x128xf32, #tpu.memory_space<vmem>>, vector<32x128xf32>,
    return
  }
  func.func @transform_0(%arg0: i32) -> (i32, i32, i32) {
    %c0_i32 = arith.constant 0 : i32
    %c0_i32_0 = arith.constant 0 : i32
    %c0_i32_1 = arith.constant 0 : i32
    return %c0_i32, %arg0, %c0_i32_0 : i32, i32, i32
  }
  func.func @transform_1(%arg0: i32) -> (i32, i32) {
    %c0_i32 = arith.constant 0 : i32
    %c0_i32_0 = arith.constant 0 : i32
    %c0_i32_1 = arith.constant 0 : i32
    return %c0_i32, %c0_i32_0 : i32, i32
  }
  func.func @transform_2(%arg0: i32) -> (i32, i32) {
    %c0_i32 = arith.constant 0 : i32
    %c0_i32_0 = arith.constant 0 : i32
    %c0_i32_1 = arith.constant 0 : i32
    return %c0_i32, %c0_i32_0 : i32, i32
  }
  func.func @transform_3(%arg0: i32) -> (i32, i32) {
    %c0_i32 = arith.constant 0 : i32
    %c0_i32_0 = arith.constant 0 : i32
    return %arg0, %c0_i32 : i32, i32
  }
}

module attributes {stable_mosaic.version = 11 : i64} {
  func.func @_fc_stack_kernel(%arg0: i32, %arg1: memref<8x800xf32, #tpu.memory_space<vmem>>, %arg2: memref<800x128xf32, #tpu.memory_space<vmem>>, %arg3: memref<1x128xf32, #tpu.memory_space<vmem>>, %arg4: memref<128x128xf32, #tpu.memory_space<vmem>>, %arg5: memref<1x128xf32, #tpu.memory_space<vmem>>, %arg6: memref<128x128xf32, #tpu.memory_space<vmem>>, %arg7: memref<1x128xf32, #tpu.memory_space<vmem>>, %arg8: memref<8x128xf32, #tpu.memory_space<vmem>>) attributes {dimension_semantics = [#tpu.dimension_semantics<parallel>], iteration_bounds = array<i64: 1>, scalar_prefetch = 0 : i64, scratch_operands = 0 : i64, tpu.core_type = #tpu.core_type<tc>, window_params = [{transform_indices = @transform_0, window_bounds = array<i64: 8, 800>}, {pipeline_mode = #tpu.pipeline_mode<synchronous>, transform_indices = @transform_1, window_bounds = array<i64: 800, 128>}, {pipeline_mode = #tpu.pipeline_mode<synchronous>, transform_indices = @transform_2, window_bounds = array<i64: 1, 128>}, {pipeline_mode = #tpu.pipeline_mode<synchronous>, transform_indices = @transform_3, window_bounds = array<i64: 128, 128>}, {pipeline_mode = #tpu.pipeline_mode<synchronous>, transform_indices = @transform_4, window_bounds = array<i64: 1, 128>}, {pipeline_mode = #tpu.pipeline_mode<synchronous>, transform_indices = @transform_5, window_bounds = array<i64: 128, 128>}, {pipeline_mode = #tpu.pipeline_mode<synchronous>, transform_indices = @transform_6, window_bounds = array<i64: 1, 128>}, {transform_indices = @transform_7, window_bounds = array<i64: 8, 128>}]} {
    %c0 = arith.constant 0 : index
    %c0_0 = arith.constant 0 : index
    %0 = vector.load %arg1[%c0, %c0_0] : memref<8x800xf32, #tpu.memory_space<vmem>>, vector<8x800xf32>
    %c0_1 = arith.constant 0 : index
    %c0_2 = arith.constant 0 : index
    %1 = vector.load %arg2[%c0_1, %c0_2] : memref<800x128xf32, #tpu.memory_space<vmem>>, vector<800x128xf32>
    %cst = arith.constant dense<0.000000e+00> : vector<8x128xf32>
    %2 = tpu.matmul %0, %1, %cst {dimension_numbers = #tpu.dot_dimension_numbers<[1], [0], [0], [1], [0, 0, 1, 1], [], []>} : vector<8x800xf32>, vector<800x128xf32>, vector<8x128xf32> -> vector<8x128xf32>
    %c0_3 = arith.constant 0 : index
    %c0_4 = arith.constant 0 : index
    %3 = vector.load %arg3[%c0_3, %c0_4] : memref<1x128xf32, #tpu.memory_space<vmem>>, vector<1x128xf32>
    %4 = vector.broadcast %3 : vector<1x128xf32> to vector<8x128xf32>
    %5 = arith.addf %2, %4 : vector<8x128xf32>
    %cst_5 = arith.constant 0.000000e+00 : f32
    %6 = vector.broadcast %cst_5 : f32 to vector<8x128xf32>
    %7 = arith.maximumf %5, %6 : vector<8x128xf32>
    %c0_6 = arith.constant 0 : index
    %c0_7 = arith.constant 0 : index
    %8 = vector.load %arg4[%c0_6, %c0_7] : memref<128x128xf32, #tpu.memory_space<vmem>>, vector<128x128xf32>
    %cst_8 = arith.constant dense<0.000000e+00> : vector<8x128xf32>
    %9 = tpu.matmul %7, %8, %cst_8 {dimension_numbers = #tpu.dot_dimension_numbers<[1], [0], [0], [1], [0, 0, 1, 1], [], []>} : vector<8x128xf32>, vector<128x128xf32>, vector<8x128xf32> -> vector<8x128xf32>
    %c0_9 = arith.constant 0 : index
    %c0_10 = arith.constant 0 : index
    %10 = vector.load %arg5[%c0_9, %c0_10] : memref<1x128xf32, #tpu.memory_space<vmem>>, vector<1x128xf32>
    %11 = vector.broadcast %10 : vector<1x128xf32> to vector<8x128xf32>
    %12 = arith.addf %9, %11 : vector<8x128xf32>
    %cst_11 = arith.constant 0.000000e+00 : f32
    %13 = vector.broadcast %cst_11 : f32 to vector<8x128xf32>
    %14 = arith.maximumf %12, %13 : vector<8x128xf32>
    %c0_12 = arith.constant 0 : index
    %c0_13 = arith.constant 0 : index
    %15 = vector.load %arg6[%c0_12, %c0_13] : memref<128x128xf32, #tpu.memory_space<vmem>>, vector<128x128xf32>
    %cst_14 = arith.constant dense<0.000000e+00> : vector<8x128xf32>
    %16 = tpu.matmul %14, %15, %cst_14 {dimension_numbers = #tpu.dot_dimension_numbers<[1], [0], [0], [1], [0, 0, 1, 1], [], []>} : vector<8x128xf32>, vector<128x128xf32>, vector<8x128xf32> -> vector<8x128xf32>
    %c0_15 = arith.constant 0 : index
    %c0_16 = arith.constant 0 : index
    %17 = vector.load %arg7[%c0_15, %c0_16] : memref<1x128xf32, #tpu.memory_space<vmem>>, vector<1x128xf32>
    %18 = vector.broadcast %17 : vector<1x128xf32> to vector<8x128xf32>
    %19 = arith.addf %16, %18 : vector<8x128xf32>
    %20 = tpu.iota {dimensions = array<i32: 1>} : vector<8x128xi32>
    %c10_i32 = arith.constant 10 : i32
    %21 = vector.broadcast %c10_i32 : i32 to vector<8x128xi32>
    %22 = arith.cmpi slt, %20, %21 : vector<8x128xi32>
    %cst_17 = arith.constant -1.000000e+30 : f32
    %23 = vector.broadcast %cst_17 : f32 to vector<8x128xf32>
    %24 = arith.select %22, %19, %23 : vector<8x128xi1>, vector<8x128xf32>
    %cst_18 = arith.constant dense<0xFF800000> : vector<8xf32>
    %25 = vector.multi_reduction <maximumf>, %24, %cst_18 [1] : vector<8x128xf32> to vector<8xf32>
    %26 = vector.shape_cast %25 : vector<8xf32> to vector<8x1xf32>
    %27 = vector.broadcast %26 : vector<8x1xf32> to vector<8x128xf32>
    %28 = arith.subf %24, %27 : vector<8x128xf32>
    %29 = math.exp %28 : vector<8x128xf32>
    %cst_19 = arith.constant dense<0.000000e+00> : vector<8xf32>
    %30 = vector.multi_reduction <add>, %29, %cst_19 [1] : vector<8x128xf32> to vector<8xf32>
    %31 = vector.shape_cast %30 : vector<8xf32> to vector<8x1xf32>
    %32 = tpu.reciprocal %31 : vector<8x1xf32> -> vector<8x1xf32>
    %33 = vector.broadcast %32 : vector<8x1xf32> to vector<8x128xf32>
    %34 = arith.mulf %29, %33 : vector<8x128xf32>
    %c0_20 = arith.constant 0 : index
    %c0_21 = arith.constant 0 : index
    %35 = vector.load %arg8[%c0_20, %c0_21] : memref<8x128xf32, #tpu.memory_space<vmem>>, vector<8x128xf32>
    tpu.vector_store %arg8[%c0_20, %c0_21], %34 {strides = array<i32>} : memref<8x128xf32, #tpu.memory_space<vmem>>, vector<8x128xf32>,
    return
  }
  func.func @transform_0(%arg0: i32) -> (i32, i32) {
    %c0_i32 = arith.constant 0 : i32
    %c0_i32_0 = arith.constant 0 : i32
    return %arg0, %c0_i32 : i32, i32
  }
  func.func @transform_1(%arg0: i32) -> (i32, i32) {
    %c0_i32 = arith.constant 0 : i32
    %c0_i32_0 = arith.constant 0 : i32
    %c0_i32_1 = arith.constant 0 : i32
    return %c0_i32, %c0_i32_0 : i32, i32
  }
  func.func @transform_2(%arg0: i32) -> (i32, i32) {
    %c0_i32 = arith.constant 0 : i32
    %c0_i32_0 = arith.constant 0 : i32
    %c0_i32_1 = arith.constant 0 : i32
    return %c0_i32, %c0_i32_0 : i32, i32
  }
  func.func @transform_3(%arg0: i32) -> (i32, i32) {
    %c0_i32 = arith.constant 0 : i32
    %c0_i32_0 = arith.constant 0 : i32
    %c0_i32_1 = arith.constant 0 : i32
    return %c0_i32, %c0_i32_0 : i32, i32
  }
  func.func @transform_4(%arg0: i32) -> (i32, i32) {
    %c0_i32 = arith.constant 0 : i32
    %c0_i32_0 = arith.constant 0 : i32
    %c0_i32_1 = arith.constant 0 : i32
    return %c0_i32, %c0_i32_0 : i32, i32
  }
  func.func @transform_5(%arg0: i32) -> (i32, i32) {
    %c0_i32 = arith.constant 0 : i32
    %c0_i32_0 = arith.constant 0 : i32
    %c0_i32_1 = arith.constant 0 : i32
    return %c0_i32, %c0_i32_0 : i32, i32
  }
  func.func @transform_6(%arg0: i32) -> (i32, i32) {
    %c0_i32 = arith.constant 0 : i32
    %c0_i32_0 = arith.constant 0 : i32
    %c0_i32_1 = arith.constant 0 : i32
    return %c0_i32, %c0_i32_0 : i32, i32
  }
  func.func @transform_7(%arg0: i32) -> (i32, i32) {
    %c0_i32 = arith.constant 0 : i32
    %c0_i32_0 = arith.constant 0 : i32
    return %arg0, %c0_i32 : i32, i32
  }
}

</mosaic_0001>

<bundles_post_ra>
// kernel: lenet_forward.3
= control target key start
LH: loop header
LB: loop body
LE: loop exit
PB: predicated region body
PF: predicated region fallthrough
CT: control target
= control target key end

     0   :  { %s1273_s12 = smov 0   ;;  %s1275_s13 = smov 0   ;;  %s1658_s0 = inlined_call_operand.vmem [shape: f32[4,512,128], index: 0, kind: input, shape index: {}]   ;;  %s1659_s1 = inlined_call_operand.vmem [shape: f32[128,128], index: 1, kind: input, shape index: {}]   ;;  %s1660_s2 = inlined_call_operand.vmem [shape: f32[1,128], index: 2, kind: input, shape index: {}]   ;;  %s1661_s3 = inlined_call_operand.vmem [shape: f32[512,128], index: 3, kind: output, shape index: {}]  }
   0x1   :  { %s1277_s14 = smov 0  }
   0x2 LB: > { %s1142_s15 = sadd.s32 4294967295, %s1251_s14   ;;  %s1290_s16 = sadd.s32 1, %s1251_s14   ;;  %s1251_s14 = sphi %s1277_s14, %s1664_s14   ;;  %s1247_s13 = sphi %s1275_s13, %s1663_s13   ;;  %s1243_s12 = sphi %s1273_s12, %s1662_s12  }
   0x3   : > { %s17_s17 = ssub.s32 %s1251_s14, %s1290_s16  ;;  %s20_s18 = sadd.s32 1, %s1247_s13 }
   0x4   : > { %p18_p0 = scmp.eq.s32.totalorder %s17_s17, 0  ;;  %p27_p1 = scmp.ne.s32.totalorder %s1247_s13, %s1243_s12 }
   0x5   : > { %p28_p2 = scmp.eq.s32.totalorder %s1251_s14, 0  ;;  %p1145_p4 = scmp.ge.s32.totalorder %s1251_s14, 4 }
   0x6   : > { %s1299_s19 = scalar_select %p18_p0, %s1247_s13, %s20_s18  }
   0x7   : > { %p29_p3 = por %p28_p2, %p27_p1  ;;  %127 = sbr.rel (%p1145_p4) target bundleno = 80 (0x50), region = 24 }
   0xc   : > { %130 = sbr.rel (!%p29_p3) target bundleno = 80 (0x50), region = 28  ;;  %s132_s20 = sand.u32 (%p29_p3), 1, %s1247_s13  }
   0xd   : > { %s1203_s21 = sshll.u32 (%p29_p3), %s1251_s14, 7  ;;  %s1146_s22 = sshll.u32 (%p29_p3), %s132_s20, 9 }
   0xe   : > { %s1307_s25 = scalar_lea.vmem (%p29_p3), %s1658_s0, %s1203_s21  ;;  %s1312_s26 = scalar_lea.vmem (%p29_p3), [#allocation3], %s1146_s22 }
   0xf   : > { %v292_v0 = vld [vmem:[%s1307_s25] sm:$0xff] (%p29_p3)  ;;  %v294_v1 = vld [vmem:[%s1307_s25 + $0x8] sm:$0xff] (%p29_p3)  ;;  %v296_v2 = vld [vmem:[%s1307_s25 + $0x10] sm:$0xff] (%p29_p3) }
  0x10   : > { %293 = vst [vmem:[%s1312_s26] sm:$0xff] (%p29_p3), %v292_v0  ;;  %v298_v3 = vld [vmem:[%s1307_s25 + $0x18] sm:$0xff] (%p29_p3)  ;;  %v300_v4 = vld [vmem:[%s1307_s25 + $0x20] sm:$0xff] (%p29_p3)  ;;  %v302_v5 = vld [vmem:[%s1307_s25 + $0x28] sm:$0xff] (%p29_p3) }
  0x11   : > { %295 = vst [vmem:[%s1312_s26 + $0x8] sm:$0xff] %v294_v1  ;;  %v304_v6 = vld [vmem:[%s1307_s25 + $0x30] sm:$0xff]  ;;  %v306_v7 = vld [vmem:[%s1307_s25 + $0x38] sm:$0xff]  ;;  %v308_v8 = vld [vmem:[%s1307_s25 + $0x40] sm:$0xff] }
  0x12   : > { %297 = vst [vmem:[%s1312_s26 + $0x10] sm:$0xff] %v296_v2  ;;  %v310_v9 = vld [vmem:[%s1307_s25 + $0x48] sm:$0xff]  ;;  %v312_v10 = vld [vmem:[%s1307_s25 + $0x50] sm:$0xff]  ;;  %v314_v11 = vld [vmem:[%s1307_s25 + $0x58] sm:$0xff] }
  0x13   : > { %299 = vst [vmem:[%s1312_s26 + $0x18] sm:$0xff] %v298_v3  ;;  %v316_v12 = vld [vmem:[%s1307_s25 + $0x60] sm:$0xff]  ;;  %v318_v13 = vld [vmem:[%s1307_s25 + $0x68] sm:$0xff]  ;;  %v320_v14 = vld [vmem:[%s1307_s25 + $0x70] sm:$0xff] }
  0x14   : > { %301 = vst [vmem:[%s1312_s26 + $0x20] sm:$0xff] %v300_v4  ;;  %v322_v15 = vld [vmem:[%s1307_s25 + $0x78] sm:$0xff]  ;;  %v324_v16 = vld [vmem:[%s1307_s25 + $0x200] sm:$0xff]  ;;  %v326_v17 = vld [vmem:[%s1307_s25 + $0x208] sm:$0xff] }
  0x15   : > { %303 = vst [vmem:[%s1312_s26 + $0x28] sm:$0xff] %v302_v5  ;;  %v328_v18 = vld [vmem:[%s1307_s25 + $0x210] sm:$0xff]  ;;  %v330_v19 = vld [vmem:[%s1307_s25 + $0x218] sm:$0xff]  ;;  %v332_v20 = vld [vmem:[%s1307_s25 + $0x220] sm:$0xff] }
  0x16   : > { %305 = vst [vmem:[%s1312_s26 + $0x30] sm:$0xff] %v304_v6  ;;  %v334_v21 = vld [vmem:[%s1307_s25 + $0x228] sm:$0xff]  ;;  %v336_v22 = vld [vmem:[%s1307_s25 + $0x230] sm:$0xff]  ;;  %v338_v23 = vld [vmem:[%s1307_s25 + $0x238] sm:$0xff] }
  0x17   : > { %307 = vst [vmem:[%s1312_s26 + $0x38] sm:$0xff] %v306_v7  ;;  %v340_v24 = vld [vmem:[%s1307_s25 + $0x240] sm:$0xff]  ;;  %v342_v25 = vld [vmem:[%s1307_s25 + $0x248] sm:$0xff]  ;;  %v344_v26 = vld [vmem:[%s1307_s25 + $0x250] sm:$0xff] }
  0x18   : > { %309 = vst [vmem:[%s1312_s26 + $0x40] sm:$0xff] %v308_v8  ;;  %v346_v27 = vld [vmem:[%s1307_s25 + $0x258] sm:$0xff]  ;;  %v348_v28 = vld [vmem:[%s1307_s25 + $0x260] sm:$0xff]  ;;  %v350_v29 = vld [vmem:[%s1307_s25 + $0x268] sm:$0xff] }
  0x19   : > { %311 = vst [vmem:[%s1312_s26 + $0x48] sm:$0xff] %v310_v9  ;;  %v352_v30 = vld [vmem:[%s1307_s25 + $0x270] sm:$0xff]  ;;  %v354_v31 = vld [vmem:[%s1307_s25 + $0x278] sm:$0xff]  ;;  %v356_v32 = vld [vmem:[%s1307_s25 + $0x400] sm:$0xff] }
  0x1a   : > { %313 = vst [vmem:[%s1312_s26 + $0x50] sm:$0xff] %v312_v10  ;;  %v358_v33 = vld [vmem:[%s1307_s25 + $0x408] sm:$0xff]  ;;  %v360_v34 = vld [vmem:[%s1307_s25 + $0x410] sm:$0xff]  ;;  %v362_v35 = vld [vmem:[%s1307_s25 + $0x418] sm:$0xff] }
  0x1b   : > { %315 = vst [vmem:[%s1312_s26 + $0x58] sm:$0xff] %v314_v11  ;;  %v364_v36 = vld [vmem:[%s1307_s25 + $0x420] sm:$0xff]  ;;  %v366_v37 = vld [vmem:[%s1307_s25 + $0x428] sm:$0xff]  ;;  %v368_v38 = vld [vmem:[%s1307_s25 + $0x430] sm:$0xff] }
  0x1c   : > { %317 = vst [vmem:[%s1312_s26 + $0x60] sm:$0xff] %v316_v12  ;;  %v370_v39 = vld [vmem:[%s1307_s25 + $0x438] sm:$0xff]  ;;  %v372_v40 = vld [vmem:[%s1307_s25 + $0x440] sm:$0xff]  ;;  %v374_v41 = vld [vmem:[%s1307_s25 + $0x448] sm:$0xff] }
  0x1d   : > { %319 = vst [vmem:[%s1312_s26 + $0x68] sm:$0xff] %v318_v13  ;;  %v376_v42 = vld [vmem:[%s1307_s25 + $0x450] sm:$0xff]  ;;  %v378_v43 = vld [vmem:[%s1307_s25 + $0x458] sm:$0xff]  ;;  %v380_v44 = vld [vmem:[%s1307_s25 + $0x460] sm:$0xff] }
  0x1e   : > { %321 = vst [vmem:[%s1312_s26 + $0x70] sm:$0xff] %v320_v14  ;;  %v382_v45 = vld [vmem:[%s1307_s25 + $0x468] sm:$0xff]  ;;  %v384_v46 = vld [vmem:[%s1307_s25 + $0x470] sm:$0xff]  ;;  %v386_v47 = vld [vmem:[%s1307_s25 + $0x478] sm:$0xff] }
  0x1f   : > { %323 = vst [vmem:[%s1312_s26 + $0x78] sm:$0xff] %v322_v15  ;;  %v388_v48 = vld [vmem:[%s1307_s25 + $0x600] sm:$0xff]  ;;  %v390_v49 = vld [vmem:[%s1307_s25 + $0x608] sm:$0xff]  ;;  %v392_v50 = vld [vmem:[%s1307_s25 + $0x610] sm:$0xff] }
  0x20   : > { %325 = vst [vmem:[%s1312_s26 + $0x80] sm:$0xff] %v324_v16  ;;  %v394_v51 = vld [vmem:[%s1307_s25 + $0x618] sm:$0xff]  ;;  %v396_v52 = vld [vmem:[%s1307_s25 + $0x620] sm:$0xff]  ;;  %v398_v53 = vld [vmem:[%s1307_s25 + $0x628] sm:$0xff] }
  0x21   : > { %327 = vst [vmem:[%s1312_s26 + $0x88] sm:$0xff] %v326_v17  ;;  %v400_v54 = vld [vmem:[%s1307_s25 + $0x630] sm:$0xff]  ;;  %v402_v55 = vld [vmem:[%s1307_s25 + $0x638] sm:$0xff]  ;;  %v404_v56 = vld [vmem:[%s1307_s25 + $0x640] sm:$0xff] }
  0x22   : > { %329 = vst [vmem:[%s1312_s26 + $0x90] sm:$0xff] %v328_v18  ;;  %v406_v57 = vld [vmem:[%s1307_s25 + $0x648] sm:$0xff]  ;;  %v408_v58 = vld [vmem:[%s1307_s25 + $0x650] sm:$0xff]  ;;  %v410_v59 = vld [vmem:[%s1307_s25 + $0x658] sm:$0xff] }
  0x23   : > { %331 = vst [vmem:[%s1312_s26 + $0x98] sm:$0xff] %v330_v19  ;;  %v412_v60 = vld [vmem:[%s1307_s25 + $0x660] sm:$0xff]  ;;  %v414_v61 = vld [vmem:[%s1307_s25 + $0x668] sm:$0xff]  ;;  %v416_v62 = vld [vmem:[%s1307_s25 + $0x670] sm:$0xff] }
  0x24   : > { %333 = vst [vmem:[%s1312_s26 + $0xa0] sm:$0xff] %v332_v20  ;;  %v418_v63 = vld [vmem:[%s1307_s25 + $0x678] sm:$0xff] }
  0x25   : > { %335 = vst [vmem:[%s1312_s26 + $0xa8] sm:$0xff] %v334_v21 }
  0x26   : > { %337 = vst [vmem:[%s1312_s26 + $0xb0] sm:$0xff] %v336_v22 }
  0x27   : > { %339 = vst [vmem:[%s1312_s26 + $0xb8] sm:$0xff] %v338_v23 }
  0x28   : > { %341 = vst [vmem:[%s1312_s26 + $0xc0] sm:$0xff] %v340_v24 }
  0x29   : > { %343 = vst [vmem:[%s1312_s26 + $0xc8] sm:$0xff] %v342_v25 }
  0x2a   : > { %345 = vst [vmem:[%s1312_s26 + $0xd0] sm:$0xff] %v344_v26 }
  0x2b   : > { %347 = vst [vmem:[%s1312_s26 + $0xd8] sm:$0xff] %v346_v27 }
  0x2c   : > { %349 = vst [vmem:[%s1312_s26 + $0xe0] sm:$0xff] %v348_v28 }
  0x2d   : > { %351 = vst [vmem:[%s1312_s26 + $0xe8] sm:$0xff] %v350_v29 }
  0x2e   : > { %353 = vst [vmem:[%s1312_s26 + $0xf0] sm:$0xff] %v352_v30 }
  0x2f   : > { %355 = vst [vmem:[%s1312_s26 + $0xf8] sm:$0xff] %v354_v31 }
  0x30   : > { %357 = vst [vmem:[%s1312_s26 + $0x100] sm:$0xff] %v356_v32 }
  0x31   : > { %359 = vst [vmem:[%s1312_s26 + $0x108] sm:$0xff] %v358_v33 }
  0x32   : > { %361 = vst [vmem:[%s1312_s26 + $0x110] sm:$0xff] %v360_v34 }
  0x33   : > { %363 = vst [vmem:[%s1312_s26 + $0x118] sm:$0xff] %v362_v35 }
  0x34   : > { %365 = vst [vmem:[%s1312_s26 + $0x120] sm:$0xff] %v364_v36 }
  0x35   : > { %367 = vst [vmem:[%s1312_s26 + $0x128] sm:$0xff] %v366_v37 }
  0x36   : > { %369 = vst [vmem:[%s1312_s26 + $0x130] sm:$0xff] %v368_v38 }
  0x37   : > { %371 = vst [vmem:[%s1312_s26 + $0x138] sm:$0xff] %v370_v39 }
  0x38   : > { %373 = vst [vmem:[%s1312_s26 + $0x140] sm:$0xff] %v372_v40 }
  0x39   : > { %375 = vst [vmem:[%s1312_s26 + $0x148] sm:$0xff] %v374_v41 }
  0x3a   : > { %377 = vst [vmem:[%s1312_s26 + $0x150] sm:$0xff] %v376_v42 }
  0x3b   : > { %379 = vst [vmem:[%s1312_s26 + $0x158] sm:$0xff] %v378_v43 }
  0x3c   : > { %381 = vst [vmem:[%s1312_s26 + $0x160] sm:$0xff] %v380_v44 }
  0x3d   : > { %383 = vst [vmem:[%s1312_s26 + $0x168] sm:$0xff] %v382_v45 }
  0x3e   : > { %385 = vst [vmem:[%s1312_s26 + $0x170] sm:$0xff] %v384_v46 }
  0x3f   : > { %387 = vst [vmem:[%s1312_s26 + $0x178] sm:$0xff] %v386_v47 }
  0x40   : > { %389 = vst [vmem:[%s1312_s26 + $0x180] sm:$0xff] %v388_v48 }
  0x41   : > { %391 = vst [vmem:[%s1312_s26 + $0x188] sm:$0xff] %v390_v49 }
  0x42   : > { %393 = vst [vmem:[%s1312_s26 + $0x190] sm:$0xff] %v392_v50 }
  0x43   : > { %395 = vst [vmem:[%s1312_s26 + $0x198] sm:$0xff] %v394_v51 }
  0x44   : > { %397 = vst [vmem:[%s1312_s26 + $0x1a0] sm:$0xff] %v396_v52 }
  0x45   : > { %399 = vst [vmem:[%s1312_s26 + $0x1a8] sm:$0xff] %v398_v53 }
  0x46   : > { %401 = vst [vmem:[%s1312_s26 + $0x1b0] sm:$0xff] %v400_v54 }
  0x47   : > { %403 = vst [vmem:[%s1312_s26 + $0x1b8] sm:$0xff] %v402_v55 }
  0x48   : > { %405 = vst [vmem:[%s1312_s26 + $0x1c0] sm:$0xff] %v404_v56 }
  0x49   : > { %407 = vst [vmem:[%s1312_s26 + $0x1c8] sm:$0xff] %v406_v57 }
  0x4a   : > { %409 = vst [vmem:[%s1312_s26 + $0x1d0] sm:$0xff] %v408_v58 }
  0x4b   : > { %411 = vst [vmem:[%s1312_s26 + $0x1d8] sm:$0xff] %v410_v59 }
  0x4c   : > { %413 = vst [vmem:[%s1312_s26 + $0x1e0] sm:$0xff] %v412_v60 }
  0x4d   : > { %415 = vst [vmem:[%s1312_s26 + $0x1e8] sm:$0xff] %v414_v61 }
  0x4e   : > { %417 = vst [vmem:[%s1312_s26 + $0x1f0] sm:$0xff] %v416_v62 }
  0x4f   : > { %419 = vst [vmem:[%s1312_s26 + $0x1f8] sm:$0xff] %v418_v63 }
  0x50 PF: > { %p1149_p5 = scmp.ge.s32.totalorder %s1251_s14, 1  ;;  %p424_p6 = scmp.lt.s32.totalorder %s1251_s14, 5 }
  0x52   : > { %p425_p7 = pnand %p1149_p5, %p424_p6 }
  0x53   : > { %s431_s30 = sand.u32 (!%p425_p7), 1, %s1243_s12   ;;  %s1151_s21 = sshll.u32 (!%p425_p7), %s1142_s15, 4 }
  0x54   : > { %428 = sbr.rel (%p425_p7) target bundleno = 384 (0x180), region = 66  ;;  %s1150_s6 = sshll.u32 (!%p425_p7), %s431_s30, 9 }
  0x55   : > { %s1490_s17 = scalar_lea.vmem (!%p425_p7), [#allocation3], %s1150_s6  ;;  %p456_p8 = scmp.lt.s32.totalorder (!%p425_p7), %s1151_s21, 63 }
  0x59   : > { %v476_v0 = vld [vmem:[%s1659_s1 + $0x78] sm:$0xff]  ;;  %v475_v1 = vld [vmem:[%s1659_s1 + $0x70] sm:$0xff]  ;;  %v474_v2 = vld [vmem:[%s1659_s1 + $0x68] sm:$0xff]  ;;  %s1666_s21 = smov (!%p456_p8, %s1151_s21), 63 }
  0x5a   : > { %757 = vmatpush.msra.mxu2 %v476_v0  ;;  %903 = vmatpush.msra.mxu3 %v476_v0  ;;  %v473_v3 = vld [vmem:[%s1659_s1 + $0x60] sm:$0xff]  ;;  %v472_v4 = vld [vmem:[%s1659_s1 + $0x58] sm:$0xff]  ;;  %v471_v5 = vld [vmem:[%s1659_s1 + $0x50] sm:$0xff]  ;;  %s1152_s14 = sshll.u32 %s1666_s21, 3 }
  0x5b   : > { %497 = vmatpush.msra.mxu0 %v476_v0  ;;  %611 = vmatpush.msra.mxu1 %v476_v0  ;;  %v470_v6 = vld [vmem:[%s1659_s1 + $0x48] sm:$0xff]  ;;  %v469_v7 = vld [vmem:[%s1659_s1 + $0x40] sm:$0xff]  ;;  %v468_v8 = vld [vmem:[%s1659_s1 + $0x38] sm:$0xff]  ;;  %s1572_s23 = scalar_lea.vmem %s1661_s3, %s1152_s14 }
  0x5c   : > { %758 = vmatpush.msra.mxu2 %v475_v1  ;;  %904 = vmatpush.msra.mxu3 %v475_v1  ;;  %v467_v9 = vld [vmem:[%s1659_s1 + $0x30] sm:$0xff]  ;;  %v466_v10 = vld [vmem:[%s1659_s1 + $0x28] sm:$0xff]  ;;  %v465_v11 = vld [vmem:[%s1659_s1 + $0x20] sm:$0xff] }
  0x5d   : > { %498 = vmatpush.msra.mxu0 %v475_v1  ;;  %612 = vmatpush.msra.mxu1 %v475_v1  ;;  %v464_v12 = vld [vmem:[%s1659_s1 + $0x18] sm:$0xff]  ;;  %v463_v13 = vld [vmem:[%s1659_s1 + $0x10] sm:$0xff]  ;;  %v462_v14 = vld [vmem:[%s1659_s1 + $0x8] sm:$0xff] }
  0x5e   : > { %759 = vmatpush.msra.mxu2 %v474_v2  ;;  %905 = vmatpush.msra.mxu3 %v474_v2  ;;  %v461_v15 = vld [vmem:[%s1659_s1] sm:$0xff]  ;;  %v1170_v20 = vld [vmem:[%s1490_s17 + $0x108] sm:$0xff]  ;;  %v1171_v24 = vld [vmem:[%s1490_s17 + $0x110] sm:$0xff] }
  0x5f   : > { %499 = vmatpush.msra.mxu0 %v474_v2  ;;  %613 = vmatpush.msra.mxu1 %v474_v2  ;;  %v1169_v16 = vld [vmem:[%s1490_s17 + $0x100] sm:$0xff]  ;;  %v1186_v21 = vld [vmem:[%s1490_s17 + $0x188] sm:$0xff]  ;;  %v1187_v25 = vld [vmem:[%s1490_s17 + $0x190] sm:$0xff] }
  0x60   : > { %760 = vmatpush.msra.mxu2 %v473_v3  ;;  %906 = vmatpush.msra.mxu3 %v473_v3  ;;  %v1185_v17 = vld [vmem:[%s1490_s17 + $0x180] sm:$0xff]  ;;  %v482_v22 = vld [vmem:[%s1490_s17 + $0x8] sm:$0xff]  ;;  %v483_v26 = vld [vmem:[%s1490_s17 + $0x10] sm:$0xff] }
  0x61   : > { %500 = vmatpush.msra.mxu0 %v473_v3  ;;  %614 = vmatpush.msra.mxu1 %v473_v3  ;;  %v481_v18 = vld [vmem:[%s1490_s17] sm:$0xff]  ;;  %v1154_v23 = vld [vmem:[%s1490_s17 + $0x88] sm:$0xff]  ;;  %v1155_v27 = vld [vmem:[%s1490_s17 + $0x90] sm:$0xff] }
  0x62   : > { %761 = vmatpush.msra.mxu2 %v472_v4  ;;  %907 = vmatpush.msra.mxu3 %v472_v4  ;;  %v1153_v19 = vld [vmem:[%s1490_s17 + $0x80] sm:$0xff]  ;;  %v1172_v28 = vld [vmem:[%s1490_s17 + $0x118] sm:$0xff]  ;;  %v1174_v36 = vld [vmem:[%s1490_s17 + $0x128] sm:$0xff] }
  0x63   : > { %501 = vmatpush.msra.mxu0 %v472_v4  ;;  %615 = vmatpush.msra.mxu1 %v472_v4  ;;  %v1188_v29 = vld [vmem:[%s1490_s17 + $0x198] sm:$0xff]  ;;  %v1173_v32 = vld [vmem:[%s1490_s17 + $0x120] sm:$0xff]  ;;  %v1190_v37 = vld [vmem:[%s1490_s17 + $0x1a8] sm:$0xff] }
  0x64   : > { %762 = vmatpush.msra.mxu2 %v471_v5  ;;  %908 = vmatpush.msra.mxu3 %v471_v5  ;;  %v484_v30 = vld [vmem:[%s1490_s17 + $0x18] sm:$0xff]  ;;  %v1189_v33 = vld [vmem:[%s1490_s17 + $0x1a0] sm:$0xff]  ;;  %v486_v38 = vld [vmem:[%s1490_s17 + $0x28] sm:$0xff] }
  0x65   : > { %502 = vmatpush.msra.mxu0 %v471_v5  ;;  %616 = vmatpush.msra.mxu1 %v471_v5  ;;  %v1156_v31 = vld [vmem:[%s1490_s17 + $0x98] sm:$0xff]  ;;  %v485_v34 = vld [vmem:[%s1490_s17 + $0x20] sm:$0xff]  ;;  %v1158_v39 = vld [vmem:[%s1490_s17 + $0xa8] sm:$0xff] }
  0x66   : > { %763 = vmatpush.msra.mxu2 %v470_v6  ;;  %909 = vmatpush.msra.mxu3 %v470_v6  ;;  %v1157_v35 = vld [vmem:[%s1490_s17 + $0xa0] sm:$0xff]  ;;  %v1175_v40 = vld [vmem:[%s1490_s17 + $0x130] sm:$0xff]  ;;  %v1176_v44 = vld [vmem:[%s1490_s17 + $0x138] sm:$0xff] }
  0x67   : > { %503 = vmatpush.msra.mxu0 %v470_v6  ;;  %617 = vmatpush.msra.mxu1 %v470_v6  ;;  %v1191_v41 = vld [vmem:[%s1490_s17 + $0x1b0] sm:$0xff]  ;;  %v1192_v45 = vld [vmem:[%s1490_s17 + $0x1b8] sm:$0xff]  ;;  %v1177_v48 = vld [vmem:[%s1490_s17 + $0x140] sm:$0xff] }
  0x68   : > { %764 = vmatpush.msra.mxu2 %v469_v7  ;;  %910 = vmatpush.msra.mxu3 %v469_v7  ;;  %v487_v42 = vld [vmem:[%s1490_s17 + $0x30] sm:$0xff]  ;;  %v488_v46 = vld [vmem:[%s1490_s17 + $0x38] sm:$0xff]  ;;  %v1193_v49 = vld [vmem:[%s1490_s17 + $0x1c0] sm:$0xff] }
  0x69   : > { %504 = vmatpush.msra.mxu0 %v469_v7  ;;  %618 = vmatpush.msra.mxu1 %v469_v7  ;;  %v1159_v43 = vld [vmem:[%s1490_s17 + $0xb0] sm:$0xff]  ;;  %v1160_v47 = vld [vmem:[%s1490_s17 + $0xb8] sm:$0xff]  ;;  %v489_v50 = vld [vmem:[%s1490_s17 + $0x40] sm:$0xff] }
  0x6a   : > { %765 = vmatpush.msra.mxu2 %v468_v8  ;;  %911 = vmatpush.msra.mxu3 %v468_v8  ;;  %v1161_v51 = vld [vmem:[%s1490_s17 + $0xc0] sm:$0xff]  ;;  %v1178_v52 = vld [vmem:[%s1490_s17 + $0x148] sm:$0xff]  ;;  %v1179_v56 = vld [vmem:[%s1490_s17 + $0x150] sm:$0xff] }
  0x6b   : > { %505 = vmatpush.msra.mxu0 %v468_v8  ;;  %619 = vmatpush.msra.mxu1 %v468_v8  ;;  %v1194_v53 = vld [vmem:[%s1490_s17 + $0x1c8] sm:$0xff]  ;;  %v1195_v57 = vld [vmem:[%s1490_s17 + $0x1d0] sm:$0xff]  ;;  %v1180_v60 = vld [vmem:[%s1490_s17 + $0x158] sm:$0xff] }
  0x6c   : > { %766 = vmatpush.msra.mxu2 %v467_v9  ;;  %912 = vmatpush.msra.mxu3 %v467_v9  ;;  %v490_v54 = vld [vmem:[%s1490_s17 + $0x48] sm:$0xff]  ;;  %v491_v58 = vld [vmem:[%s1490_s17 + $0x50] sm:$0xff]  ;;  %v1196_v61 = vld [vmem:[%s1490_s17 + $0x1d8] sm:$0xff] }
  0x6d   : > { %506 = vmatpush.msra.mxu0 %v467_v9  ;;  %620 = vmatpush.msra.mxu1 %v467_v9  ;;  %v1162_v55 = vld [vmem:[%s1490_s17 + $0xc8] sm:$0xff]  ;;  %v1163_v59 = vld [vmem:[%s1490_s17 + $0xd0] sm:$0xff]  ;;  %v492_v62 = vld [vmem:[%s1490_s17 + $0x58] sm:$0xff] }
  0x6e   : > { %767 = vmatpush.msra.mxu2 %v466_v10  ;;  %913 = vmatpush.msra.mxu3 %v466_v10  ;;  %v1164_v63 = vld [vmem:[%s1490_s17 + $0xd8] sm:$0xff]  ;;  %v1181_v0 = vld [vmem:[%s1490_s17 + $0x160] sm:$0xff]  ;;  %v1182_v4 = vld [vmem:[%s1490_s17 + $0x168] sm:$0xff] }
  0x6f   : > { %507 = vmatpush.msra.mxu0 %v466_v10  ;;  %621 = vmatpush.msra.mxu1 %v466_v10  ;;  %v1197_v1 = vld [vmem:[%s1490_s17 + $0x1e0] sm:$0xff]  ;;  %v1198_v5 = vld [vmem:[%s1490_s17 + $0x1e8] sm:$0xff]  ;;  %v1183_v8 = vld [vmem:[%s1490_s17 + $0x170] sm:$0xff] }
  0x70   : > { %768 = vmatpush.msra.mxu2 %v465_v11  ;;  %914 = vmatpush.msra.mxu3 %v465_v11  ;;  %v493_v2 = vld [vmem:[%s1490_s17 + $0x60] sm:$0xff]  ;;  %v494_v6 = vld [vmem:[%s1490_s17 + $0x68] sm:$0xff]  ;;  %v1199_v9 = vld [vmem:[%s1490_s17 + $0x1f0] sm:$0xff] }
  0x71   : > { %508 = vmatpush.msra.mxu0 %v465_v11  ;;  %622 = vmatpush.msra.mxu1 %v465_v11  ;;  %v1165_v3 = vld [vmem:[%s1490_s17 + $0xe0] sm:$0xff]  ;;  %v1166_v7 = vld [vmem:[%s1490_s17 + $0xe8] sm:$0xff]  ;;  %v495_v10 = vld [vmem:[%s1490_s17 + $0x70] sm:$0xff] }
  0x72   : > { %769 = vmatpush.msra.mxu2 %v464_v12  ;;  %915 = vmatpush.msra.mxu3 %v464_v12  ;;  %v1167_v11 = vld [vmem:[%s1490_s17 + $0xf0] sm:$0xff] }
  0x73   : > { %509 = vmatpush.msra.mxu0 %v464_v12  ;;  %623 = vmatpush.msra.mxu1 %v464_v12  ;;  %v1184_v12 = vld [vmem:[%s1490_s17 + $0x178] sm:$0xff] }
  0x74   : > { %770 = vmatpush.msra.mxu2 %v463_v13  ;;  %916 = vmatpush.msra.mxu3 %v463_v13 }
  0x75   : > { %510 = vmatpush.msra.mxu0 %v463_v13  ;;  %624 = vmatpush.msra.mxu1 %v463_v13  ;;  %v1200_v13 = vld [vmem:[%s1490_s17 + $0x1f8] sm:$0xff] }
  0x76   : > { %771 = vmatpush.msra.mxu2 %v462_v14  ;;  %917 = vmatpush.msra.mxu3 %v462_v14 }
  0x77   : > { %511 = vmatpush.msra.mxu0 %v462_v14  ;;  %625 = vmatpush.msra.mxu1 %v462_v14  ;;  %v496_v14 = vld [vmem:[%s1490_s17 + $0x78] sm:$0xff] }
  0x78   : > { %772 = vmatpush.msra.mxu2 %v461_v15  ;;  %918 = vmatpush.msra.mxu3 %v461_v15 }
  0x79   : > { %773 = vmatmul.f32.vlgmr.msra.gmra.mxu2 %v1169_v16  ;;  %919 = vmatmul.f32.vlgmr.msra.gmra.mxu3 %v1185_v17  ;;  %v1559_v16 = vld [vmem:[%s1660_s2] ss:$0 sm:$0xff] }
  0x7a   : > { %512 = vmatpush.msra.mxu0 %v461_v15  ;;  %626 = vmatpush.msra.mxu1 %v461_v15  ;;  %v1168_v15 = vld [vmem:[%s1490_s17 + $0xf8] sm:$0xff] }
  0x7b   : > { %513 = vmatmul.f32.vlgmr.msra.gmra.mxu0 %v481_v18  ;;  %627 = vmatmul.f32.vlgmr.msra.gmra.mxu1 %v1153_v19 }
  0x81   : > { %776 = vmatmul.f32.gmra.mxu2 %v1170_v20  ;;  %922 = vmatmul.f32.gmra.mxu3 %v1186_v21 }
  0x83   : > { %516 = vmatmul.f32.gmra.mxu0 %v482_v22  ;;  %630 = vmatmul.f32.gmra.mxu1 %v1154_v23 }
  0x89   : > { %779 = vmatmul.f32.gmra.mxu2 %v1171_v24  ;;  %925 = vmatmul.f32.gmra.mxu3 %v1187_v25 }
  0x8b   : > { %519 = vmatmul.f32.gmra.mxu0 %v483_v26  ;;  %633 = vmatmul.f32.gmra.mxu1 %v1155_v27 }
  0x91   : > { %782 = vmatmul.f32.gmra.mxu2 %v1172_v28  ;;  %928 = vmatmul.f32.gmra.mxu3 %v1188_v29 }
  0x93   : > { %522 = vmatmul.f32.gmra.mxu0 %v484_v30  ;;  %636 = vmatmul.f32.gmra.mxu1 %v1156_v31 }
  0x99   : > { %785 = vmatmul.f32.gmra.mxu2 %v1173_v32  ;;  %931 = vmatmul.f32.gmra.mxu3 %v1189_v33 }
  0x9b   : > { %525 = vmatmul.f32.gmra.mxu0 %v485_v34  ;;  %639 = vmatmul.f32.gmra.mxu1 %v1157_v35 }
  0xa1   : > { %788 = vmatmul.f32.gmra.mxu2 %v1174_v36  ;;  %934 = vmatmul.f32.gmra.mxu3 %v1190_v37 }
  0xa3   : > { %528 = vmatmul.f32.gmra.mxu0 %v486_v38  ;;  %642 = vmatmul.f32.gmra.mxu1 %v1158_v39 }
  0xa9   : > { %791 = vmatmul.f32.gmra.mxu2 %v1175_v40  ;;  %937 = vmatmul.f32.gmra.mxu3 %v1191_v41 }
  0xab   : > { %531 = vmatmul.f32.gmra.mxu0 %v487_v42  ;;  %645 = vmatmul.f32.gmra.mxu1 %v1159_v43 }
  0xb1   : > { %794 = vmatmul.f32.gmra.mxu2 %v1176_v44  ;;  %940 = vmatmul.f32.gmra.mxu3 %v1192_v45 }
  0xb3   : > { %534 = vmatmul.f32.gmra.mxu0 %v488_v46  ;;  %648 = vmatmul.f32.gmra.mxu1 %v1160_v47 }
  0xb9   : > { %797 = vmatmul.f32.gmra.mxu2 %v1177_v48  ;;  %943 = vmatmul.f32.gmra.mxu3 %v1193_v49 }
  0xbb   : > { %537 = vmatmul.f32.gmra.mxu0 %v489_v50  ;;  %651 = vmatmul.f32.gmra.mxu1 %v1161_v51 }
  0xc1   : > { %800 = vmatmul.f32.gmra.mxu2 %v1178_v52  ;;  %946 = vmatmul.f32.gmra.mxu3 %v1194_v53 }
  0xc3   : > { %540 = vmatmul.f32.gmra.mxu0 %v490_v54  ;;  %654 = vmatmul.f32.gmra.mxu1 %v1162_v55 }
  0xc9   : > { %803 = vmatmul.f32.gmra.mxu2 %v1179_v56  ;;  %949 = vmatmul.f32.gmra.mxu3 %v1195_v57 }
  0xcb   : > { %543 = vmatmul.f32.gmra.mxu0 %v491_v58  ;;  %657 = vmatmul.f32.gmra.mxu1 %v1163_v59 }
  0xd1   : > { %806 = vmatmul.f32.gmra.mxu2 %v1180_v60  ;;  %952 = vmatmul.f32.gmra.mxu3 %v1196_v61 }
  0xd3   : > { %546 = vmatmul.f32.gmra.mxu0 %v492_v62  ;;  %660 = vmatmul.f32.gmra.mxu1 %v1164_v63 }
  0xd9   : > { %809 = vmatmul.f32.gmra.mxu2 %v1181_v0  ;;  %955 = vmatmul.f32.gmra.mxu3 %v1197_v1 }
  0xdb   : > { %549 = vmatmul.f32.gmra.mxu0 %v493_v2  ;;  %663 = vmatmul.f32.gmra.mxu1 %v1165_v3 }
  0xe1   : > { %812 = vmatmul.f32.gmra.mxu2 %v1182_v4  ;;  %958 = vmatmul.f32.gmra.mxu3 %v1198_v5 }
  0xe3   : > { %552 = vmatmul.f32.gmra.mxu0 %v494_v6  ;;  %666 = vmatmul.f32.gmra.mxu1 %v1166_v7 }
  0xe9   : > { %815 = vmatmul.f32.gmra.mxu2 %v1183_v8  ;;  %961 = vmatmul.f32.gmra.mxu3 %v1199_v9 }
  0xeb   : > { %555 = vmatmul.f32.gmra.mxu0 %v495_v10  ;;  %669 = vmatmul.f32.gmra.mxu1 %v1167_v11 }
  0xf1   : > { %818 = vmatmul.f32.gmra.mxu2 %v1184_v12  ;;  %964 = vmatmul.f32.gmra.mxu3 %v1200_v13 }
  0xf3   : > { %558 = vmatmul.f32.gmra.mxu0 %v496_v14  ;;  %672 = vmatmul.f32.gmra.mxu1 %v1168_v15 }
  0xf8   : > { %v514_v17 = vpop.f32.mrf.mxu0  ;;  %v628_v18 = vpop.f32.mrf.mxu1 }
  0xf9   : > { %v515_v19 = vadd.f32 %v1559_v16, %v514_v17  ;;  %v629_v20 = vadd.f32 %v1559_v16, %v628_v18 }
  0xfb   : > { %v562_v21 = vmax.f32 %v515_v19, 0.0  ;;  %v676_v22 = vmax.f32 %v629_v20, 0.0 }
  0xfc   : > { %v774_v23 = vpop.f32.mrf.mxu2  ;;  %v920_v24 = vpop.f32.mrf.mxu3 }
  0xfd   : > { %v708_v25 = vadd.f32 %v676_v22, %v562_v21  ;;  %v775_v26 = vadd.f32 %v1559_v16, %v774_v23  ;;  %v921_v27 = vadd.f32 %v1559_v16, %v920_v24 }
  0xff   : > { %v822_v28 = vmax.f32 %v775_v26, 0.0  ;;  %v968_v29 = vmax.f32 %v921_v27, 0.0 }
 0x100   : > { %v517_v30 = vpop.f32.mrf.mxu0  ;;  %v631_v31 = vpop.f32.mrf.mxu1 }
 0x101   : > { %v854_v32 = vadd.f32 %v822_v28, %v708_v25  ;;  %v518_v33 = vadd.f32 %v1559_v16, %v517_v30  ;;  %v632_v34 = vadd.f32 %v1559_v16, %v631_v31 }
 0x103   : > { %v1000_v35 = vadd.f32 %v968_v29, %v854_v32  ;;  %v563_v36 = vmax.f32 %v518_v33, 0.0  ;;  %v677_v37 = vmax.f32 %v632_v34, 0.0 }
 0x104   : > { %v777_v38 = vpop.f32.mrf.mxu2  ;;  %v923_v39 = vpop.f32.mrf.mxu3 }
 0x105   : > { %v1048_v40 = vmul.f32 0.25, %v1000_v35  ;;  %v709_v41 = vadd.f32 %v677_v37, %v563_v36  ;;  %v778_v42 = vadd.f32 %v1559_v16, %v777_v38  ;;  %v924_v43 = vadd.f32 %v1559_v16, %v923_v39 }
 0x107   : > { %1064 = vst [vmem:[%s1572_s23] sm:$0xff] %v1048_v40  ;;  %v823_v44 = vmax.f32 %v778_v42, 0.0  ;;  %v969_v45 = vmax.f32 %v924_v43, 0.0 }
 0x108   : > { %v520_v46 = vpop.f32.mrf.mxu0  ;;  %v634_v47 = vpop.f32.mrf.mxu1 }
 0x109   : > { %v855_v48 = vadd.f32 %v823_v44, %v709_v41  ;;  %v521_v49 = vadd.f32 %v1559_v16, %v520_v46  ;;  %v635_v50 = vadd.f32 %v1559_v16, %v634_v47 }
 0x10b   : > { %v1001_v51 = vadd.f32 %v969_v45, %v855_v48  ;;  %v564_v52 = vmax.f32 %v521_v49, 0.0  ;;  %v678_v53 = vmax.f32 %v635_v50, 0.0 }
 0x10c   : > { %v780_v54 = vpop.f32.mrf.mxu2  ;;  %v926_v55 = vpop.f32.mrf.mxu3 }
 0x10d   : > { %v1049_v56 = vmul.f32 0.25, %v1001_v51  ;;  %v710_v57 = vadd.f32 %v678_v53, %v564_v52  ;;  %v781_v58 = vadd.f32 %v1559_v16, %v780_v54  ;;  %v927_v59 = vadd.f32 %v1559_v16, %v926_v55 }
 0x10f   : > { %1065 = vst [vmem:[%s1572_s23 + $0x8] sm:$0xff] %v1049_v56  ;;  %v824_v60 = vmax.f32 %v781_v58, 0.0  ;;  %v970_v61 = vmax.f32 %v927_v59, 0.0 }
 0x110   : > { %v523_v62 = vpop.f32.mrf.mxu0  ;;  %v637_v63 = vpop.f32.mrf.mxu1 }
 0x111   : > { %v856_v0 = vadd.f32 %v824_v60, %v710_v57  ;;  %v524_v1 = vadd.f32 %v1559_v16, %v523_v62  ;;  %v638_v2 = vadd.f32 %v1559_v16, %v637_v63 }
 0x113   : > { %v1002_v3 = vadd.f32 %v970_v61, %v856_v0  ;;  %v565_v4 = vmax.f32 %v524_v1, 0.0  ;;  %v679_v5 = vmax.f32 %v638_v2, 0.0 }
 0x114   : > { %v783_v6 = vpop.f32.mrf.mxu2  ;;  %v929_v7 = vpop.f32.mrf.mxu3 }
 0x115   : > { %v1050_v8 = vmul.f32 0.25, %v1002_v3  ;;  %v711_v9 = vadd.f32 %v679_v5, %v565_v4  ;;  %v784_v10 = vadd.f32 %v1559_v16, %v783_v6  ;;  %v930_v11 = vadd.f32 %v1559_v16, %v929_v7 }
 0x117   : > { %1066 = vst [vmem:[%s1572_s23 + $0x10] sm:$0xff] %v1050_v8  ;;  %v825_v12 = vmax.f32 %v784_v10, 0.0  ;;  %v971_v13 = vmax.f32 %v930_v11, 0.0 }
 0x118   : > { %v526_v14 = vpop.f32.mrf.mxu0  ;;  %v640_v15 = vpop.f32.mrf.mxu1 }
 0x119   : > { %v857_v17 = vadd.f32 %v825_v12, %v711_v9  ;;  %v527_v18 = vadd.f32 %v1559_v16, %v526_v14  ;;  %v641_v19 = vadd.f32 %v1559_v16, %v640_v15 }
 0x11b   : > { %v1003_v20 = vadd.f32 %v971_v13, %v857_v17  ;;  %v566_v21 = vmax.f32 %v527_v18, 0.0  ;;  %v680_v22 = vmax.f32 %v641_v19, 0.0 }
 0x11c   : > { %v786_v23 = vpop.f32.mrf.mxu2  ;;  %v932_v24 = vpop.f32.mrf.mxu3 }
 0x11d   : > { %v1051_v25 = vmul.f32 0.25, %v1003_v20  ;;  %v712_v26 = vadd.f32 %v680_v22, %v566_v21  ;;  %v787_v27 = vadd.f32 %v1559_v16, %v786_v23  ;;  %v933_v28 = vadd.f32 %v1559_v16, %v932_v24 }
 0x11f   : > { %1067 = vst [vmem:[%s1572_s23 + $0x18] sm:$0xff] %v1051_v25  ;;  %v826_v29 = vmax.f32 %v787_v27, 0.0  ;;  %v972_v30 = vmax.f32 %v933_v28, 0.0 }
 0x120   : > { %v529_v31 = vpop.f32.mrf.mxu0  ;;  %v643_v32 = vpop.f32.mrf.mxu1 }
 0x121   : > { %v858_v33 = vadd.f32 %v826_v29, %v712_v26  ;;  %v530_v34 = vadd.f32 %v1559_v16, %v529_v31  ;;  %v644_v35 = vadd.f32 %v1559_v16, %v643_v32 }
 0x123   : > { %v1004_v36 = vadd.f32 %v972_v30, %v858_v33  ;;  %v567_v37 = vmax.f32 %v530_v34, 0.0  ;;  %v681_v38 = vmax.f32 %v644_v35, 0.0 }
 0x124   : > { %v789_v39 = vpop.f32.mrf.mxu2  ;;  %v935_v40 = vpop.f32.mrf.mxu3 }
 0x125   : > { %v1052_v41 = vmul.f32 0.25, %v1004_v36  ;;  %v713_v42 = vadd.f32 %v681_v38, %v567_v37  ;;  %v790_v43 = vadd.f32 %v1559_v16, %v789_v39  ;;  %v936_v44 = vadd.f32 %v1559_v16, %v935_v40 }
 0x127   : > { %1068 = vst [vmem:[%s1572_s23 + $0x20] sm:$0xff] %v1052_v41  ;;  %v827_v45 = vmax.f32 %v790_v43, 0.0  ;;  %v973_v46 = vmax.f32 %v936_v44, 0.0 }
 0x128   : > { %v532_v47 = vpop.f32.mrf.mxu0  ;;  %v646_v48 = vpop.f32.mrf.mxu1 }
 0x129   : > { %v859_v49 = vadd.f32 %v827_v45, %v713_v42  ;;  %v533_v50 = vadd.f32 %v1559_v16, %v532_v47  ;;  %v647_v51 = vadd.f32 %v1559_v16, %v646_v48 }
 0x12b   : > { %v1005_v52 = vadd.f32 %v973_v46, %v859_v49  ;;  %v568_v53 = vmax.f32 %v533_v50, 0.0  ;;  %v682_v54 = vmax.f32 %v647_v51, 0.0 }
 0x12c   : > { %v792_v55 = vpop.f32.mrf.mxu2  ;;  %v938_v56 = vpop.f32.mrf.mxu3 }
 0x12d   : > { %v1053_v57 = vmul.f32 0.25, %v1005_v52  ;;  %v714_v58 = vadd.f32 %v682_v54, %v568_v53  ;;  %v793_v59 = vadd.f32 %v1559_v16, %v792_v55  ;;  %v939_v60 = vadd.f32 %v1559_v16, %v938_v56 }
 0x12f   : > { %1069 = vst [vmem:[%s1572_s23 + $0x28] sm:$0xff] %v1053_v57  ;;  %v828_v61 = vmax.f32 %v793_v59, 0.0  ;;  %v974_v62 = vmax.f32 %v939_v60, 0.0 }
 0x130   : > { %v535_v63 = vpop.f32.mrf.mxu0  ;;  %v649_v0 = vpop.f32.mrf.mxu1 }
 0x131   : > { %v860_v1 = vadd.f32 %v828_v61, %v714_v58  ;;  %v536_v2 = vadd.f32 %v1559_v16, %v535_v63  ;;  %v650_v3 = vadd.f32 %v1559_v16, %v649_v0 }
 0x133   : > { %v1006_v4 = vadd.f32 %v974_v62, %v860_v1  ;;  %v569_v5 = vmax.f32 %v536_v2, 0.0  ;;  %v683_v6 = vmax.f32 %v650_v3, 0.0 }
 0x134   : > { %v795_v7 = vpop.f32.mrf.mxu2  ;;  %v941_v8 = vpop.f32.mrf.mxu3 }
 0x135   : > { %v1054_v9 = vmul.f32 0.25, %v1006_v4  ;;  %v715_v10 = vadd.f32 %v683_v6, %v569_v5  ;;  %v796_v11 = vadd.f32 %v1559_v16, %v795_v7  ;;  %v942_v12 = vadd.f32 %v1559_v16, %v941_v8 }
 0x137   : > { %1070 = vst [vmem:[%s1572_s23 + $0x30] sm:$0xff] %v1054_v9  ;;  %v829_v13 = vmax.f32 %v796_v11, 0.0  ;;  %v975_v14 = vmax.f32 %v942_v12, 0.0 }
 0x138   : > { %v538_v15 = vpop.f32.mrf.mxu0  ;;  %v652_v17 = vpop.f32.mrf.mxu1 }
 0x139   : > { %v861_v18 = vadd.f32 %v829_v13, %v715_v10  ;;  %v539_v19 = vadd.f32 %v1559_v16, %v538_v15  ;;  %v653_v20 = vadd.f32 %v1559_v16, %v652_v17 }
 0x13b   : > { %v1007_v21 = vadd.f32 %v975_v14, %v861_v18  ;;  %v570_v22 = vmax.f32 %v539_v19, 0.0  ;;  %v684_v23 = vmax.f32 %v653_v20, 0.0 }
 0x13c   : > { %v798_v24 = vpop.f32.mrf.mxu2  ;;  %v944_v25 = vpop.f32.mrf.mxu3 }
 0x13d   : > { %v1055_v26 = vmul.f32 0.25, %v1007_v21  ;;  %v716_v27 = vadd.f32 %v684_v23, %v570_v22  ;;  %v799_v28 = vadd.f32 %v1559_v16, %v798_v24  ;;  %v945_v29 = vadd.f32 %v1559_v16, %v944_v25 }
 0x13f   : > { %1071 = vst [vmem:[%s1572_s23 + $0x38] sm:$0xff] %v1055_v26  ;;  %v830_v30 = vmax.f32 %v799_v28, 0.0  ;;  %v976_v31 = vmax.f32 %v945_v29, 0.0 }
 0x140   : > { %v541_v32 = vpop.f32.mrf.mxu0  ;;  %v655_v33 = vpop.f32.mrf.mxu1 }
 0x141   : > { %v862_v34 = vadd.f32 %v830_v30, %v716_v27  ;;  %v542_v35 = vadd.f32 %v1559_v16, %v541_v32  ;;  %v656_v36 = vadd.f32 %v1559_v16, %v655_v33 }
 0x143   : > { %v1008_v37 = vadd.f32 %v976_v31, %v862_v34  ;;  %v571_v38 = vmax.f32 %v542_v35, 0.0  ;;  %v685_v39 = vmax.f32 %v656_v36, 0.0 }
 0x144   : > { %v801_v40 = vpop.f32.mrf.mxu2  ;;  %v947_v41 = vpop.f32.mrf.mxu3 }
 0x145   : > { %v1056_v42 = vmul.f32 0.25, %v1008_v37  ;;  %v717_v43 = vadd.f32 %v685_v39, %v571_v38  ;;  %v802_v44 = vadd.f32 %v1559_v16, %v801_v40  ;;  %v948_v45 = vadd.f32 %v1559_v16, %v947_v41 }
 0x147   : > { %1072 = vst [vmem:[%s1572_s23 + $0x40] sm:$0xff] %v1056_v42  ;;  %v831_v46 = vmax.f32 %v802_v44, 0.0  ;;  %v977_v47 = vmax.f32 %v948_v45, 0.0 }
 0x148   : > { %v544_v48 = vpop.f32.mrf.mxu0  ;;  %v658_v49 = vpop.f32.mrf.mxu1 }
 0x149   : > { %v863_v50 = vadd.f32 %v831_v46, %v717_v43  ;;  %v545_v51 = vadd.f32 %v1559_v16, %v544_v48  ;;  %v659_v52 = vadd.f32 %v1559_v16, %v658_v49 }
 0x14b   : > { %v1009_v53 = vadd.f32 %v977_v47, %v863_v50  ;;  %v572_v54 = vmax.f32 %v545_v51, 0.0  ;;  %v686_v55 = vmax.f32 %v659_v52, 0.0 }
 0x14c   : > { %v804_v56 = vpop.f32.mrf.mxu2  ;;  %v950_v57 = vpop.f32.mrf.mxu3 }
 0x14d   : > { %v1057_v58 = vmul.f32 0.25, %v1009_v53  ;;  %v718_v59 = vadd.f32 %v686_v55, %v572_v54  ;;  %v805_v60 = vadd.f32 %v1559_v16, %v804_v56  ;;  %v951_v61 = vadd.f32 %v1559_v16, %v950_v57 }
 0x14f   : > { %1073 = vst [vmem:[%s1572_s23 + $0x48] sm:$0xff] %v1057_v58  ;;  %v832_v62 = vmax.f32 %v805_v60, 0.0  ;;  %v978_v63 = vmax.f32 %v951_v61, 0.0 }
 0x150   : > { %v547_v0 = vpop.f32.mrf.mxu0  ;;  %v661_v1 = vpop.f32.mrf.mxu1 }
 0x151   : > { %v864_v2 = vadd.f32 %v832_v62, %v718_v59  ;;  %v548_v3 = vadd.f32 %v1559_v16, %v547_v0  ;;  %v662_v4 = vadd.f32 %v1559_v16, %v661_v1 }
 0x153   : > { %v1010_v5 = vadd.f32 %v978_v63, %v864_v2  ;;  %v573_v6 = vmax.f32 %v548_v3, 0.0  ;;  %v687_v7 = vmax.f32 %v662_v4, 0.0 }
 0x154   : > { %v807_v8 = vpop.f32.mrf.mxu2  ;;  %v953_v9 = vpop.f32.mrf.mxu3 }
 0x155   : > { %v1058_v10 = vmul.f32 0.25, %v1010_v5  ;;  %v719_v11 = vadd.f32 %v687_v7, %v573_v6  ;;  %v808_v12 = vadd.f32 %v1559_v16, %v807_v8  ;;  %v954_v13 = vadd.f32 %v1559_v16, %v953_v9 }
 0x157   : > { %1074 = vst [vmem:[%s1572_s23 + $0x50] sm:$0xff] %v1058_v10  ;;  %v833_v14 = vmax.f32 %v808_v12, 0.0  ;;  %v979_v15 = vmax.f32 %v954_v13, 0.0 }
 0x158   : > { %v550_v17 = vpop.f32.mrf.mxu0  ;;  %v664_v18 = vpop.f32.mrf.mxu1 }
 0x159   : > { %v865_v19 = vadd.f32 %v833_v14, %v719_v11  ;;  %v551_v20 = vadd.f32 %v1559_v16, %v550_v17  ;;  %v665_v21 = vadd.f32 %v1559_v16, %v664_v18 }
 0x15b   : > { %v1011_v22 = vadd.f32 %v979_v15, %v865_v19  ;;  %v574_v23 = vmax.f32 %v551_v20, 0.0  ;;  %v688_v24 = vmax.f32 %v665_v21, 0.0 }
 0x15c   : > { %v810_v25 = vpop.f32.mrf.mxu2  ;;  %v956_v26 = vpop.f32.mrf.mxu3 }
 0x15d   : > { %v1059_v27 = vmul.f32 0.25, %v1011_v22  ;;  %v720_v28 = vadd.f32 %v688_v24, %v574_v23  ;;  %v811_v29 = vadd.f32 %v1559_v16, %v810_v25  ;;  %v957_v30 = vadd.f32 %v1559_v16, %v956_v26 }
 0x15f   : > { %1075 = vst [vmem:[%s1572_s23 + $0x58] sm:$0xff] %v1059_v27  ;;  %v834_v31 = vmax.f32 %v811_v29, 0.0  ;;  %v980_v32 = vmax.f32 %v957_v30, 0.0 }
 0x160   : > { %v553_v33 = vpop.f32.mrf.mxu0  ;;  %v667_v34 = vpop.f32.mrf.mxu1 }
 0x161   : > { %v866_v35 = vadd.f32 %v834_v31, %v720_v28  ;;  %v554_v36 = vadd.f32 %v1559_v16, %v553_v33  ;;  %v668_v37 = vadd.f32 %v1559_v16, %v667_v34 }
 0x163   : > { %v1012_v38 = vadd.f32 %v980_v32, %v866_v35  ;;  %v575_v39 = vmax.f32 %v554_v36, 0.0  ;;  %v689_v40 = vmax.f32 %v668_v37, 0.0 }
 0x164   : > { %v813_v41 = vpop.f32.mrf.mxu2  ;;  %v959_v42 = vpop.f32.mrf.mxu3 }
 0x165   : > { %v1060_v43 = vmul.f32 0.25, %v1012_v38  ;;  %v721_v44 = vadd.f32 %v689_v40, %v575_v39  ;;  %v814_v45 = vadd.f32 %v1559_v16, %v813_v41  ;;  %v960_v46 = vadd.f32 %v1559_v16, %v959_v42 }
 0x167   : > { %1076 = vst [vmem:[%s1572_s23 + $0x60] sm:$0xff] %v1060_v43  ;;  %v835_v47 = vmax.f32 %v814_v45, 0.0  ;;  %v981_v48 = vmax.f32 %v960_v46, 0.0 }
 0x168   : > { %v556_v49 = vpop.f32.mrf.mxu0  ;;  %v670_v50 = vpop.f32.mrf.mxu1 }
 0x169   : > { %v867_v51 = vadd.f32 %v835_v47, %v721_v44  ;;  %v557_v52 = vadd.f32 %v1559_v16, %v556_v49  ;;  %v671_v53 = vadd.f32 %v1559_v16, %v670_v50 }
 0x16b   : > { %v1013_v54 = vadd.f32 %v981_v48, %v867_v51  ;;  %v576_v55 = vmax.f32 %v557_v52, 0.0  ;;  %v690_v56 = vmax.f32 %v671_v53, 0.0 }
 0x16c   : > { %v816_v57 = vpop.f32.mrf.mxu2  ;;  %v962_v58 = vpop.f32.mrf.mxu3 }
 0x16d   : > { %v1061_v59 = vmul.f32 0.25, %v1013_v54  ;;  %v722_v60 = vadd.f32 %v690_v56, %v576_v55  ;;  %v817_v61 = vadd.f32 %v1559_v16, %v816_v57  ;;  %v963_v62 = vadd.f32 %v1559_v16, %v962_v58 }
 0x16f   : > { %1077 = vst [vmem:[%s1572_s23 + $0x68] sm:$0xff] %v1061_v59  ;;  %v836_v63 = vmax.f32 %v817_v61, 0.0  ;;  %v982_v0 = vmax.f32 %v963_v62, 0.0 }
 0x170   : > { %v559_v1 = vpop.f32.mrf.mxu0  ;;  %v673_v2 = vpop.f32.mrf.mxu1 }
 0x171   : > { %v868_v3 = vadd.f32 %v836_v63, %v722_v60  ;;  %v560_v4 = vadd.f32 %v1559_v16, %v559_v1  ;;  %v674_v5 = vadd.f32 %v1559_v16, %v673_v2 }
 0x173   : > { %v1014_v6 = vadd.f32 %v982_v0, %v868_v3  ;;  %v577_v7 = vmax.f32 %v560_v4, 0.0  ;;  %v691_v8 = vmax.f32 %v674_v5, 0.0 }
 0x174   : > { %v819_v9 = vpop.f32.mrf.mxu2  ;;  %v965_v10 = vpop.f32.mrf.mxu3 }
 0x175   : > { %v1062_v11 = vmul.f32 0.25, %v1014_v6  ;;  %v723_v12 = vadd.f32 %v691_v8, %v577_v7  ;;  %v820_v13 = vadd.f32 %v1559_v16, %v819_v9  ;;  %v966_v14 = vadd.f32 %v1559_v16, %v965_v10 }
 0x177   : > { %1078 = vst [vmem:[%s1572_s23 + $0x70] sm:$0xff] %v1062_v11  ;;  %v837_v15 = vmax.f32 %v820_v13, 0.0  ;;  %v983_v17 = vmax.f32 %v966_v14, 0.0 }
 0x179   : > { %v869_v18 = vadd.f32 %v837_v15, %v723_v12 }
 0x17b   : > { %v1015_v19 = vadd.f32 %v983_v17, %v869_v18 }
 0x17d   : > { %v1063_v20 = vmul.f32 0.25, %v1015_v19 }
 0x17f   : > { %1079 = vst [vmem:[%s1572_s23 + $0x78] sm:$0xff] %v1063_v20 }
 0x180 PF: > { %p10_p9 = scmp.ge.s32.totalorder %s1290_s16, 6   ;;  %s1662_s12 = smov %s1247_s13 }
 0x181   : > { %s1663_s13 = smov %s1299_s19  ;;  %s1664_s14 = smov %s1290_s16 }
 0x182   :  { %12 = sbr.rel (!%p10_p9) target bundleno = 2 (0x2), region = 108 }

// kernel: lenet_forward.4
= control target key start
LH: loop header
LB: loop body
LE: loop exit
PB: predicated region body
PF: predicated region fallthrough
CT: control target
= control target key end

     0   :  { %s1182_s12 = smov 0   ;;  %s1184_s13 = smov 0   ;;  %s2077_s0 = inlined_call_operand.vmem [shape: f32[4,64,512], index: 0, kind: input, shape index: {}]   ;;  %s2078_s1 = inlined_call_operand.vmem [shape: f32[512,128], index: 1, kind: input, shape index: {}]   ;;  %s2079_s2 = inlined_call_operand.vmem [shape: f32[1,128], index: 2, kind: input, shape index: {}]   ;;  %s2080_s3 = inlined_call_operand.vmem [shape: f32[64,128], index: 3, kind: output, shape index: {}]  }
   0x1   :  { %s1186_s14 = smov 0  }
   0x2 LB: > { %s1049_s15 = sadd.s32 4294967295, %s1160_s14   ;;  %s1199_s16 = sadd.s32 1, %s1160_s14   ;;  %s1160_s14 = sphi %s1186_s14, %s2120_s14   ;;  %s1156_s13 = sphi %s1184_s13, %s2119_s13   ;;  %s1152_s12 = sphi %s1182_s12, %s2118_s12  }
   0x3   : > { %s17_s17 = ssub.s32 %s1160_s14, %s1199_s16  ;;  %s20_s18 = sadd.s32 1, %s1156_s13 }
   0x4   : > { %p18_p0 = scmp.eq.s32.totalorder %s17_s17, 0  ;;  %p27_p1 = scmp.ne.s32.totalorder %s1156_s13, %s1152_s12 }
   0x5   : > { %p28_p2 = scmp.eq.s32.totalorder %s1160_s14, 0  ;;  %p1052_p4 = scmp.ge.s32.totalorder %s1160_s14, 2 }
   0x6   : > { %s1208_s19 = scalar_select %p18_p0, %s1156_s13, %s20_s18  }
   0x7   : > { %p29_p3 = por %p28_p2, %p27_p1  ;;  %127 = sbr.rel (%p1052_p4) target bundleno = 80 (0x50), region = 24 }
   0xc   : > { %130 = sbr.rel (!%p29_p3) target bundleno = 80 (0x50), region = 28  ;;  %s132_s20 = sand.u32 (%p29_p3), 1, %s1156_s13  }
   0xd   : > { %s1112_s21 = sshll.u32 (%p29_p3), %s1160_s14, 7  ;;  %s1053_s22 = sshll.u32 (%p29_p3), %s132_s20, 9 }
   0xe   : > { %s1216_s25 = scalar_lea.vmem (%p29_p3), %s2077_s0, %s1112_s21  ;;  %s1221_s26 = scalar_lea.vmem (%p29_p3), [#allocation3], %s1053_s22 }
   0xf   : > { %v151_v0 = vld [vmem:[%s1216_s25] sm:$0xff] (%p29_p3)  ;;  %v153_v1 = vld [vmem:[%s1216_s25 + $0x8] sm:$0xff] (%p29_p3)  ;;  %v155_v2 = vld [vmem:[%s1216_s25 + $0x10] sm:$0xff] (%p29_p3) }
  0x10   : > { %152 = vst [vmem:[%s1221_s26] sm:$0xff] (%p29_p3), %v151_v0  ;;  %v157_v3 = vld [vmem:[%s1216_s25 + $0x18] sm:$0xff] (%p29_p3)  ;;  %v159_v4 = vld [vmem:[%s1216_s25 + $0x20] sm:$0xff] (%p29_p3)  ;;  %v161_v5 = vld [vmem:[%s1216_s25 + $0x28] sm:$0xff] (%p29_p3) }
  0x11   : > { %154 = vst [vmem:[%s1221_s26 + $0x8] sm:$0xff] %v153_v1  ;;  %v163_v6 = vld [vmem:[%s1216_s25 + $0x30] sm:$0xff]  ;;  %v165_v7 = vld [vmem:[%s1216_s25 + $0x38] sm:$0xff]  ;;  %v167_v8 = vld [vmem:[%s1216_s25 + $0x40] sm:$0xff] }
  0x12   : > { %156 = vst [vmem:[%s1221_s26 + $0x10] sm:$0xff] %v155_v2  ;;  %v169_v9 = vld [vmem:[%s1216_s25 + $0x48] sm:$0xff]  ;;  %v171_v10 = vld [vmem:[%s1216_s25 + $0x50] sm:$0xff]  ;;  %v173_v11 = vld [vmem:[%s1216_s25 + $0x58] sm:$0xff] }
  0x13   : > { %158 = vst [vmem:[%s1221_s26 + $0x18] sm:$0xff] %v157_v3  ;;  %v175_v12 = vld [vmem:[%s1216_s25 + $0x60] sm:$0xff]  ;;  %v177_v13 = vld [vmem:[%s1216_s25 + $0x68] sm:$0xff]  ;;  %v179_v14 = vld [vmem:[%s1216_s25 + $0x70] sm:$0xff] }
  0x14   : > { %160 = vst [vmem:[%s1221_s26 + $0x20] sm:$0xff] %v159_v4  ;;  %v181_v15 = vld [vmem:[%s1216_s25 + $0x78] sm:$0xff]  ;;  %v183_v16 = vld [vmem:[%s1216_s25 + $0x100] sm:$0xff]  ;;  %v185_v17 = vld [vmem:[%s1216_s25 + $0x108] sm:$0xff] }
  0x15   : > { %162 = vst [vmem:[%s1221_s26 + $0x28] sm:$0xff] %v161_v5  ;;  %v187_v18 = vld [vmem:[%s1216_s25 + $0x110] sm:$0xff]  ;;  %v189_v19 = vld [vmem:[%s1216_s25 + $0x118] sm:$0xff]  ;;  %v191_v20 = vld [vmem:[%s1216_s25 + $0x120] sm:$0xff] }
  0x16   : > { %164 = vst [vmem:[%s1221_s26 + $0x30] sm:$0xff] %v163_v6  ;;  %v193_v21 = vld [vmem:[%s1216_s25 + $0x128] sm:$0xff]  ;;  %v195_v22 = vld [vmem:[%s1216_s25 + $0x130] sm:$0xff]  ;;  %v197_v23 = vld [vmem:[%s1216_s25 + $0x138] sm:$0xff] }
  0x17   : > { %166 = vst [vmem:[%s1221_s26 + $0x38] sm:$0xff] %v165_v7  ;;  %v199_v24 = vld [vmem:[%s1216_s25 + $0x140] sm:$0xff]  ;;  %v201_v25 = vld [vmem:[%s1216_s25 + $0x148] sm:$0xff]  ;;  %v203_v26 = vld [vmem:[%s1216_s25 + $0x150] sm:$0xff] }
  0x18   : > { %168 = vst [vmem:[%s1221_s26 + $0x40] sm:$0xff] %v167_v8  ;;  %v205_v27 = vld [vmem:[%s1216_s25 + $0x158] sm:$0xff]  ;;  %v207_v28 = vld [vmem:[%s1216_s25 + $0x160] sm:$0xff]  ;;  %v209_v29 = vld [vmem:[%s1216_s25 + $0x168] sm:$0xff] }
  0x19   : > { %170 = vst [vmem:[%s1221_s26 + $0x48] sm:$0xff] %v169_v9  ;;  %v211_v30 = vld [vmem:[%s1216_s25 + $0x170] sm:$0xff]  ;;  %v213_v31 = vld [vmem:[%s1216_s25 + $0x178] sm:$0xff]  ;;  %v215_v32 = vld [vmem:[%s1216_s25 + $0x200] sm:$0xff] }
  0x1a   : > { %172 = vst [vmem:[%s1221_s26 + $0x50] sm:$0xff] %v171_v10  ;;  %v217_v33 = vld [vmem:[%s1216_s25 + $0x208] sm:$0xff]  ;;  %v219_v34 = vld [vmem:[%s1216_s25 + $0x210] sm:$0xff]  ;;  %v221_v35 = vld [vmem:[%s1216_s25 + $0x218] sm:$0xff] }
  0x1b   : > { %174 = vst [vmem:[%s1221_s26 + $0x58] sm:$0xff] %v173_v11  ;;  %v223_v36 = vld [vmem:[%s1216_s25 + $0x220] sm:$0xff]  ;;  %v225_v37 = vld [vmem:[%s1216_s25 + $0x228] sm:$0xff]  ;;  %v227_v38 = vld [vmem:[%s1216_s25 + $0x230] sm:$0xff] }
  0x1c   : > { %176 = vst [vmem:[%s1221_s26 + $0x60] sm:$0xff] %v175_v12  ;;  %v229_v39 = vld [vmem:[%s1216_s25 + $0x238] sm:$0xff]  ;;  %v231_v40 = vld [vmem:[%s1216_s25 + $0x240] sm:$0xff]  ;;  %v233_v41 = vld [vmem:[%s1216_s25 + $0x248] sm:$0xff] }
  0x1d   : > { %178 = vst [vmem:[%s1221_s26 + $0x68] sm:$0xff] %v177_v13  ;;  %v235_v42 = vld [vmem:[%s1216_s25 + $0x250] sm:$0xff]  ;;  %v237_v43 = vld [vmem:[%s1216_s25 + $0x258] sm:$0xff]  ;;  %v239_v44 = vld [vmem:[%s1216_s25 + $0x260] sm:$0xff] }
  0x1e   : > { %180 = vst [vmem:[%s1221_s26 + $0x70] sm:$0xff] %v179_v14  ;;  %v241_v45 = vld [vmem:[%s1216_s25 + $0x268] sm:$0xff]  ;;  %v243_v46 = vld [vmem:[%s1216_s25 + $0x270] sm:$0xff]  ;;  %v245_v47 = vld [vmem:[%s1216_s25 + $0x278] sm:$0xff] }
  0x1f   : > { %182 = vst [vmem:[%s1221_s26 + $0x78] sm:$0xff] %v181_v15  ;;  %v247_v48 = vld [vmem:[%s1216_s25 + $0x300] sm:$0xff]  ;;  %v249_v49 = vld [vmem:[%s1216_s25 + $0x308] sm:$0xff]  ;;  %v251_v50 = vld [vmem:[%s1216_s25 + $0x310] sm:$0xff] }
  0x20   : > { %184 = vst [vmem:[%s1221_s26 + $0x80] sm:$0xff] %v183_v16  ;;  %v253_v51 = vld [vmem:[%s1216_s25 + $0x318] sm:$0xff]  ;;  %v255_v52 = vld [vmem:[%s1216_s25 + $0x320] sm:$0xff]  ;;  %v257_v53 = vld [vmem:[%s1216_s25 + $0x328] sm:$0xff] }
  0x21   : > { %186 = vst [vmem:[%s1221_s26 + $0x88] sm:$0xff] %v185_v17  ;;  %v259_v54 = vld [vmem:[%s1216_s25 + $0x330] sm:$0xff]  ;;  %v261_v55 = vld [vmem:[%s1216_s25 + $0x338] sm:$0xff]  ;;  %v263_v56 = vld [vmem:[%s1216_s25 + $0x340] sm:$0xff] }
  0x22   : > { %188 = vst [vmem:[%s1221_s26 + $0x90] sm:$0xff] %v187_v18  ;;  %v265_v57 = vld [vmem:[%s1216_s25 + $0x348] sm:$0xff]  ;;  %v267_v58 = vld [vmem:[%s1216_s25 + $0x350] sm:$0xff]  ;;  %v269_v59 = vld [vmem:[%s1216_s25 + $0x358] sm:$0xff] }
  0x23   : > { %190 = vst [vmem:[%s1221_s26 + $0x98] sm:$0xff] %v189_v19  ;;  %v271_v60 = vld [vmem:[%s1216_s25 + $0x360] sm:$0xff]  ;;  %v273_v61 = vld [vmem:[%s1216_s25 + $0x368] sm:$0xff]  ;;  %v275_v62 = vld [vmem:[%s1216_s25 + $0x370] sm:$0xff] }
  0x24   : > { %192 = vst [vmem:[%s1221_s26 + $0xa0] sm:$0xff] %v191_v20  ;;  %v277_v63 = vld [vmem:[%s1216_s25 + $0x378] sm:$0xff] }
  0x25   : > { %194 = vst [vmem:[%s1221_s26 + $0xa8] sm:$0xff] %v193_v21 }
  0x26   : > { %196 = vst [vmem:[%s1221_s26 + $0xb0] sm:$0xff] %v195_v22 }
  0x27   : > { %198 = vst [vmem:[%s1221_s26 + $0xb8] sm:$0xff] %v197_v23 }
  0x28   : > { %200 = vst [vmem:[%s1221_s26 + $0xc0] sm:$0xff] %v199_v24 }
  0x29   : > { %202 = vst [vmem:[%s1221_s26 + $0xc8] sm:$0xff] %v201_v25 }
  0x2a   : > { %204 = vst [vmem:[%s1221_s26 + $0xd0] sm:$0xff] %v203_v26 }
  0x2b   : > { %206 = vst [vmem:[%s1221_s26 + $0xd8] sm:$0xff] %v205_v27 }
  0x2c   : > { %208 = vst [vmem:[%s1221_s26 + $0xe0] sm:$0xff] %v207_v28 }
  0x2d   : > { %210 = vst [vmem:[%s1221_s26 + $0xe8] sm:$0xff] %v209_v29 }
  0x2e   : > { %212 = vst [vmem:[%s1221_s26 + $0xf0] sm:$0xff] %v211_v30 }
  0x2f   : > { %214 = vst [vmem:[%s1221_s26 + $0xf8] sm:$0xff] %v213_v31 }
  0x30   : > { %216 = vst [vmem:[%s1221_s26 + $0x100] sm:$0xff] %v215_v32 }
  0x31   : > { %218 = vst [vmem:[%s1221_s26 + $0x108] sm:$0xff] %v217_v33 }
  0x32   : > { %220 = vst [vmem:[%s1221_s26 + $0x110] sm:$0xff] %v219_v34 }
  0x33   : > { %222 = vst [vmem:[%s1221_s26 + $0x118] sm:$0xff] %v221_v35 }
  0x34   : > { %224 = vst [vmem:[%s1221_s26 + $0x120] sm:$0xff] %v223_v36 }
  0x35   : > { %226 = vst [vmem:[%s1221_s26 + $0x128] sm:$0xff] %v225_v37 }
  0x36   : > { %228 = vst [vmem:[%s1221_s26 + $0x130] sm:$0xff] %v227_v38 }
  0x37   : > { %230 = vst [vmem:[%s1221_s26 + $0x138] sm:$0xff] %v229_v39 }
  0x38   : > { %232 = vst [vmem:[%s1221_s26 + $0x140] sm:$0xff] %v231_v40 }
  0x39   : > { %234 = vst [vmem:[%s1221_s26 + $0x148] sm:$0xff] %v233_v41 }
  0x3a   : > { %236 = vst [vmem:[%s1221_s26 + $0x150] sm:$0xff] %v235_v42 }
  0x3b   : > { %238 = vst [vmem:[%s1221_s26 + $0x158] sm:$0xff] %v237_v43 }
  0x3c   : > { %240 = vst [vmem:[%s1221_s26 + $0x160] sm:$0xff] %v239_v44 }
  0x3d   : > { %242 = vst [vmem:[%s1221_s26 + $0x168] sm:$0xff] %v241_v45 }
  0x3e   : > { %244 = vst [vmem:[%s1221_s26 + $0x170] sm:$0xff] %v243_v46 }
  0x3f   : > { %246 = vst [vmem:[%s1221_s26 + $0x178] sm:$0xff] %v245_v47 }
  0x40   : > { %248 = vst [vmem:[%s1221_s26 + $0x180] sm:$0xff] %v247_v48 }
  0x41   : > { %250 = vst [vmem:[%s1221_s26 + $0x188] sm:$0xff] %v249_v49 }
  0x42   : > { %252 = vst [vmem:[%s1221_s26 + $0x190] sm:$0xff] %v251_v50 }
  0x43   : > { %254 = vst [vmem:[%s1221_s26 + $0x198] sm:$0xff] %v253_v51 }
  0x44   : > { %256 = vst [vmem:[%s1221_s26 + $0x1a0] sm:$0xff] %v255_v52 }
  0x45   : > { %258 = vst [vmem:[%s1221_s26 + $0x1a8] sm:$0xff] %v257_v53 }
  0x46   : > { %260 = vst [vmem:[%s1221_s26 + $0x1b0] sm:$0xff] %v259_v54 }
  0x47   : > { %262 = vst [vmem:[%s1221_s26 + $0x1b8] sm:$0xff] %v261_v55 }
  0x48   : > { %264 = vst [vmem:[%s1221_s26 + $0x1c0] sm:$0xff] %v263_v56 }
  0x49   : > { %266 = vst [vmem:[%s1221_s26 + $0x1c8] sm:$0xff] %v265_v57 }
  0x4a   : > { %268 = vst [vmem:[%s1221_s26 + $0x1d0] sm:$0xff] %v267_v58 }
  0x4b   : > { %270 = vst [vmem:[%s1221_s26 + $0x1d8] sm:$0xff] %v269_v59 }
  0x4c   : > { %272 = vst [vmem:[%s1221_s26 + $0x1e0] sm:$0xff] %v271_v60 }
  0x4d   : > { %274 = vst [vmem:[%s1221_s26 + $0x1e8] sm:$0xff] %v273_v61 }
  0x4e   : > { %276 = vst [vmem:[%s1221_s26 + $0x1f0] sm:$0xff] %v275_v62 }
  0x4f   : > { %278 = vst [vmem:[%s1221_s26 + $0x1f8] sm:$0xff] %v277_v63 }
  0x50 PF: > { %p1057_p5 = scmp.ge.s32.totalorder %s1160_s14, 1  ;;  %p283_p6 = scmp.lt.s32.totalorder %s1160_s14, 3 }
  0x52   : > { %p284_p7 = pnand %p1057_p5, %p283_p6 }
  0x54   : > { %287 = sbr.rel (%p284_p7) target bundleno = 409 (0x199), region = 51 }
  0x59   : > { %v1353_v0 = vld [vmem:[%s2078_s1 + $0x178] sm:$0xff]  ;;  %v1363_v2 = vld [vmem:[%s2078_s1 + $0x170] sm:$0xff]  ;;  %v1387_v6 = vld [vmem:[%s2078_s1 + $0x168] sm:$0xff]  ;;  %s290_s8 = sand.u32 1, %s1152_s12   ;;  %s1059_s5 = sshll.u32 %s1049_s15, 2 }
  0x5a   : > { %v1358_v1 = vld [vmem:[%s2078_s1 + $0x78] sm:$0xff]  ;;  %462 = vmatpush.msra.mxu2 %v1353_v0  ;;  %v1375_v4 = vld [vmem:[%s2078_s1 + $0x70] sm:$0xff]  ;;  %v1397_v8 = vld [vmem:[%s2078_s1 + $0x68] sm:$0xff]  ;;  %s1058_s26 = sshll.u32 %s290_s8, 9  ;;  %p315_p8 = scmp.lt.s32.totalorder %s1059_s5, 7 }
  0x5b   : > { %404 = vmatpush.msra.mxu0 %v1358_v1  ;;  %v1370_v3 = vld [vmem:[%s2078_s1 + $0x1f8] sm:$0xff]  ;;  %v1392_v7 = vld [vmem:[%s2078_s1 + $0x1f0] sm:$0xff]  ;;  %v1409_v10 = vld [vmem:[%s2078_s1 + $0x1e8] sm:$0xff]  ;;  %s1719_s25 = scalar_lea.vmem [#allocation3], %s1058_s26 }
  0x5c   : > { %v1380_v5 = vld [vmem:[%s2078_s1 + $0xf8] sm:$0xff]  ;;  %491 = vmatpush.msra.mxu3 %v1370_v3  ;;  %463 = vmatpush.msra.mxu2 %v1363_v2  ;;  %v1404_v9 = vld [vmem:[%s2078_s1 + $0xf0] sm:$0xff]  ;;  %v1416_v11 = vld [vmem:[%s2078_s1 + $0x160] sm:$0xff]  ;;  %s2122_s5 = smov (!%p315_p8, %s1059_s5), 7 }
  0x5d   : > { %433 = vmatpush.msra.mxu1 %v1380_v5  ;;  %405 = vmatpush.msra.mxu0 %v1375_v4  ;;  %v1421_v12 = vld [vmem:[%s2078_s1 + $0x60] sm:$0xff]  ;;  %v1426_v13 = vld [vmem:[%s2078_s1 + $0xe8] sm:$0xff]  ;;  %v1445_v16 = vld [vmem:[%s2078_s1 + $0x158] sm:$0xff]  ;;  %s1060_s14 = sshll.u32 %s2122_s5, 3 }
  0x5e   : > { %492 = vmatpush.msra.mxu3 %v1392_v7  ;;  %464 = vmatpush.msra.mxu2 %v1387_v6  ;;  %v1433_v14 = vld [vmem:[%s2078_s1 + $0x1e0] sm:$0xff]  ;;  %v1450_v17 = vld [vmem:[%s2078_s1 + $0x58] sm:$0xff]  ;;  %v1469_v20 = vld [vmem:[%s2078_s1 + $0x150] sm:$0xff]  ;;  %s2048_s7 = scalar_lea.vmem %s2080_s3, %s1060_s14 }
  0x5f   : > { %434 = vmatpush.msra.mxu1 %v1404_v9  ;;  %406 = vmatpush.msra.mxu0 %v1397_v8  ;;  %v1438_v15 = vld [vmem:[%s2078_s1 + $0xe0] sm:$0xff]  ;;  %v1457_v18 = vld [vmem:[%s2078_s1 + $0x1d8] sm:$0xff]  ;;  %v1474_v21 = vld [vmem:[%s2078_s1 + $0x50] sm:$0xff] }
  0x60   : > { %493 = vmatpush.msra.mxu3 %v1409_v10  ;;  %465 = vmatpush.msra.mxu2 %v1416_v11  ;;  %v1462_v19 = vld [vmem:[%s2078_s1 + $0xd8] sm:$0xff]  ;;  %v1481_v22 = vld [vmem:[%s2078_s1 + $0x1d0] sm:$0xff]  ;;  %v1493_v24 = vld [vmem:[%s2078_s1 + $0x148] sm:$0xff] }
  0x61   : > { %435 = vmatpush.msra.mxu1 %v1426_v13  ;;  %407 = vmatpush.msra.mxu0 %v1421_v12  ;;  %v1486_v23 = vld [vmem:[%s2078_s1 + $0xd0] sm:$0xff]  ;;  %v1498_v25 = vld [vmem:[%s2078_s1 + $0x48] sm:$0xff]  ;;  %v1517_v28 = vld [vmem:[%s2078_s1 + $0x140] sm:$0xff] }
  0x62   : > { %494 = vmatpush.msra.mxu3 %v1433_v14  ;;  %466 = vmatpush.msra.mxu2 %v1445_v16  ;;  %v1505_v26 = vld [vmem:[%s2078_s1 + $0x1c8] sm:$0xff]  ;;  %v1522_v29 = vld [vmem:[%s2078_s1 + $0x40] sm:$0xff]  ;;  %v1541_v32 = vld [vmem:[%s2078_s1 + $0x138] sm:$0xff] }
  0x63   : > { %436 = vmatpush.msra.mxu1 %v1438_v15  ;;  %408 = vmatpush.msra.mxu0 %v1450_v17  ;;  %v1510_v27 = vld [vmem:[%s2078_s1 + $0xc8] sm:$0xff]  ;;  %v1529_v30 = vld [vmem:[%s2078_s1 + $0x1c0] sm:$0xff]  ;;  %v1546_v33 = vld [vmem:[%s2078_s1 + $0x38] sm:$0xff] }
  0x64   : > { %495 = vmatpush.msra.mxu3 %v1457_v18  ;;  %467 = vmatpush.msra.mxu2 %v1469_v20  ;;  %v1534_v31 = vld [vmem:[%s2078_s1 + $0xc0] sm:$0xff]  ;;  %v1553_v34 = vld [vmem:[%s2078_s1 + $0x1b8] sm:$0xff]  ;;  %v1565_v36 = vld [vmem:[%s2078_s1 + $0x130] sm:$0xff] }
  0x65   : > { %437 = vmatpush.msra.mxu1 %v1462_v19  ;;  %409 = vmatpush.msra.mxu0 %v1474_v21  ;;  %v1558_v35 = vld [vmem:[%s2078_s1 + $0xb8] sm:$0xff]  ;;  %v1570_v37 = vld [vmem:[%s2078_s1 + $0x30] sm:$0xff]  ;;  %v1589_v40 = vld [vmem:[%s2078_s1 + $0x128] sm:$0xff] }
  0x66   : > { %496 = vmatpush.msra.mxu3 %v1481_v22  ;;  %468 = vmatpush.msra.mxu2 %v1493_v24  ;;  %v1577_v38 = vld [vmem:[%s2078_s1 + $0x1b0] sm:$0xff]  ;;  %v1594_v41 = vld [vmem:[%s2078_s1 + $0x28] sm:$0xff]  ;;  %v1613_v44 = vld [vmem:[%s2078_s1 + $0x120] sm:$0xff] }
  0x67   : > { %438 = vmatpush.msra.mxu1 %v1486_v23  ;;  %410 = vmatpush.msra.mxu0 %v1498_v25  ;;  %v1582_v39 = vld [vmem:[%s2078_s1 + $0xb0] sm:$0xff]  ;;  %v1601_v42 = vld [vmem:[%s2078_s1 + $0x1a8] sm:$0xff]  ;;  %2097 = vst [vmem:[#allocation4_spill] sm:$0xff] %v1613_v44  ;;  %v1618_v45 = vld [vmem:[%s2078_s1 + $0x20] sm:$0xff] }
  0x68   : > { %497 = vmatpush.msra.mxu3 %v1505_v26  ;;  %469 = vmatpush.msra.mxu2 %v1517_v28  ;;  %v1606_v43 = vld [vmem:[%s2078_s1 + $0xa8] sm:$0xff]  ;;  %v1626_v46 = vld [vmem:[%s2078_s1 + $0x1a0] sm:$0xff]  ;;  %v1638_v48 = vld [vmem:[%s2078_s1 + $0x118] sm:$0xff] }
  0x69   : > { %439 = vmatpush.msra.mxu1 %v1510_v27  ;;  %411 = vmatpush.msra.mxu0 %v1522_v29  ;;  %v1631_v47 = vld [vmem:[%s2078_s1 + $0xa0] sm:$0xff]  ;;  %2099 = vst [vmem:[#allocation6_spill] sm:$0xff] %v1638_v48  ;;  %v1643_v49 = vld [vmem:[%s2078_s1 + $0x18] sm:$0xff]  ;;  %v1662_v52 = vld [vmem:[%s2078_s1 + $0x110] sm:$0xff] }
  0x6a   : > { %498 = vmatpush.msra.mxu3 %v1529_v30  ;;  %470 = vmatpush.msra.mxu2 %v1541_v32  ;;  %2098 = vst [vmem:[#allocation5_spill] sm:$0xff] %v1631_v47  ;;  %v1650_v50 = vld [vmem:[%s2078_s1 + $0x198] sm:$0xff]  ;;  %v1667_v53 = vld [vmem:[%s2078_s1 + $0x10] sm:$0xff]  ;;  %v1686_v56 = vld [vmem:[%s2078_s1 + $0x108] sm:$0xff] }
  0x6b   : > { %440 = vmatpush.msra.mxu1 %v1534_v31  ;;  %412 = vmatpush.msra.mxu0 %v1546_v33  ;;  %2100 = vst [vmem:[#allocation7_spill] sm:$0xff] %v1650_v50  ;;  %v1655_v51 = vld [vmem:[%s2078_s1 + $0x98] sm:$0xff]  ;;  %v1674_v54 = vld [vmem:[%s2078_s1 + $0x190] sm:$0xff]  ;;  %v1691_v57 = vld [vmem:[%s2078_s1 + $0x8] sm:$0xff] }
  0x6c   : > { %499 = vmatpush.msra.mxu3 %v1553_v34  ;;  %471 = vmatpush.msra.mxu2 %v1565_v36  ;;  %2101 = vst [vmem:[#allocation8_spill] sm:$0xff] %v1655_v51  ;;  %v1679_v55 = vld [vmem:[%s2078_s1 + $0x90] sm:$0xff]  ;;  %v1698_v58 = vld [vmem:[%s2078_s1 + $0x188] sm:$0xff]  ;;  %v1710_v60 = vld [vmem:[%s2078_s1 + $0x100] sm:$0xff] }
  0x6d   : > { %441 = vmatpush.msra.mxu1 %v1558_v35  ;;  %413 = vmatpush.msra.mxu0 %v1570_v37  ;;  %2102 = vst [vmem:[#allocation9_spill] sm:$0xff] %v1674_v54  ;;  %v1703_v59 = vld [vmem:[%s2078_s1 + $0x88] sm:$0xff]  ;;  %v1715_v61 = vld [vmem:[%s2078_s1] sm:$0xff]  ;;  %v390_v62 = vld [vmem:[%s1719_s25 + $0x10] sm:$0xff] }
  0x6e   : > { %500 = vmatpush.msra.mxu3 %v1577_v38  ;;  %472 = vmatpush.msra.mxu2 %v1589_v40  ;;  %2103 = vst [vmem:[#allocation10_spill] sm:$0xff] %v1679_v55  ;;  %v1725_v63 = vld [vmem:[%s2078_s1 + $0x180] sm:$0xff] }
  0x6f   : > { %442 = vmatpush.msra.mxu1 %v1582_v39  ;;  %414 = vmatpush.msra.mxu0 %v1594_v41  ;;  %2104 = vst [vmem:[#allocation11_spill] sm:$0xff] %v1691_v57 }
  0x70   : > { %501 = vmatpush.msra.mxu3 %v1601_v42  ;;  %473 = vmatpush.msra.mxu2 %v1613_v44  ;;  %2105 = vst [vmem:[#allocation12_spill] sm:$0xff] %v1703_v59 }
  0x71   : > { %443 = vmatpush.msra.mxu1 %v1606_v43  ;;  %415 = vmatpush.msra.mxu0 %v1618_v45 }
  0x72   : > { %502 = vmatpush.msra.mxu3 %v1626_v46  ;;  %474 = vmatpush.msra.mxu2 %v1638_v48 }
  0x73   : > { %444 = vmatpush.msra.mxu1 %v1631_v47  ;;  %416 = vmatpush.msra.mxu0 %v1643_v49 }
  0x74   : > { %503 = vmatpush.msra.mxu3 %v1650_v50  ;;  %475 = vmatpush.msra.mxu2 %v1662_v52 }
  0x75   : > { %445 = vmatpush.msra.mxu1 %v1655_v51  ;;  %417 = vmatpush.msra.mxu0 %v1667_v53 }
  0x76   : > { %504 = vmatpush.msra.mxu3 %v1674_v54  ;;  %476 = vmatpush.msra.mxu2 %v1686_v56  ;;  %v1738_v54 = vld [vmem:[%s2078_s1 + $0x80] sm:$0xff] }
  0x77   : > { %446 = vmatpush.msra.mxu1 %v1679_v55  ;;  %418 = vmatpush.msra.mxu0 %v1691_v57  ;;  %v388_v55 = vld [vmem:[%s1719_s25] sm:$0xff]  ;;  %v391_v57 = vld [vmem:[%s1719_s25 + $0x18] sm:$0xff] }
  0x78   : > { %505 = vmatpush.msra.mxu3 %v1698_v58  ;;  %477 = vmatpush.msra.mxu2 %v1710_v60 }
  0x79   : > { %447 = vmatpush.msra.mxu1 %v1703_v59  ;;  %419 = vmatpush.msra.mxu0 %v1715_v61  ;;  %v389_v59 = vld [vmem:[%s1719_s25 + $0x8] sm:$0xff] }
  0x7a   : > { %478 = vmatmul.f32.vlgmr.msra.gmra.mxu2 %v390_v62  ;;  %506 = vmatpush.msra.mxu3 %v1725_v63  ;;  %v393_v62 = vld [vmem:[%s1719_s25 + $0x28] sm:$0xff] }
  0x7b   : > { %603 = vmatpush.msrb.mxu2 %v1353_v0  ;;  %420 = vmatmul.f32.vlgmr.msra.gmra.mxu0 %v388_v55  ;;  %v394_v55 = vld [vmem:[%s1719_s25 + $0x30] sm:$0xff] }
  0x7c   : > { %507 = vmatmul.f32.vlgmr.msra.gmra.mxu3 %v391_v57  ;;  %545 = vmatpush.msrb.mxu0 %v1358_v1  ;;  %v392_v57 = vld [vmem:[%s1719_s25 + $0x20] sm:$0xff] }
  0x7d   : > { %604 = vmatpush.msrb.mxu2 %v1363_v2  ;;  %632 = vmatpush.msrb.mxu3 %v1370_v3 }
  0x7e   : > { %448 = vmatpush.msra.mxu1 %v1738_v54  ;;  %546 = vmatpush.msrb.mxu0 %v1375_v4 }
  0x7f   : > { %449 = vmatmul.f32.vlgmr.msra.gmra.mxu1 %v389_v59  ;;  %605 = vmatpush.msrb.mxu2 %v1387_v6  ;;  %v395_v59 = vld [vmem:[%s1719_s25 + $0x38] sm:$0xff] }
  0x80   : > { %574 = vmatpush.msrb.mxu1 %v1380_v5  ;;  %633 = vmatpush.msrb.mxu3 %v1392_v7 }
  0x81   : > { %547 = vmatpush.msrb.mxu0 %v1397_v8  ;;  %606 = vmatpush.msrb.mxu2 %v1416_v11 }
  0x82   : > { %575 = vmatpush.msrb.mxu1 %v1404_v9  ;;  %634 = vmatpush.msrb.mxu3 %v1409_v10 }
  0x83   : > { %481 = vmatmul.f32.gmra.mxu2 %v394_v55  ;;  %548 = vmatpush.msrb.mxu0 %v1421_v12  ;;  %v398_v55 = vld [vmem:[%s1719_s25 + $0x50] sm:$0xff] }
  0x84   : > { %576 = vmatpush.msrb.mxu1 %v1426_v13  ;;  %607 = vmatpush.msrb.mxu2 %v1445_v16 }
  0x85   : > { %635 = vmatpush.msrb.mxu3 %v1433_v14  ;;  %423 = vmatmul.f32.gmra.mxu0 %v392_v57  ;;  %v396_v57 = vld [vmem:[%s1719_s25 + $0x40] sm:$0xff] }
  0x86   : > { %510 = vmatmul.f32.gmra.mxu3 %v395_v59  ;;  %549 = vmatpush.msrb.mxu0 %v1450_v17  ;;  %v399_v59 = vld [vmem:[%s1719_s25 + $0x58] sm:$0xff] }
  0x87   : > { %577 = vmatpush.msrb.mxu1 %v1438_v15  ;;  %608 = vmatpush.msrb.mxu2 %v1469_v20 }
  0x88   : > { %636 = vmatpush.msrb.mxu3 %v1457_v18  ;;  %452 = vmatmul.f32.gmra.mxu1 %v393_v62  ;;  %v397_v62 = vld [vmem:[%s1719_s25 + $0x48] sm:$0xff] }
  0x89   : > { %550 = vmatpush.msrb.mxu0 %v1474_v21  ;;  %578 = vmatpush.msrb.mxu1 %v1462_v19 }
  0x8a   : > { %609 = vmatpush.msrb.mxu2 %v1493_v24  ;;  %637 = vmatpush.msrb.mxu3 %v1481_v22 }
  0x8b   : > { %551 = vmatpush.msrb.mxu0 %v1498_v25  ;;  %579 = vmatpush.msrb.mxu1 %v1486_v23 }
  0x8c   : > { %610 = vmatpush.msrb.mxu2 %v1517_v28  ;;  %638 = vmatpush.msrb.mxu3 %v1505_v26 }
  0x8d   : > { %484 = vmatmul.f32.gmra.mxu2 %v398_v55  ;;  %552 = vmatpush.msrb.mxu0 %v1522_v29  ;;  %v402_v55 = vld [vmem:[%s1719_s25 + $0x70] sm:$0xff] }
  0x8e   : > { %580 = vmatpush.msrb.mxu1 %v1510_v27  ;;  %611 = vmatpush.msrb.mxu2 %v1541_v32 }
  0x8f   : > { %639 = vmatpush.msrb.mxu3 %v1529_v30  ;;  %426 = vmatmul.f32.gmra.mxu0 %v396_v57  ;;  %v400_v57 = vld [vmem:[%s1719_s25 + $0x60] sm:$0xff] }
  0x90   : > { %513 = vmatmul.f32.gmra.mxu3 %v399_v59  ;;  %553 = vmatpush.msrb.mxu0 %v1546_v33  ;;  %v403_v59 = vld [vmem:[%s1719_s25 + $0x78] sm:$0xff] }
  0x91   : > { %581 = vmatpush.msrb.mxu1 %v1534_v31  ;;  %612 = vmatpush.msrb.mxu2 %v1565_v36 }
  0x92   : > { %640 = vmatpush.msrb.mxu3 %v1553_v34  ;;  %455 = vmatmul.f32.gmra.mxu1 %v397_v62  ;;  %v401_v62 = vld [vmem:[%s1719_s25 + $0x68] sm:$0xff] }
  0x93   : > { %554 = vmatpush.msrb.mxu0 %v1570_v37  ;;  %582 = vmatpush.msrb.mxu1 %v1558_v35 }
  0x94   : > { %613 = vmatpush.msrb.mxu2 %v1589_v40  ;;  %641 = vmatpush.msrb.mxu3 %v1577_v38 }
  0x95   : > { %555 = vmatpush.msrb.mxu0 %v1594_v41  ;;  %583 = vmatpush.msrb.mxu1 %v1582_v39 }
  0x96   : > { %614 = vmatpush.msrb.mxu2 %v1613_v44  ;;  %642 = vmatpush.msrb.mxu3 %v1601_v42 }
  0x97   : > { %487 = vmatmul.f32.gmra.mxu2 %v402_v55  ;;  %556 = vmatpush.msrb.mxu0 %v1618_v45  ;;  %v2106_v55 = vld [vmem:[#allocation9_spill] sm:$0xff] }
  0x98   : > { %584 = vmatpush.msrb.mxu1 %v1606_v43  ;;  %615 = vmatpush.msrb.mxu2 %v1638_v48 }
  0x99   : > { %643 = vmatpush.msrb.mxu3 %v1626_v46  ;;  %429 = vmatmul.f32.gmra.mxu0 %v400_v57  ;;  %v2107_v57 = vld [vmem:[#allocation11_spill] sm:$0xff] }
  0x9a   : > { %516 = vmatmul.f32.gmra.mxu3 %v403_v59  ;;  %557 = vmatpush.msrb.mxu0 %v1643_v49  ;;  %v2108_v59 = vld [vmem:[#allocation10_spill] sm:$0xff] }
  0x9b   : > { %585 = vmatpush.msrb.mxu1 %v1631_v47  ;;  %616 = vmatpush.msrb.mxu2 %v1662_v52  ;;  %v1063_v47 = vld [vmem:[%s1719_s25 + $0x90] sm:$0xff] }
  0x9c   : > { %644 = vmatpush.msrb.mxu3 %v1650_v50  ;;  %458 = vmatmul.f32.gmra.mxu1 %v401_v62  ;;  %v1061_v50 = vld [vmem:[%s1719_s25 + $0x80] sm:$0xff] }
  0x9d   : > { %558 = vmatpush.msrb.mxu0 %v1667_v53  ;;  %586 = vmatpush.msrb.mxu1 %v1655_v51  ;;  %v2109_v62 = vld [vmem:[#allocation12_spill] sm:$0xff]  ;;  %v1064_v51 = vld [vmem:[%s1719_s25 + $0x98] sm:$0xff] }
  0x9e   : > { %617 = vmatpush.msrb.mxu2 %v1686_v56  ;;  %645 = vmatpush.msrb.mxu3 %v2106_v55 }
  0x9f   : > { %559 = vmatpush.msrb.mxu0 %v2107_v57  ;;  %587 = vmatpush.msrb.mxu1 %v2108_v59  ;;  %v1062_v57 = vld [vmem:[%s1719_s25 + $0x88] sm:$0xff] }
  0xa0   : > { %618 = vmatpush.msrb.mxu2 %v1710_v60  ;;  %646 = vmatpush.msrb.mxu3 %v1698_v58 }
  0xa1   : > { %560 = vmatpush.msrb.mxu0 %v1715_v61  ;;  %588 = vmatpush.msrb.mxu1 %v2109_v62 }
  0xa2   : > { %619 = vmatmul.f32.vlgmr.msrb.gmra.mxu2 %v1063_v47  ;;  %647 = vmatpush.msrb.mxu3 %v1725_v63  ;;  %v1067_v47 = vld [vmem:[%s1719_s25 + $0xb0] sm:$0xff] }
  0xa3   : > { %752 = vmatpush.msra.mxu2 %v1353_v0  ;;  %561 = vmatmul.f32.vlgmr.msrb.gmra.mxu0 %v1061_v50  ;;  %v1065_v50 = vld [vmem:[%s1719_s25 + $0xa0] sm:$0xff] }
  0xa4   : > { %589 = vmatpush.msrb.mxu1 %v1738_v54  ;;  %648 = vmatmul.f32.vlgmr.msrb.gmra.mxu3 %v1064_v51  ;;  %v1068_v51 = vld [vmem:[%s1719_s25 + $0xb8] sm:$0xff] }
  0xa5   : > { %694 = vmatpush.msra.mxu0 %v1358_v1  ;;  %753 = vmatpush.msra.mxu2 %v1363_v2 }
  0xa6   : > { %781 = vmatpush.msra.mxu3 %v1370_v3  ;;  %590 = vmatmul.f32.vlgmr.msrb.gmra.mxu1 %v1062_v57  ;;  %v1066_v57 = vld [vmem:[%s1719_s25 + $0xa8] sm:$0xff] }
  0xa7   : > { %695 = vmatpush.msra.mxu0 %v1375_v4  ;;  %723 = vmatpush.msra.mxu1 %v1380_v5 }
  0xa8   : > { %754 = vmatpush.msra.mxu2 %v1387_v6  ;;  %782 = vmatpush.msra.mxu3 %v1392_v7 }
  0xa9   : > { %696 = vmatpush.msra.mxu0 %v1397_v8  ;;  %724 = vmatpush.msra.mxu1 %v1404_v9 }
  0xaa   : > { %755 = vmatpush.msra.mxu2 %v1416_v11  ;;  %783 = vmatpush.msra.mxu3 %v1409_v10 }
  0xab   : > { %622 = vmatmul.f32.gmra.mxu2 %v1067_v47  ;;  %697 = vmatpush.msra.mxu0 %v1421_v12  ;;  %v1071_v47 = vld [vmem:[%s1719_s25 + $0xd0] sm:$0xff] }
  0xac   : > { %725 = vmatpush.msra.mxu1 %v1426_v13  ;;  %756 = vmatpush.msra.mxu2 %v1445_v16 }
  0xad   : > { %784 = vmatpush.msra.mxu3 %v1433_v14  ;;  %564 = vmatmul.f32.gmra.mxu0 %v1065_v50  ;;  %v1069_v50 = vld [vmem:[%s1719_s25 + $0xc0] sm:$0xff] }
  0xae   : > { %651 = vmatmul.f32.gmra.mxu3 %v1068_v51  ;;  %698 = vmatpush.msra.mxu0 %v1450_v17  ;;  %v1072_v51 = vld [vmem:[%s1719_s25 + $0xd8] sm:$0xff] }
  0xaf   : > { %726 = vmatpush.msra.mxu1 %v1438_v15  ;;  %757 = vmatpush.msra.mxu2 %v1469_v20 }
  0xb0   : > { %785 = vmatpush.msra.mxu3 %v1457_v18  ;;  %593 = vmatmul.f32.gmra.mxu1 %v1066_v57  ;;  %v1070_v57 = vld [vmem:[%s1719_s25 + $0xc8] sm:$0xff] }
  0xb1   : > { %699 = vmatpush.msra.mxu0 %v1474_v21  ;;  %727 = vmatpush.msra.mxu1 %v1462_v19 }
  0xb2   : > { %758 = vmatpush.msra.mxu2 %v1493_v24  ;;  %786 = vmatpush.msra.mxu3 %v1481_v22 }
  0xb3   : > { %700 = vmatpush.msra.mxu0 %v1498_v25  ;;  %728 = vmatpush.msra.mxu1 %v1486_v23 }
  0xb4   : > { %759 = vmatpush.msra.mxu2 %v1517_v28  ;;  %787 = vmatpush.msra.mxu3 %v1505_v26 }
  0xb5   : > { %625 = vmatmul.f32.gmra.mxu2 %v1071_v47  ;;  %701 = vmatpush.msra.mxu0 %v1522_v29  ;;  %v1075_v47 = vld [vmem:[%s1719_s25 + $0xf0] sm:$0xff] }
  0xb6   : > { %729 = vmatpush.msra.mxu1 %v1510_v27  ;;  %760 = vmatpush.msra.mxu2 %v1541_v32 }
  0xb7   : > { %788 = vmatpush.msra.mxu3 %v1529_v30  ;;  %567 = vmatmul.f32.gmra.mxu0 %v1069_v50  ;;  %v1073_v50 = vld [vmem:[%s1719_s25 + $0xe0] sm:$0xff] }
  0xb8   : > { %654 = vmatmul.f32.gmra.mxu3 %v1072_v51  ;;  %702 = vmatpush.msra.mxu0 %v1546_v33  ;;  %v1076_v51 = vld [vmem:[%s1719_s25 + $0xf8] sm:$0xff] }
  0xb9   : > { %730 = vmatpush.msra.mxu1 %v1534_v31  ;;  %761 = vmatpush.msra.mxu2 %v1565_v36 }
  0xba   : > { %789 = vmatpush.msra.mxu3 %v1553_v34  ;;  %596 = vmatmul.f32.gmra.mxu1 %v1070_v57  ;;  %v1074_v57 = vld [vmem:[%s1719_s25 + $0xe8] sm:$0xff] }
  0xbb   : > { %703 = vmatpush.msra.mxu0 %v1570_v37  ;;  %731 = vmatpush.msra.mxu1 %v1558_v35 }
  0xbc   : > { %762 = vmatpush.msra.mxu2 %v1589_v40  ;;  %790 = vmatpush.msra.mxu3 %v1577_v38 }
  0xbd   : > { %704 = vmatpush.msra.mxu0 %v1594_v41  ;;  %732 = vmatpush.msra.mxu1 %v1582_v39 }
  0xbe   : > { %763 = vmatpush.msra.mxu2 %v1613_v44  ;;  %791 = vmatpush.msra.mxu3 %v1601_v42  ;;  %v2110_v44 = vld [vmem:[#allocation5_spill] sm:$0xff] }
  0xbf   : > { %628 = vmatmul.f32.gmra.mxu2 %v1075_v47  ;;  %705 = vmatpush.msra.mxu0 %v1618_v45  ;;  %v2111_v47 = vld [vmem:[#allocation7_spill] sm:$0xff] }
  0xc0   : > { %733 = vmatpush.msra.mxu1 %v1606_v43  ;;  %764 = vmatpush.msra.mxu2 %v1638_v48  ;;  %v2112_v48 = vld [vmem:[#allocation8_spill] sm:$0xff] }
  0xc1   : > { %792 = vmatpush.msra.mxu3 %v1626_v46  ;;  %570 = vmatmul.f32.gmra.mxu0 %v1073_v50  ;;  %v2113_v50 = vld [vmem:[#allocation11_spill] sm:$0xff] }
  0xc2   : > { %657 = vmatmul.f32.gmra.mxu3 %v1076_v51  ;;  %706 = vmatpush.msra.mxu0 %v1643_v49  ;;  %v1079_v51 = vld [vmem:[%s1719_s25 + $0x110] sm:$0xff] }
  0xc3   : > { %734 = vmatpush.msra.mxu1 %v2110_v44  ;;  %765 = vmatpush.msra.mxu2 %v1662_v52 }
  0xc4   : > { %793 = vmatpush.msra.mxu3 %v2111_v47  ;;  %599 = vmatmul.f32.gmra.mxu1 %v1074_v57  ;;  %v1077_v47 = vld [vmem:[%s1719_s25 + $0x100] sm:$0xff]  ;;  %v1080_v57 = vld [vmem:[%s1719_s25 + $0x118] sm:$0xff] }
  0xc5   : > { %707 = vmatpush.msra.mxu0 %v1667_v53  ;;  %735 = vmatpush.msra.mxu1 %v2112_v48 }
  0xc6   : > { %766 = vmatpush.msra.mxu2 %v1686_v56  ;;  %794 = vmatpush.msra.mxu3 %v2106_v55 }
  0xc7   : > { %708 = vmatpush.msra.mxu0 %v2113_v50  ;;  %736 = vmatpush.msra.mxu1 %v2108_v59  ;;  %v1078_v50 = vld [vmem:[%s1719_s25 + $0x108] sm:$0xff] }
  0xc8   : > { %767 = vmatpush.msra.mxu2 %v1710_v60  ;;  %795 = vmatpush.msra.mxu3 %v1698_v58 }
  0xc9   : > { %709 = vmatpush.msra.mxu0 %v1715_v61  ;;  %737 = vmatpush.msra.mxu1 %v2109_v62 }
  0xca   : > { %768 = vmatmul.f32.vlgmr.msra.gmra.mxu2 %v1079_v51  ;;  %796 = vmatpush.msra.mxu3 %v1725_v63 }
  0xcb   : > { %901 = vmatpush.msrb.mxu2 %v1353_v0  ;;  %710 = vmatmul.f32.vlgmr.msra.gmra.mxu0 %v1077_v47  ;;  %v1083_v0 = vld [vmem:[%s1719_s25 + $0x130] sm:$0xff] }
  0xcc   : > { %738 = vmatpush.msra.mxu1 %v1738_v54  ;;  %797 = vmatmul.f32.vlgmr.msra.gmra.mxu3 %v1080_v57 }
  0xcd   : > { %843 = vmatpush.msrb.mxu0 %v1358_v1  ;;  %902 = vmatpush.msrb.mxu2 %v1363_v2  ;;  %v1081_v1 = vld [vmem:[%s1719_s25 + $0x120] sm:$0xff]  ;;  %v1084_v2 = vld [vmem:[%s1719_s25 + $0x138] sm:$0xff] }
  0xce   : > { %930 = vmatpush.msrb.mxu3 %v1370_v3  ;;  %739 = vmatmul.f32.vlgmr.msra.gmra.mxu1 %v1078_v50  ;;  %v1082_v3 = vld [vmem:[%s1719_s25 + $0x128] sm:$0xff] }
  0xcf   : > { %844 = vmatpush.msrb.mxu0 %v1375_v4  ;;  %872 = vmatpush.msrb.mxu1 %v1380_v5  ;;  %v1087_v4 = vld [vmem:[%s1719_s25 + $0x150] sm:$0xff]  ;;  %v1085_v5 = vld [vmem:[%s1719_s25 + $0x140] sm:$0xff] }
  0xd0   : > { %903 = vmatpush.msrb.mxu2 %v1387_v6  ;;  %931 = vmatpush.msrb.mxu3 %v1392_v7  ;;  %v1088_v6 = vld [vmem:[%s1719_s25 + $0x158] sm:$0xff]  ;;  %v1086_v7 = vld [vmem:[%s1719_s25 + $0x148] sm:$0xff] }
  0xd1   : > { %845 = vmatpush.msrb.mxu0 %v1397_v8  ;;  %873 = vmatpush.msrb.mxu1 %v1404_v9  ;;  %v1091_v8 = vld [vmem:[%s1719_s25 + $0x170] sm:$0xff]  ;;  %v2114_v9 = vld [vmem:[#allocation4_spill] sm:$0xff] }
  0xd2   : > { %904 = vmatpush.msrb.mxu2 %v1416_v11  ;;  %932 = vmatpush.msrb.mxu3 %v1409_v10  ;;  %v1089_v10 = vld [vmem:[%s1719_s25 + $0x160] sm:$0xff]  ;;  %v1092_v11 = vld [vmem:[%s1719_s25 + $0x178] sm:$0xff] }
  0xd3   : > { %771 = vmatmul.f32.gmra.mxu2 %v1083_v0  ;;  %846 = vmatpush.msrb.mxu0 %v1421_v12  ;;  %v2115_v12 = vld [vmem:[#allocation6_spill] sm:$0xff] }
  0xd4   : > { %874 = vmatpush.msrb.mxu1 %v1426_v13  ;;  %905 = vmatpush.msrb.mxu2 %v1445_v16  ;;  %v1090_v13 = vld [vmem:[%s1719_s25 + $0x168] sm:$0xff]  ;;  %v1095_v16 = vld [vmem:[%s1719_s25 + $0x190] sm:$0xff] }
  0xd5   : > { %933 = vmatpush.msrb.mxu3 %v1433_v14  ;;  %713 = vmatmul.f32.gmra.mxu0 %v1081_v1  ;;  %v2116_v14 = vld [vmem:[#allocation7_spill] sm:$0xff] }
  0xd6   : > { %800 = vmatmul.f32.gmra.mxu3 %v1084_v2  ;;  %847 = vmatpush.msrb.mxu0 %v1450_v17  ;;  %v1093_v17 = vld [vmem:[%s1719_s25 + $0x180] sm:$0xff] }
  0xd7   : > { %875 = vmatpush.msrb.mxu1 %v1438_v15  ;;  %906 = vmatpush.msrb.mxu2 %v1469_v20  ;;  %v2117_v15 = vld [vmem:[#allocation11_spill] sm:$0xff]  ;;  %v1984_v20 = vld [vmem:[%s2079_s2] ss:$0 sm:$0xff] }
  0xd8   : > { %934 = vmatpush.msrb.mxu3 %v1457_v18  ;;  %742 = vmatmul.f32.gmra.mxu1 %v1082_v3  ;;  %v1096_v18 = vld [vmem:[%s1719_s25 + $0x198] sm:$0xff] }
  0xd9   : > { %848 = vmatpush.msrb.mxu0 %v1474_v21  ;;  %876 = vmatpush.msrb.mxu1 %v1462_v19  ;;  %v1094_v19 = vld [vmem:[%s1719_s25 + $0x188] sm:$0xff]  ;;  %v1099_v21 = vld [vmem:[%s1719_s25 + $0x1b0] sm:$0xff] }
  0xda   : > { %907 = vmatpush.msrb.mxu2 %v1493_v24  ;;  %935 = vmatpush.msrb.mxu3 %v1481_v22  ;;  %v1097_v22 = vld [vmem:[%s1719_s25 + $0x1a0] sm:$0xff]  ;;  %v1100_v24 = vld [vmem:[%s1719_s25 + $0x1b8] sm:$0xff] }
  0xdb   : > { %849 = vmatpush.msrb.mxu0 %v1498_v25  ;;  %877 = vmatpush.msrb.mxu1 %v1486_v23  ;;  %v1098_v25 = vld [vmem:[%s1719_s25 + $0x1a8] sm:$0xff] }
  0xdc   : > { %908 = vmatpush.msrb.mxu2 %v1517_v28  ;;  %936 = vmatpush.msrb.mxu3 %v1505_v26 }
  0xdd   : > { %774 = vmatmul.f32.gmra.mxu2 %v1087_v4  ;;  %850 = vmatpush.msrb.mxu0 %v1522_v29 }
  0xde   : > { %878 = vmatpush.msrb.mxu1 %v1510_v27  ;;  %909 = vmatpush.msrb.mxu2 %v1541_v32 }
  0xdf   : > { %937 = vmatpush.msrb.mxu3 %v1529_v30  ;;  %716 = vmatmul.f32.gmra.mxu0 %v1085_v5  ;;  %v1103_v30 = vld [vmem:[%s1719_s25 + $0x1d0] sm:$0xff] }
  0xe0   : > { %803 = vmatmul.f32.gmra.mxu3 %v1088_v6  ;;  %851 = vmatpush.msrb.mxu0 %v1546_v33  ;;  %v1101_v33 = vld [vmem:[%s1719_s25 + $0x1c0] sm:$0xff] }
  0xe1   : > { %879 = vmatpush.msrb.mxu1 %v1534_v31  ;;  %910 = vmatpush.msrb.mxu2 %v1565_v36 }
  0xe2   : > { %938 = vmatpush.msrb.mxu3 %v1553_v34  ;;  %745 = vmatmul.f32.gmra.mxu1 %v1086_v7  ;;  %v1104_v34 = vld [vmem:[%s1719_s25 + $0x1d8] sm:$0xff] }
  0xe3   : > { %852 = vmatpush.msrb.mxu0 %v1570_v37  ;;  %880 = vmatpush.msrb.mxu1 %v1558_v35  ;;  %v1102_v35 = vld [vmem:[%s1719_s25 + $0x1c8] sm:$0xff] }
  0xe4   : > { %911 = vmatpush.msrb.mxu2 %v1589_v40  ;;  %939 = vmatpush.msrb.mxu3 %v1577_v38 }
  0xe5   : > { %853 = vmatpush.msrb.mxu0 %v1594_v41  ;;  %881 = vmatpush.msrb.mxu1 %v1582_v39 }
  0xe6   : > { %912 = vmatpush.msrb.mxu2 %v2114_v9  ;;  %940 = vmatpush.msrb.mxu3 %v1601_v42  ;;  %v1107_v42 = vld [vmem:[%s1719_s25 + $0x1f0] sm:$0xff] }
  0xe7   : > { %777 = vmatmul.f32.gmra.mxu2 %v1091_v8  ;;  %854 = vmatpush.msrb.mxu0 %v1618_v45  ;;  %v1108_v45 = vld [vmem:[%s1719_s25 + $0x1f8] sm:$0xff] }
  0xe8   : > { %882 = vmatpush.msrb.mxu1 %v1606_v43  ;;  %913 = vmatpush.msrb.mxu2 %v2115_v12  ;;  %v1105_v43 = vld [vmem:[%s1719_s25 + $0x1e0] sm:$0xff] }
  0xe9   : > { %941 = vmatpush.msrb.mxu3 %v1626_v46  ;;  %719 = vmatmul.f32.gmra.mxu0 %v1089_v10  ;;  %v1106_v46 = vld [vmem:[%s1719_s25 + $0x1e8] sm:$0xff] }
  0xea   : > { %806 = vmatmul.f32.gmra.mxu3 %v1092_v11  ;;  %855 = vmatpush.msrb.mxu0 %v1643_v49 }
  0xeb   : > { %883 = vmatpush.msrb.mxu1 %v2110_v44  ;;  %914 = vmatpush.msrb.mxu2 %v1662_v52 }
  0xec   : > { %942 = vmatpush.msrb.mxu3 %v2116_v14  ;;  %748 = vmatmul.f32.gmra.mxu1 %v1090_v13 }
  0xed   : > { %856 = vmatpush.msrb.mxu0 %v1667_v53  ;;  %884 = vmatpush.msrb.mxu1 %v2112_v48 }
  0xee   : > { %915 = vmatpush.msrb.mxu2 %v1686_v56  ;;  %943 = vmatpush.msrb.mxu3 %v2106_v55 }
  0xef   : > { %857 = vmatpush.msrb.mxu0 %v2117_v15  ;;  %885 = vmatpush.msrb.mxu1 %v2108_v59 }
  0xf0   : > { %916 = vmatpush.msrb.mxu2 %v1710_v60  ;;  %944 = vmatpush.msrb.mxu3 %v1698_v58 }
  0xf1   : > { %858 = vmatpush.msrb.mxu0 %v1715_v61  ;;  %886 = vmatpush.msrb.mxu1 %v2109_v62 }
  0xf2   : > { %917 = vmatmul.f32.vlgmr.msrb.gmra.mxu2 %v1095_v16  ;;  %945 = vmatpush.msrb.mxu3 %v1725_v63 }
  0xf3   : > { %859 = vmatmul.f32.vlgmr.msrb.gmra.mxu0 %v1093_v17  ;;  %887 = vmatpush.msrb.mxu1 %v1738_v54 }
  0xf4   : > { %946 = vmatmul.f32.vlgmr.msrb.gmra.mxu3 %v1096_v18  ;;  %888 = vmatmul.f32.vlgmr.msrb.gmra.mxu1 %v1094_v19 }
  0xf8   : > { %v421_v23 = vpop.f32.mrf.mxu0 }
  0xf9   : > { %v422_v26 = vadd.f32 %v1984_v20, %v421_v23 }
  0xfa   : > { %920 = vmatmul.f32.gmra.mxu2 %v1099_v21 }
  0xfb   : > { %862 = vmatmul.f32.gmra.mxu0 %v1097_v22 }
  0xfc   : > { %949 = vmatmul.f32.gmra.mxu3 %v1100_v24  ;;  %891 = vmatmul.f32.gmra.mxu1 %v1098_v25  ;;  %v450_v27 = vpop.f32.mrf.mxu1 }
  0xfd   : > { %v451_v28 = vadd.f32 %v450_v27, %v422_v26  ;;  %v479_v29 = vpop.f32.mrf.mxu2 }
  0xff   : > { %v480_v31 = vadd.f32 %v479_v29, %v451_v28  ;;  %v508_v32 = vpop.f32.mrf.mxu3 }
 0x101   : > { %v1995_v36 = vadd.f32 %v508_v32, %v480_v31 }
 0x102   : > { %923 = vmatmul.f32.gmra.mxu2 %v1103_v30  ;;  %v424_v37 = vpop.f32.mrf.mxu0 }
 0x103   : > { %865 = vmatmul.f32.gmra.mxu0 %v1101_v33  ;;  %v425_v38 = vadd.f32 %v1984_v20, %v424_v37 }
 0x104   : > { %952 = vmatmul.f32.gmra.mxu3 %v1104_v34  ;;  %894 = vmatmul.f32.gmra.mxu1 %v1102_v35 }
 0x105   : > { %v453_v39 = vpop.f32.mrf.mxu1 }
 0x106   : > { %v454_v40 = vadd.f32 %v453_v39, %v425_v38  ;;  %v482_v41 = vpop.f32.mrf.mxu2 }
 0x108   : > { %v483_v44 = vadd.f32 %v482_v41, %v454_v40 }
 0x109   : > { %v511_v48 = vpop.f32.mrf.mxu3 }
 0x10a   : > { %926 = vmatmul.f32.gmra.mxu2 %v1107_v42  ;;  %v2002_v49 = vadd.f32 %v511_v48, %v483_v44 }
 0x10b   : > { %868 = vmatmul.f32.gmra.mxu0 %v1105_v43 }
 0x10c   : > { %955 = vmatmul.f32.gmra.mxu3 %v1108_v45  ;;  %897 = vmatmul.f32.gmra.mxu1 %v1106_v46  ;;  %v427_v52 = vpop.f32.mrf.mxu0 }
 0x10d   : > { %v428_v53 = vadd.f32 %v1984_v20, %v427_v52 }
 0x10f   : > { %v456_v54 = vpop.f32.mrf.mxu1 }
 0x110   : > { %v457_v56 = vadd.f32 %v456_v54, %v428_v53  ;;  %v485_v58 = vpop.f32.mrf.mxu2 }
 0x112   : > { %v486_v60 = vadd.f32 %v485_v58, %v457_v56 }
 0x113   : > { %v514_v61 = vpop.f32.mrf.mxu3 }
 0x114   : > { %v2005_v63 = vadd.f32 %v514_v61, %v486_v60 }
 0x116   : > { %v430_v55 = vpop.f32.mrf.mxu0 }
 0x117   : > { %v431_v59 = vadd.f32 %v1984_v20, %v430_v55 }
 0x119   : > { %v459_v62 = vpop.f32.mrf.mxu1 }
 0x11a   : > { %v460_v47 = vadd.f32 %v459_v62, %v431_v59  ;;  %v488_v50 = vpop.f32.mrf.mxu2  ;;  %v520_v59 = vmax.f32 %v1995_v36, 0.0 }
 0x11c   : > { %v489_v51 = vadd.f32 %v488_v50, %v460_v47 }
 0x11d   : > { %v517_v57 = vpop.f32.mrf.mxu3 }
 0x11e   : > { %v2008_v0 = vadd.f32 %v517_v57, %v489_v51 }
 0x120   : > { %v562_v1 = vpop.f32.mrf.mxu0 }
 0x121   : > { %v563_v30 = vadd.f32 %v1984_v20, %v562_v1 }
 0x123   : > { %v591_v2 = vpop.f32.mrf.mxu1 }
 0x124   : > { %v592_v33 = vadd.f32 %v591_v2, %v563_v30 }
 0x125   : > { %v620_v3 = vpop.f32.mrf.mxu2 }
 0x126   : > { %v621_v38 = vadd.f32 %v620_v3, %v592_v33 }
 0x127   : > { %v649_v4 = vpop.f32.mrf.mxu3 }
 0x128   : > { %v650_v43 = vadd.f32 %v649_v4, %v621_v38 }
 0x12a   : > { %v565_v5 = vpop.f32.mrf.mxu0  ;;  %v661_v56 = vmax.f32 %v650_v43, 0.0 }
 0x12b   : > { %v566_v39 = vadd.f32 %v1984_v20, %v565_v5 }
 0x12c   : > { %v669_v57 = vadd.f32 %v661_v56, %v520_v59 }
 0x12d   : > { %v594_v6 = vpop.f32.mrf.mxu1 }
 0x12e   : > { %v623_v7 = vpop.f32.mrf.mxu2  ;;  %v595_v44 = vadd.f32 %v594_v6, %v566_v39 }
 0x130   : > { %v624_v58 = vadd.f32 %v623_v7, %v595_v44 }
 0x131   : > { %v652_v8 = vpop.f32.mrf.mxu3 }
 0x132   : > { %v653_v1 = vadd.f32 %v652_v8, %v624_v58  ;;  %v521_v8 = vmax.f32 %v2002_v49, 0.0 }
 0x134   : > { %v568_v9 = vpop.f32.mrf.mxu0 }
 0x135   : > { %v569_v60 = vadd.f32 %v1984_v20, %v568_v9 }
 0x137   : > { %v597_v10 = vpop.f32.mrf.mxu1 }
 0x138   : > { %v2010_v11 = vpop.f32.mrf.mxu2  ;;  %v598_v2 = vadd.f32 %v597_v10, %v569_v60 }
 0x13b   : > { %v2012_v12 = vpop.f32.mrf.mxu3 }
 0x13e   : > { %v2014_v13 = vpop.f32.mrf.mxu0 }
 0x141   : > { %v2016_v14 = vpop.f32.mrf.mxu1 }
 0x142   : > { %v2018_v15 = vpop.f32.mrf.mxu2 }
 0x145   : > { %v2020_v16 = vpop.f32.mrf.mxu3 }
 0x148   : > { %v711_v17 = vpop.f32.mrf.mxu0 }
 0x149   : > { %v712_v31 = vadd.f32 %v1984_v20, %v711_v17 }
 0x14b   : > { %v740_v18 = vpop.f32.mrf.mxu1 }
 0x14c   : > { %v741_v35 = vadd.f32 %v740_v18, %v712_v31 }
 0x14d   : > { %v769_v19 = vpop.f32.mrf.mxu2 }
 0x14e   : > { %v770_v42 = vadd.f32 %v769_v19, %v741_v35  ;;  %v662_v19 = vmax.f32 %v653_v1, 0.0 }
 0x14f   : > { %v798_v21 = vpop.f32.mrf.mxu3 }
 0x150   : > { %v799_v53 = vadd.f32 %v798_v21, %v770_v42  ;;  %v627_v21 = vadd.f32 %v2010_v11, %v598_v2  ;;  %v670_v31 = vadd.f32 %v662_v19, %v521_v8 }
 0x152   : > { %v714_v22 = vpop.f32.mrf.mxu0  ;;  %v810_v62 = vmax.f32 %v799_v53, 0.0 }
 0x153   : > { %v715_v40 = vadd.f32 %v1984_v20, %v714_v22  ;;  %v572_v22 = vadd.f32 %v1984_v20, %v2014_v13  ;;  %v656_v13 = vadd.f32 %v2012_v12, %v627_v21 }
 0x154   : > { %v818_v9 = vadd.f32 %v810_v62, %v669_v57 }
 0x155   : > { %v743_v23 = vpop.f32.mrf.mxu1  ;;  %v601_v33 = vadd.f32 %v2016_v14, %v572_v22  ;;  %v663_v44 = vmax.f32 %v656_v13, 0.0  ;;  %v522_v14 = vmax.f32 %v2005_v63, 0.0 }
 0x156   : > { %v772_v24 = vpop.f32.mrf.mxu2  ;;  %v744_v46 = vadd.f32 %v743_v23, %v715_v40 }
 0x157   : > { %v671_v58 = vadd.f32 %v663_v44, %v522_v14 }
 0x158   : > { %v773_v61 = vadd.f32 %v772_v24, %v744_v46 }
 0x159   : > { %v801_v25 = vpop.f32.mrf.mxu3 }
 0x15a   : > { %v802_v5 = vadd.f32 %v801_v25, %v773_v61 }
 0x15c   : > { %v717_v26 = vpop.f32.mrf.mxu0  ;;  %v811_v10 = vmax.f32 %v802_v5, 0.0 }
 0x15d   : > { %v718_v47 = vadd.f32 %v1984_v20, %v717_v26 }
 0x15e   : > { %v819_v40 = vadd.f32 %v811_v10, %v670_v31 }
 0x15f   : > { %v746_v27 = vpop.f32.mrf.mxu1 }
 0x160   : > { %v775_v28 = vpop.f32.mrf.mxu2  ;;  %v747_v17 = vadd.f32 %v746_v27, %v718_v47 }
 0x162   : > { %v776_v25 = vadd.f32 %v775_v28, %v747_v17 }
 0x163   : > { %v2022_v29 = vpop.f32.mrf.mxu3 }
 0x164   : > { %v805_v42 = vadd.f32 %v2022_v29, %v776_v25 }
 0x166   : > { %v720_v32 = vpop.f32.mrf.mxu0 }
 0x167   : > { %v721_v26 = vadd.f32 %v1984_v20, %v720_v32 }
 0x169   : > { %v2026_v34 = vpop.f32.mrf.mxu1 }
 0x16a   : > { %v2028_v37 = vpop.f32.mrf.mxu2  ;;  %v750_v28 = vadd.f32 %v2026_v34, %v721_v26 }
 0x16d   : > { %v2032_v41 = vpop.f32.mrf.mxu3 }
 0x170   : > { %v860_v45 = vpop.f32.mrf.mxu0 }
 0x171   : > { %v861_v48 = vadd.f32 %v1984_v20, %v860_v45  ;;  %v889_v52 = vpop.f32.mrf.mxu1  ;;  %v630_v45 = vadd.f32 %v2018_v15, %v601_v33 }
 0x173   : > { %v890_v54 = vadd.f32 %v889_v52, %v861_v48  ;;  %v812_v48 = vmax.f32 %v805_v42, 0.0  ;;  %v779_v52 = vadd.f32 %v2028_v37, %v750_v28  ;;  %v659_v29 = vadd.f32 %v2020_v16, %v630_v45 }
 0x175   : > { %v918_v55 = vpop.f32.mrf.mxu2  ;;  %v808_v63 = vadd.f32 %v2032_v41, %v779_v52  ;;  %v664_v37 = vmax.f32 %v659_v29, 0.0 }
 0x176   : > { %v919_v50 = vadd.f32 %v918_v55, %v890_v54  ;;  %v820_v55 = vadd.f32 %v812_v48, %v671_v58 }
 0x177   : > { %v947_v51 = vpop.f32.mrf.mxu3  ;;  %v813_v57 = vmax.f32 %v808_v63, 0.0 }
 0x178   : > { %v948_v3 = vadd.f32 %v947_v51, %v919_v50  ;;  %v863_v4 = vpop.f32.mrf.mxu0  ;;  %v523_v51 = vmax.f32 %v2008_v0, 0.0 }
 0x179   : > { %v864_v6 = vadd.f32 %v1984_v20, %v863_v4  ;;  %v892_v7 = vpop.f32.mrf.mxu1 }
 0x17a   : > { %v959_v18 = vmax.f32 %v948_v3, 0.0  ;;  %v672_v3 = vadd.f32 %v664_v37, %v523_v51 }
 0x17b   : > { %v893_v36 = vadd.f32 %v892_v7, %v864_v6 }
 0x17c   : > { %v967_v23 = vadd.f32 %v959_v18, %v818_v9 }
 0x17d   : > { %v921_v24 = vpop.f32.mrf.mxu2 }
 0x17e   : > { %v979_v27 = vmul.f32 0.25, %v967_v23  ;;  %v922_v30 = vadd.f32 %v921_v24, %v893_v36 }
 0x17f   : > { %v950_v11 = vpop.f32.mrf.mxu3 }
 0x180   : > { %983 = vst [vmem:[%s2048_s7] sm:$0xff] %v979_v27  ;;  %v951_v49 = vadd.f32 %v950_v11, %v922_v30  ;;  %v866_v35 = vpop.f32.mrf.mxu0 }
 0x181   : > { %v867_v38 = vadd.f32 %v1984_v20, %v866_v35  ;;  %v895_v39 = vpop.f32.mrf.mxu1 }
 0x182   : > { %v960_v32 = vmax.f32 %v951_v49, 0.0 }
 0x183   : > { %v896_v43 = vadd.f32 %v895_v39, %v867_v38 }
 0x184   : > { %v968_v12 = vadd.f32 %v960_v32, %v819_v40 }
 0x185   : > { %v924_v46 = vpop.f32.mrf.mxu2 }
 0x186   : > { %v980_v53 = vmul.f32 0.25, %v968_v12  ;;  %v925_v54 = vadd.f32 %v924_v46, %v896_v43 }
 0x187   : > { %v953_v56 = vpop.f32.mrf.mxu3 }
 0x188   : > { %984 = vst [vmem:[%s2048_s7 + $0x8] sm:$0xff] %v980_v53  ;;  %v954_v34 = vadd.f32 %v953_v56, %v925_v54  ;;  %v869_v60 = vpop.f32.mrf.mxu0 }
 0x189   : > { %v870_v61 = vadd.f32 %v1984_v20, %v869_v60  ;;  %v898_v15 = vpop.f32.mrf.mxu1  ;;  %v821_v20 = vadd.f32 %v813_v57, %v672_v3 }
 0x18a   : > { %v961_v59 = vmax.f32 %v954_v34, 0.0 }
 0x18b   : > { %v899_v62 = vadd.f32 %v898_v15, %v870_v61 }
 0x18c   : > { %v969_v47 = vadd.f32 %v961_v59, %v820_v55 }
 0x18d   : > { %v927_v50 = vpop.f32.mrf.mxu2 }
 0x18e   : > { %v981_v16 = vmul.f32 0.25, %v969_v47  ;;  %v928_v1 = vadd.f32 %v927_v50, %v899_v62 }
 0x18f   : > { %v956_v2 = vpop.f32.mrf.mxu3 }
 0x190   : > { %985 = vst [vmem:[%s2048_s7 + $0x10] sm:$0xff] %v981_v16  ;;  %v957_v4 = vadd.f32 %v956_v2, %v928_v1 }
 0x192   : > { %v962_v5 = vmax.f32 %v957_v4, 0.0 }
 0x194   : > { %v970_v6 = vadd.f32 %v962_v5, %v821_v20 }
 0x196   : > { %v982_v7 = vmul.f32 0.25, %v970_v6 }
 0x198   : > { %986 = vst [vmem:[%s2048_s7 + $0x18] sm:$0xff] %v982_v7 }
 0x199 PF: > { %p10_p9 = scmp.ge.s32.totalorder %s1199_s16, 4   ;;  %s2118_s12 = smov %s1156_s13 }
 0x19a   : > { %s2119_s13 = smov %s1208_s19  ;;  %s2120_s14 = smov %s1199_s16 }
 0x19b   :  { %12 = sbr.rel (!%p10_p9) target bundleno = 2 (0x2), region = 93 }

// kernel: lenet_forward.5
= control target key start
LH: loop header
LB: loop body
LE: loop exit
PB: predicated region body
PF: predicated region fallthrough
CT: control target
= control target key end

     0   :  { %vm137_vm0 = vcmask 261120   ;;  %s871_s1 = inlined_call_operand.vmem [shape: f32[800,128], index: 1, kind: input, shape index: {}]   ;;  %s872_s0 = inlined_call_operand.vmem [shape: f32[8,800], index: 0, kind: input, shape index: {}]   ;;  %s873_s2 = inlined_call_operand.vmem [shape: f32[1,128], index: 2, kind: input, shape index: {}]   ;;  %s874_s3 = inlined_call_operand.vmem [shape: f32[128,128], index: 3, kind: input, shape index: {}]   ;;  %s875_s4 = inlined_call_operand.vmem [shape: f32[1,128], index: 4, kind: input, shape index: {}]   ;;  %s876_s5 = inlined_call_operand.vmem [shape: f32[128,128], index: 5, kind: input, shape index: {}]   ;;  %s877_s6 = inlined_call_operand.vmem [shape: f32[1,128], index: 6, kind: input, shape index: {}]   ;;  %s878_s7 = inlined_call_operand.vmem [shape: f32[8,128], index: 7, kind: output, shape index: {}]  }
   0x1   :  { %v48_v0 = vld [vmem:[%s871_s1 + $0x78] sm:$0xff]  ;;  %v47_v1 = vld [vmem:[%s871_s1 + $0x70] sm:$0xff]  ;;  %v46_v4 = vld [vmem:[%s871_s1 + $0x68] sm:$0xff] }
   0x2   :  { %v64_v2 = vld [vmem:[%s871_s1 + $0xf8] sm:$0xff]  ;;  %141 = vmatpush.msra.mxu0 %v48_v0  ;;  %v63_v3 = vld [vmem:[%s871_s1 + $0xf0] sm:$0xff]  ;;  %v62_v5 = vld [vmem:[%s871_s1 + $0xe8] sm:$0xff] }
   0x3   :  { %161 = vmatpush.msra.mxu1 %v64_v2  ;;  %v45_v6 = vld [vmem:[%s871_s1 + $0x60] sm:$0xff]  ;;  %v44_v8 = vld [vmem:[%s871_s1 + $0x58] sm:$0xff]  ;;  %v43_v10 = vld [vmem:[%s871_s1 + $0x50] sm:$0xff] }
   0x4   :  { %142 = vmatpush.msra.mxu0 %v47_v1  ;;  %v61_v7 = vld [vmem:[%s871_s1 + $0xe0] sm:$0xff]  ;;  %v60_v9 = vld [vmem:[%s871_s1 + $0xd8] sm:$0xff]  ;;  %v59_v12 = vld [vmem:[%s871_s1 + $0xd0] sm:$0xff] }
   0x5   :  { %162 = vmatpush.msra.mxu1 %v63_v3  ;;  %v80_v11 = vld [vmem:[%s871_s1 + $0x178] sm:$0xff]  ;;  %v79_v13 = vld [vmem:[%s871_s1 + $0x170] sm:$0xff]  ;;  %v78_v15 = vld [vmem:[%s871_s1 + $0x168] sm:$0xff] }
   0x6   :  { %143 = vmatpush.msra.mxu0 %v46_v4  ;;  %181 = vmatpush.msra.mxu2 %v80_v11  ;;  %v96_v14 = vld [vmem:[%s871_s1 + $0x1f8] sm:$0xff]  ;;  %v95_v16 = vld [vmem:[%s871_s1 + $0x1f0] sm:$0xff]  ;;  %v42_v17 = vld [vmem:[%s871_s1 + $0x48] sm:$0xff] }
   0x7   :  { %163 = vmatpush.msra.mxu1 %v62_v5  ;;  %v58_v18 = vld [vmem:[%s871_s1 + $0xc8] sm:$0xff]  ;;  %201 = vmatpush.msra.mxu3 %v96_v14  ;;  %v77_v19 = vld [vmem:[%s871_s1 + $0x160] sm:$0xff]  ;;  %v76_v23 = vld [vmem:[%s871_s1 + $0x158] sm:$0xff] }
   0x8   :  { %144 = vmatpush.msra.mxu0 %v45_v6  ;;  %182 = vmatpush.msra.mxu2 %v79_v13  ;;  %v94_v20 = vld [vmem:[%s871_s1 + $0x1e8] sm:$0xff]  ;;  %v41_v21 = vld [vmem:[%s871_s1 + $0x40] sm:$0xff]  ;;  %v40_v25 = vld [vmem:[%s871_s1 + $0x38] sm:$0xff] }
   0x9   :  { %164 = vmatpush.msra.mxu1 %v61_v7  ;;  %v57_v22 = vld [vmem:[%s871_s1 + $0xc0] sm:$0xff]  ;;  %202 = vmatpush.msra.mxu3 %v95_v16  ;;  %v56_v26 = vld [vmem:[%s871_s1 + $0xb8] sm:$0xff]  ;;  %v75_v27 = vld [vmem:[%s871_s1 + $0x150] sm:$0xff] }
   0xa   :  { %145 = vmatpush.msra.mxu0 %v44_v8  ;;  %183 = vmatpush.msra.mxu2 %v78_v15  ;;  %v93_v24 = vld [vmem:[%s871_s1 + $0x1e0] sm:$0xff]  ;;  %v92_v28 = vld [vmem:[%s871_s1 + $0x1d8] sm:$0xff]  ;;  %v39_v29 = vld [vmem:[%s871_s1 + $0x30] sm:$0xff] }
   0xb   :  { %165 = vmatpush.msra.mxu1 %v60_v9  ;;  %203 = vmatpush.msra.mxu3 %v94_v20  ;;  %v55_v30 = vld [vmem:[%s871_s1 + $0xb0] sm:$0xff]  ;;  %v74_v31 = vld [vmem:[%s871_s1 + $0x148] sm:$0xff]  ;;  %v73_v35 = vld [vmem:[%s871_s1 + $0x140] sm:$0xff] }
   0xc   :  { %146 = vmatpush.msra.mxu0 %v43_v10  ;;  %184 = vmatpush.msra.mxu2 %v77_v19  ;;  %v91_v32 = vld [vmem:[%s871_s1 + $0x1d0] sm:$0xff]  ;;  %v38_v33 = vld [vmem:[%s871_s1 + $0x28] sm:$0xff]  ;;  %v37_v37 = vld [vmem:[%s871_s1 + $0x20] sm:$0xff] }
   0xd   :  { %166 = vmatpush.msra.mxu1 %v59_v12  ;;  %204 = vmatpush.msra.mxu3 %v93_v24  ;;  %v54_v34 = vld [vmem:[%s871_s1 + $0xa8] sm:$0xff]  ;;  %v53_v38 = vld [vmem:[%s871_s1 + $0xa0] sm:$0xff]  ;;  %v72_v39 = vld [vmem:[%s871_s1 + $0x138] sm:$0xff] }
   0xe   :  { %147 = vmatpush.msra.mxu0 %v42_v17  ;;  %185 = vmatpush.msra.mxu2 %v76_v23  ;;  %v90_v36 = vld [vmem:[%s871_s1 + $0x1c8] sm:$0xff]  ;;  %v89_v40 = vld [vmem:[%s871_s1 + $0x1c0] sm:$0xff]  ;;  %v36_v41 = vld [vmem:[%s871_s1 + $0x18] sm:$0xff] }
   0xf   :  { %167 = vmatpush.msra.mxu1 %v58_v18  ;;  %205 = vmatpush.msra.mxu3 %v92_v28  ;;  %v52_v42 = vld [vmem:[%s871_s1 + $0x98] sm:$0xff]  ;;  %v71_v43 = vld [vmem:[%s871_s1 + $0x130] sm:$0xff]  ;;  %v70_v47 = vld [vmem:[%s871_s1 + $0x128] sm:$0xff] }
  0x10   :  { %148 = vmatpush.msra.mxu0 %v41_v21  ;;  %186 = vmatpush.msra.mxu2 %v75_v27  ;;  %v88_v44 = vld [vmem:[%s871_s1 + $0x1b8] sm:$0xff]  ;;  %v35_v45 = vld [vmem:[%s871_s1 + $0x10] sm:$0xff]  ;;  %v34_v49 = vld [vmem:[%s871_s1 + $0x8] sm:$0xff] }
  0x11   :  { %168 = vmatpush.msra.mxu1 %v57_v22  ;;  %206 = vmatpush.msra.mxu3 %v91_v32  ;;  %v51_v46 = vld [vmem:[%s871_s1 + $0x90] sm:$0xff]  ;;  %v50_v50 = vld [vmem:[%s871_s1 + $0x88] sm:$0xff]  ;;  %v69_v51 = vld [vmem:[%s871_s1 + $0x120] sm:$0xff] }
  0x12   :  { %149 = vmatpush.msra.mxu0 %v40_v25  ;;  %187 = vmatpush.msra.mxu2 %v74_v31  ;;  %v87_v48 = vld [vmem:[%s871_s1 + $0x1b0] sm:$0xff]  ;;  %v86_v52 = vld [vmem:[%s871_s1 + $0x1a8] sm:$0xff]  ;;  %v33_v53 = vld [vmem:[%s871_s1] sm:$0xff] }
  0x13   :  { %169 = vmatpush.msra.mxu1 %v56_v26  ;;  %207 = vmatpush.msra.mxu3 %v90_v36  ;;  %v49_v54 = vld [vmem:[%s871_s1 + $0x80] sm:$0xff]  ;;  %v112_v55 = vld [vmem:[%s871_s1 + $0x278] sm:$0xff]  ;;  %v111_v59 = vld [vmem:[%s871_s1 + $0x270] sm:$0xff] }
  0x14   :  { %150 = vmatpush.msra.mxu0 %v39_v29  ;;  %188 = vmatpush.msra.mxu2 %v73_v35  ;;  %v128_v56 = vld [vmem:[%s871_s1 + $0x2f8] sm:$0xff]  ;;  %v85_v58 = vld [vmem:[%s871_s1 + $0x1a0] sm:$0xff]  ;;  %v127_v60 = vld [vmem:[%s871_s1 + $0x2f0] sm:$0xff] }
  0x15   :  { %170 = vmatpush.msra.mxu1 %v55_v30  ;;  %208 = vmatpush.msra.mxu3 %v89_v40  ;;  %v68_v57 = vld [vmem:[%s871_s1 + $0x118] sm:$0xff]  ;;  %v67_v61 = vld [vmem:[%s871_s1 + $0x110] sm:$0xff]  ;;  %v110_v63 = vld [vmem:[%s871_s1 + $0x268] sm:$0xff] }
  0x16   :  { %151 = vmatpush.msra.mxu0 %v38_v33  ;;  %189 = vmatpush.msra.mxu2 %v72_v39  ;;  %v84_v62 = vld [vmem:[%s871_s1 + $0x198] sm:$0xff]  ;;  %v126_v0 = vld [vmem:[%s871_s1 + $0x2e8] sm:$0xff]  ;;  %v83_v2 = vld [vmem:[%s871_s1 + $0x190] sm:$0xff] }
  0x17   :  { %171 = vmatpush.msra.mxu1 %v54_v34  ;;  %209 = vmatpush.msra.mxu3 %v88_v44  ;;  %v66_v1 = vld [vmem:[%s871_s1 + $0x108] sm:$0xff]  ;;  %v109_v3 = vld [vmem:[%s871_s1 + $0x260] sm:$0xff]  ;;  %v108_v7 = vld [vmem:[%s871_s1 + $0x258] sm:$0xff] }
  0x18   :  { %152 = vmatpush.msra.mxu0 %v37_v37  ;;  %190 = vmatpush.msra.mxu2 %v71_v43  ;;  %v125_v4 = vld [vmem:[%s871_s1 + $0x2e0] sm:$0xff]  ;;  %v82_v6 = vld [vmem:[%s871_s1 + $0x188] sm:$0xff]  ;;  %v124_v8 = vld [vmem:[%s871_s1 + $0x2d8] sm:$0xff] }
  0x19   :  { %172 = vmatpush.msra.mxu1 %v53_v38  ;;  %210 = vmatpush.msra.mxu3 %v87_v48  ;;  %v65_v5 = vld [vmem:[%s871_s1 + $0x100] sm:$0xff]  ;;  %v28_v9 = vld [vmem:[%s872_s0 + $0x10] sm:$0xff]  ;;  %v132_v13 = vld [vmem:[%s871_s1 + $0x318] sm:$0xff] }
  0x1a   :  { %153 = vmatpush.msra.mxu0 %v36_v41  ;;  %191 = vmatpush.msra.mxu2 %v70_v47  ;;  %v81_v10 = vld [vmem:[%s871_s1 + $0x180] sm:$0xff]  ;;  %v107_v11 = vld [vmem:[%s871_s1 + $0x250] sm:$0xff]  ;;  %v106_v15 = vld [vmem:[%s871_s1 + $0x248] sm:$0xff] }
  0x1b   :  { %173 = vmatpush.msra.mxu1 %v52_v42  ;;  %211 = vmatpush.msra.mxu3 %v86_v52  ;;  %v123_v12 = vld [vmem:[%s871_s1 + $0x2d0] sm:$0xff]  ;;  %v26_v14 = vld [vmem:[%s872_s0] sm:$0xff]  ;;  %v122_v16 = vld [vmem:[%s871_s1 + $0x2c8] sm:$0xff] }
  0x1c   :  { %154 = vmatpush.msra.mxu0 %v35_v45  ;;  %192 = vmatpush.msra.mxu2 %v69_v51  ;;  %v29_v17 = vld [vmem:[%s872_s0 + $0x18] sm:$0xff]  ;;  %v131_v18 = vld [vmem:[%s871_s1 + $0x310] sm:$0xff]  ;;  %v105_v19 = vld [vmem:[%s871_s1 + $0x240] sm:$0xff] }
  0x1d   :  { %174 = vmatpush.msra.mxu1 %v51_v46  ;;  %212 = vmatpush.msra.mxu3 %v85_v58  ;;  %v121_v20 = vld [vmem:[%s871_s1 + $0x2c0] sm:$0xff]  ;;  %v27_v21 = vld [vmem:[%s872_s0 + $0x8] sm:$0xff]  ;;  %v104_v23 = vld [vmem:[%s871_s1 + $0x238] sm:$0xff] }
  0x1e   :  { %155 = vmatpush.msra.mxu0 %v34_v49  ;;  %193 = vmatpush.msra.mxu2 %v68_v57  ;;  %v130_v22 = vld [vmem:[%s871_s1 + $0x308] sm:$0xff]  ;;  %v120_v24 = vld [vmem:[%s871_s1 + $0x2b8] sm:$0xff]  ;;  %v129_v25 = vld [vmem:[%s871_s1 + $0x300] sm:$0xff] }
  0x1f   :  { %175 = vmatpush.msra.mxu1 %v50_v50  ;;  %213 = vmatpush.msra.mxu3 %v84_v62  ;;  %v297_v26 = vld [vmem:[%s874_s3 + $0x78] sm:$0xff]  ;;  %v103_v27 = vld [vmem:[%s871_s1 + $0x230] sm:$0xff]  ;;  %v102_v31 = vld [vmem:[%s871_s1 + $0x228] sm:$0xff] }
  0x20   :  { %156 = vmatpush.msra.mxu0 %v33_v53  ;;  %194 = vmatpush.msra.mxu2 %v67_v61  ;;  %v119_v28 = vld [vmem:[%s871_s1 + $0x2b0] sm:$0xff]  ;;  %v118_v32 = vld [vmem:[%s871_s1 + $0x2a8] sm:$0xff]  ;;  %v101_v34 = vld [vmem:[%s871_s1 + $0x220] sm:$0xff] }
  0x21   :  { %176 = vmatpush.msra.mxu1 %v49_v54  ;;  %214 = vmatpush.msra.mxu3 %v83_v2  ;;  %v32_v29 = vld [vmem:[%s872_s0 + $0x30] sm:$0xff]  ;;  %v295_v33 = vld [vmem:[%s874_s3 + $0x68] sm:$0xff]  ;;  %v117_v35 = vld [vmem:[%s871_s1 + $0x2a0] sm:$0xff] }
  0x22   :  { %221 = vmatpush.msrb.mxu0 %v112_v55  ;;  %195 = vmatpush.msra.mxu2 %v66_v1  ;;  %v296_v30 = vld [vmem:[%s874_s3 + $0x70] sm:$0xff]  ;;  %v294_v36 = vld [vmem:[%s874_s3 + $0x60] sm:$0xff]  ;;  %v100_v37 = vld [vmem:[%s871_s1 + $0x218] sm:$0xff] }
  0x23   :  { %241 = vmatpush.msrb.mxu1 %v128_v56  ;;  %215 = vmatpush.msra.mxu3 %v82_v6  ;;  %v116_v38 = vld [vmem:[%s871_s1 + $0x298] sm:$0xff]  ;;  %v99_v40 = vld [vmem:[%s871_s1 + $0x210] sm:$0xff]  ;;  %v98_v43 = vld [vmem:[%s871_s1 + $0x208] sm:$0xff] }
  0x24   :  { %222 = vmatpush.msrb.mxu0 %v111_v59  ;;  %196 = vmatpush.msra.mxu2 %v65_v5  ;;  %v293_v39 = vld [vmem:[%s874_s3 + $0x58] sm:$0xff]  ;;  %v115_v41 = vld [vmem:[%s871_s1 + $0x290] sm:$0xff]  ;;  %v114_v44 = vld [vmem:[%s871_s1 + $0x288] sm:$0xff] }
  0x25   :  { %242 = vmatpush.msrb.mxu1 %v127_v60  ;;  %197 = vmatmul.f32.vlgmr.msra.gmra.mxu2 %v28_v9  ;;  %v292_v42 = vld [vmem:[%s874_s3 + $0x50] sm:$0xff]  ;;  %v291_v45 = vld [vmem:[%s874_s3 + $0x48] sm:$0xff]  ;;  %v97_v46 = vld [vmem:[%s871_s1 + $0x200] sm:$0xff] }
  0x26   :  { %223 = vmatpush.msrb.mxu0 %v110_v63  ;;  %216 = vmatpush.msra.mxu3 %v81_v10  ;;  %v113_v47 = vld [vmem:[%s871_s1 + $0x280] sm:$0xff]  ;;  %v31_v49 = vld [vmem:[%s872_s0 + $0x28] sm:$0xff]  ;;  %v289_v51 = vld [vmem:[%s874_s3 + $0x38] sm:$0xff] }
  0x27   :  { %243 = vmatpush.msrb.mxu1 %v126_v0  ;;  %273 = vmatpush.msrb.mxu2 %v132_v13  ;;  %v30_v48 = vld [vmem:[%s872_s0 + $0x20] sm:$0xff]  ;;  %v288_v52 = vld [vmem:[%s874_s3 + $0x30] sm:$0xff]  ;;  %v287_v53 = vld [vmem:[%s874_s3 + $0x28] sm:$0xff] }
  0x28   :  { %224 = vmatpush.msrb.mxu0 %v109_v3  ;;  %217 = vmatmul.f32.vlgmr.msra.gmra.mxu3 %v29_v17  ;;  %v290_v50 = vld [vmem:[%s874_s3 + $0x40] sm:$0xff]  ;;  %v285_v55 = vld [vmem:[%s874_s3 + $0x18] sm:$0xff]  ;;  %v284_v56 = vld [vmem:[%s874_s3 + $0x10] sm:$0xff] }
  0x29   :  { %244 = vmatpush.msrb.mxu1 %v125_v4  ;;  %157 = vmatmul.f32.vlgmr.msra.gmra.mxu0 %v26_v14  ;;  %v286_v54 = vld [vmem:[%s874_s3 + $0x20] sm:$0xff]  ;;  %v283_v57 = vld [vmem:[%s874_s3 + $0x8] sm:$0xff]  ;;  %v338_v59 = vld [vmem:[%s876_s5 + $0x78] sm:$0xff] }
  0x2a   :  { %225 = vmatpush.msrb.mxu0 %v108_v7  ;;  %274 = vmatpush.msrb.mxu2 %v131_v18  ;;  %v282_v58 = vld [vmem:[%s874_s3] sm:$0xff]  ;;  %v337_v60 = vld [vmem:[%s876_s5 + $0x70] sm:$0xff]  ;;  %v336_v61 = vld [vmem:[%s876_s5 + $0x68] sm:$0xff] }
  0x2b   :  { %245 = vmatpush.msrb.mxu1 %v124_v8  ;;  %302 = vmatpush.msrb.mxu3 %v297_v26  ;;  %v395_v62 = vld [vmem:[%s873_s2] ss:$0 sm:$0xff]  ;;  %v334_v1 = vld [vmem:[%s876_s5 + $0x58] sm:$0xff]  ;;  %v333_v3 = vld [vmem:[%s876_s5 + $0x50] sm:$0xff] }
  0x2c   :  { %226 = vmatpush.msrb.mxu0 %v107_v11  ;;  %177 = vmatmul.f32.vlgmr.msra.gmra.mxu1 %v27_v21  ;;  %v335_v63 = vld [vmem:[%s876_s5 + $0x60] sm:$0xff]  ;;  %v332_v5 = vld [vmem:[%s876_s5 + $0x48] sm:$0xff]  ;;  %v330_v9 = vld [vmem:[%s876_s5 + $0x38] sm:$0xff] }
  0x2d   :  { %246 = vmatpush.msrb.mxu1 %v123_v12  ;;  %275 = vmatpush.msrb.mxu2 %v130_v22  ;;  %v331_v7 = vld [vmem:[%s876_s5 + $0x40] sm:$0xff]  ;;  %v329_v11 = vld [vmem:[%s876_s5 + $0x30] sm:$0xff]  ;;  %v328_v13 = vld [vmem:[%s876_s5 + $0x28] sm:$0xff] }
  0x2e   :  { %227 = vmatpush.msrb.mxu0 %v106_v15  ;;  %303 = vmatpush.msrb.mxu3 %v296_v30  ;;  %v327_v15 = vld [vmem:[%s876_s5 + $0x20] sm:$0xff] }
  0x2f   :  { %247 = vmatpush.msrb.mxu1 %v122_v16  ;;  %276 = vmatpush.msrb.mxu2 %v129_v25  ;;  %v326_v16 = vld [vmem:[%s876_s5 + $0x18] sm:$0xff]  ;;  %v324_v25 = vld [vmem:[%s876_s5 + $0x8] sm:$0xff]  ;;  %v323_v26 = vld [vmem:[%s876_s5] sm:$0xff] }
  0x30   :  { %228 = vmatpush.msrb.mxu0 %v105_v19  ;;  %394 = vmatmul.msk.f32.vlgmr.msrb.gmra.mxu2 %vm137_vm0, %v32_v29 }
  0x31   :  { %248 = vmatpush.msrb.mxu1 %v121_v20  ;;  %304 = vmatpush.msrb.mxu3 %v295_v33  ;;  %v397_v33 = vld [vmem:[%s877_s6] ss:$0 sm:$0xff] }
  0x32   :  { %229 = vmatpush.msrb.mxu0 %v104_v23  ;;  %343 = vmatpush.msra.mxu2 %v338_v59 }
  0x33   :  { %249 = vmatpush.msrb.mxu1 %v120_v24  ;;  %305 = vmatpush.msrb.mxu3 %v294_v36  ;;  %v325_v24 = vld [vmem:[%s876_s5 + $0x10] sm:$0xff] }
  0x34   :  { %230 = vmatpush.msrb.mxu0 %v103_v27  ;;  %344 = vmatpush.msra.mxu2 %v337_v60  ;;  %v396_v27 = vld [vmem:[%s875_s4] ss:$0 sm:$0xff] }
  0x35   :  { %250 = vmatpush.msrb.mxu1 %v119_v28  ;;  %306 = vmatpush.msrb.mxu3 %v293_v39 }
  0x36   :  { %231 = vmatpush.msrb.mxu0 %v102_v31  ;;  %345 = vmatpush.msra.mxu2 %v336_v61  ;;  %v363_v31 = vlaneseq }
  0x37   :  { %251 = vmatpush.msrb.mxu1 %v118_v32  ;;  %307 = vmatpush.msrb.mxu3 %v292_v42 }
  0x38   :  { %232 = vmatpush.msrb.mxu0 %v101_v34  ;;  %346 = vmatpush.msra.mxu2 %v335_v63  ;;  %v364_v32 = vand.u32 127, %v363_v31 }
  0x39   :  { %252 = vmatpush.msrb.mxu1 %v117_v35  ;;  %308 = vmatpush.msrb.mxu3 %v291_v45 }
  0x3a   :  { %233 = vmatpush.msrb.mxu0 %v100_v37  ;;  %347 = vmatpush.msra.mxu2 %v334_v1  ;;  %vm365_vm1 = vcmp.lt.s32.totalorder %v364_v32, 10 }
  0x3b   :  { %253 = vmatpush.msrb.mxu1 %v116_v38  ;;  %309 = vmatpush.msrb.mxu3 %v290_v50 }
  0x3c   :  { %234 = vmatpush.msrb.mxu0 %v99_v40  ;;  %348 = vmatpush.msra.mxu2 %v333_v3 }
  0x3d   :  { %254 = vmatpush.msrb.mxu1 %v115_v41  ;;  %310 = vmatpush.msrb.mxu3 %v289_v51 }
  0x3e   :  { %235 = vmatpush.msrb.mxu0 %v98_v43  ;;  %349 = vmatpush.msra.mxu2 %v332_v5 }
  0x3f   :  { %255 = vmatpush.msrb.mxu1 %v114_v44  ;;  %311 = vmatpush.msrb.mxu3 %v288_v52 }
  0x40   :  { %236 = vmatpush.msrb.mxu0 %v97_v46  ;;  %350 = vmatpush.msra.mxu2 %v331_v7 }
  0x41   :  { %256 = vmatpush.msrb.mxu1 %v113_v47  ;;  %237 = vmatmul.f32.vlgmr.msrb.gmra.mxu0 %v30_v48 }
  0x42   :  { %257 = vmatmul.f32.vlgmr.msrb.gmra.mxu1 %v31_v49  ;;  %312 = vmatpush.msrb.mxu3 %v287_v53 }
  0x43   :  { %351 = vmatpush.msra.mxu2 %v330_v9 }
  0x44   :  { %313 = vmatpush.msrb.mxu3 %v286_v54 }
  0x45   :  { %352 = vmatpush.msra.mxu2 %v329_v11 }
  0x46   :  { %314 = vmatpush.msrb.mxu3 %v285_v55 }
  0x47   :  { %353 = vmatpush.msra.mxu2 %v328_v13 }
  0x48   :  { %315 = vmatpush.msrb.mxu3 %v284_v56 }
  0x49   :  { %354 = vmatpush.msra.mxu2 %v327_v15 }
  0x4a   :  { %316 = vmatpush.msrb.mxu3 %v283_v57 }
  0x4b   :  { %355 = vmatpush.msra.mxu2 %v326_v16 }
  0x4c   :  { %317 = vmatpush.msrb.mxu3 %v282_v58 }
  0x4d   :  { %356 = vmatpush.msra.mxu2 %v325_v24 }
  0x4f   :  { %357 = vmatpush.msra.mxu2 %v324_v25 }
  0x51   :  { %358 = vmatpush.msra.mxu2 %v323_v26 }
  0xa6   :  { %v158_v0 = vpop.f32.mrf.mxu0 }
  0xa7   :  { %v159_v2 = vadd.f32 %v395_v62, %v158_v0 }
  0xa8   :  { %v198_v8 = vpop.f32.mrf.mxu2 }
  0xa9   :  { %v178_v4 = vpop.f32.mrf.mxu1 }
  0xaa   :  { %v179_v6 = vadd.f32 %v178_v4, %v159_v2 }
  0xab   :  { %v218_v12 = vpop.f32.mrf.mxu3 }
  0xac   :  { %v199_v10 = vadd.f32 %v198_v8, %v179_v6 }
  0xae   :  { %v219_v14 = vadd.f32 %v218_v12, %v199_v10 }
  0xb3   :  { %v278_v20 = vpop.f32.mrf.mxu2 }
  0xbe   :  { %v238_v17 = vpop.f32.mrf.mxu0 }
  0xbf   :  { %v258_v18 = vpop.f32.mrf.mxu1  ;;  %v239_v19 = vadd.f32 %v238_v17, %v219_v14 }
  0xc1   :  { %v259_v21 = vadd.f32 %v258_v18, %v239_v19 }
  0xc3   :  { %v279_v22 = vadd.f32 %v278_v20, %v259_v21 }
  0xc5   :  { %v281_v23 = vmax.f32 %v279_v22, 0.0 }
  0xc7   :  { %318 = vmatmul.f32.vlgmr.msrb.gmra.mxu3 %v281_v23 }
 0x14a   :  { %v319_v28 = vpop.f32.mrf.mxu3 }
 0x14b   :  { %v320_v29 = vadd.f32 %v396_v27, %v319_v28 }
 0x14d   :  { %v322_v30 = vmax.f32 %v320_v29, 0.0 }
 0x14f   :  { %359 = vmatmul.f32.vlgmr.msra.gmra.mxu2 %v322_v30 }
 0x1d2   :  { %v360_v34 = vpop.f32.mrf.mxu2 }
 0x1d3   :  { %v361_v35 = vadd.f32 %v397_v33, %v360_v34 }
 0x1d5   :  { %v366_v36 = vsel %vm365_vm1, %v361_v35, -1e+30 }
 0x1d6   :  { %367 = vmax.xlane.f32.xlu0 %v366_v36 }
 0x249   :  { %v368_v37 = vpop.xlane.xlu0 %367 }
 0x24a   :  { %v369_v38 = vsub.f32 %v366_v36, %v368_v37 }
 0x24c   :  { %v370_v39 = vmul.f32 1.442695, %v369_v38 }
 0x24e   :  { %398 = vpow2.f32 %v370_v39 }
 0x254   :  { %v399_v40 = vpop.eup %398 }
 0x255   :  { %372 = vadd.xlane.f32.xlu0 %v399_v40 }
 0x2c8   :  { %v373_v41 = vpop.xlane.xlu0 %372 }
 0x2c9   :  { %400 = vrcp.f32 %v373_v41  ;;  %v385_v45 = vand.u32 2147483648, %v373_v41  ;;  %v383_v47 = vand.u32 2147483647, %v373_v41  ;;  %vm379_vm3 = vweird.f32 %v373_v41 }
 0x2cb   :  { %v386_v49 = vor.u32 1.1754944e-38, %v385_v45  ;;  %vm384_vm5 = vcmp.eq.f32.partialorder %v383_v47, 8.507059e+37 }
 0x2cf   :  { %v401_v42 = vpop.eup %400 }
 0x2d0   :  { %v375_v43 = vmul.f32 %v401_v42, %v373_v41  ;;  %vm380_vm2 = vweird.f32 %v401_v42 }
 0x2d1   :  { %vm381_vm4 = vmor %vm379_vm3, %vm380_vm2 }
 0x2d2   :  { %v376_v44 = vsub.f32 1.0, %v375_v43 }
 0x2d4   :  { %v377_v46 = vmul.f32 %v401_v42, %v376_v44 }
 0x2d6   :  { %v378_v48 = vadd.f32 %v401_v42, %v377_v46 }
 0x2d8   :  { %v382_v50 = vsel %vm381_vm4, %v401_v42, %v378_v48 }
 0x2d9   :  { %v387_v51 = vsel %vm384_vm5, %v386_v49, %v382_v50 }
 0x2da   :  { %v388_v52 = vmul.f32 %v399_v40, %v387_v51 }
 0x2dc   :  { %389 = vst [vmem:[%s878_s7] sm:$0xff] %v388_v52 }

</bundles_post_ra>
